<compile_context>
chip_gen: v5e
topology: v5e:2x2
jax: 0.10.0
libtpu: 0.0.40
codegen_flags: <defaults>
</compile_context>

<pallas_src>
import functools
import numpy as np

import jax
import jax.numpy as jnp
from jax.experimental import pallas as pl
from jax.experimental.pallas import tpu as pltpu

# ----------------------------- model configuration (scaled-down Swin-T) -----------------
IMG = 32          # input spatial size
IN_CH = 3         # RGB
PATCH = 4         # patch size (same as swin_t)
EMBED_DIM = 32    # swin_t uses 96; scaled down
DEPTHS = (2, 2)   # swin_t uses (2, 2, 6, 2); scaled down
NUM_HEADS = (2, 4)
WINDOW = 4        # swin_t uses 7
MLP_RATIO = 4
NUM_CLASSES = 3   # output_classes, classification_strategy='categorical'
HEAD_HIDDEN = 1024
LN_EPS = 1e-5
ACT_DTYPE = jnp.bfloat16   # kernel-boundary activation dtype


# ----------------------------------- in-kernel helpers -----------------------------------
def _ln(x, g, b, eps=LN_EPS):
    mu = jnp.mean(x, axis=-1, keepdims=True)
    var = jnp.mean((x - mu) ** 2, axis=-1, keepdims=True)
    return (x - mu) * jax.lax.rsqrt(var + eps) * g + b


def _gelu(x):  # exact erf-based GELU (torch.nn.GELU default)
    return 0.5 * x * (1.0 + jax.lax.erf(x * 0.7071067811865476))


def _dot(a, w):  # bf16 MXU operands, f32 accumulation
    return jnp.dot(a.astype(jnp.bfloat16), w.astype(jnp.bfloat16),
                   preferred_element_type=jnp.float32)


def _full_spec(a):
    """Whole-array BlockSpec with a constant index map (grid rank 1)."""
    nd = a.ndim
    return pl.BlockSpec(a.shape, lambda b: (0,) * nd)


# ----------------------------------- Pallas kernels --------------------------------------
def _patch_embed_kernel(x_ref, w_ref, b_ref, g_ref, be_ref, o_ref):
    """Conv2d(3, C, k=4, s=4) as patchify-matmul, fused with the patch LayerNorm."""
    rows = x_ref.shape[1]
    p = x_ref[...].reshape(rows, x_ref.shape[2])
    h = _dot(p, w_ref[...]) + b_ref[...]
    o_ref[...] = _ln(h, g_ref[...], be_ref[...]).reshape(o_ref.shape).astype(o_ref.dtype)


def _swin_block_kernel(x_ref, n1g, n1b, qkvw, qkvb, bm_ref, pw, pb,
                       n2g, n2b, f1w, f1b, f2w, f2b, o_ref, attn_buf,
                       *, n_heads, tokens, n_win):
    """One full Swin block for one image (all its windows), everything VMEM-resident.

    x_ref/o_ref: (1, nW, T, C) window-ordered tokens.  bm_ref: combined relative-position
    bias (+ shift mask) (nH, nW, T, T).  attn_buf: (nW*T, C) f32 VMEM scratch that
    collects the per-head attention outputs so the output projection is a single
    full-width matmul with the original proj_w.
    """
    T, nW = tokens, n_win
    C = x_ref.shape[-1]
    Dh = C // n_heads
    M = nW * T

    x = x_ref[...].reshape(M, C).astype(jnp.float32)

    # ---- LN1 -> fused QKV (scale pre-folded into q columns) -> window attention ----
    h = _ln(x, n1g[...], n1b[...]).astype(jnp.bfloat16)
    qkv = _dot(h, qkvw[...]) + qkvb[...]                       # (M, 3C) f32

    for hd in range(n_heads):                                   # static unroll (<= 4)
        q = qkv[:, hd * Dh:(hd + 1) * Dh].reshape(nW, T, Dh)
        k = qkv[:, C + hd * Dh:C + (hd + 1) * Dh].reshape(nW, T, Dh)
        v = qkv[:, 2 * C + hd * Dh:2 * C + (hd + 1) * Dh].reshape(nW, T, Dh)
        s = jnp.einsum("wtd,wsd->wts", q.astype(jnp.bfloat16), k.astype(jnp.bfloat16),
                       preferred_element_type=jnp.float32)      # (nW, T, T)
        s = s + bm_ref[hd]                                      # bias (+ mask), one add
        mx = jnp.max(s, axis=-1, keepdims=True)
        p = jnp.exp(s - mx)
        p = p * pl.reciprocal(jnp.sum(p, axis=-1, keepdims=True), approx=True)
        o = jnp.einsum("wts,wsd->wtd", p.astype(jnp.bfloat16), v.astype(jnp.bfloat16),
                       preferred_element_type=jnp.float32)      # (nW, T, Dh)
        attn_buf[:, hd * Dh:(hd + 1) * Dh] = o.reshape(M, Dh)

    # single full-width output projection + residual (stochastic depth: eval identity)
    x = x + _dot(attn_buf[...], pw[...]) + pb[...]

    # ---- LN2 + MLP (Dropouts are eval-mode identities) + residual ----
    h2 = _ln(x, n2g[...], n2b[...])
    h2 = _dot(h2, f1w[...]) + f1b[...]
    h2 = _gelu(h2)
    h2 = _dot(h2, f2w[...]) + f2b[...]
    o_ref[...] = (x + h2).reshape(o_ref.shape).astype(o_ref.dtype)


def _merge_kernel(x_ref, g_ref, b_ref, w_ref, o_ref):
    """Patch merging: LayerNorm(4C) fused with Linear(4C -> 2C, bias=False)."""
    rows = x_ref.shape[1]
    h = _ln(x_ref[...].reshape(rows, x_ref.shape[2]).astype(jnp.float32),
            g_ref[...], b_ref[...])
    o_ref[...] = _dot(h, w_ref[...]).reshape(o_ref.shape).astype(o_ref.dtype)


def _tail_kernel(x_ref, g_ref, b_ref, w_ref, hb_ref, o_ref):
    """Final LN -> global average pool -> collapsed head Linear -> categorical Softmax."""
    x = x_ref[...].astype(jnp.float32)                  # (B, HW, C)
    h = _ln(x, g_ref[...], b_ref[...])
    pooled = jnp.mean(h, axis=1)                        # (B, C)
    logits = _dot(pooled, w_ref[...]) + hb_ref[...]
    m = jnp.max(logits, axis=-1, keepdims=True)
    p = jnp.exp(logits - m)
    o_ref[...] = (p / jnp.sum(p, axis=-1, keepdims=True)).astype(o_ref.dtype)


# ------------------------------ Swin glue (permutations only) ----------------------------
def _relative_position_index(ws):
    coords = np.stack(np.meshgrid(np.arange(ws), np.arange(ws), indexing="ij"))
    coords_flat = coords.reshape(2, -1)
    rel = coords_flat[:, :, None] - coords_flat[:, None, :]   # (2, T, T)
    rel = rel.transpose(1, 2, 0).astype(np.int64)
    rel[:, :, 0] += ws - 1
    rel[:, :, 1] += ws - 1
    rel[:, :, 0] *= 2 * ws - 1
    return rel.sum(-1).reshape(-1)                            # (T*T,)


def relative_position_bias(table, ws, n_heads):
    T = ws * ws
    idx = _relative_position_index(ws)
    bias = table[idx]                                         # (T*T, nH)
    return bias.reshape(T, T, n_heads).transpose(2, 0, 1)     # (nH, T, T)


def make_attn_mask(H, W, ws, shift):
    sh, sw = shift
    img = np.zeros((H, W), np.float32)
    h_slices = ((0, H - ws), (H - ws, H - sh), (H - sh, H))
    w_slices = ((0, W - ws), (W - ws, W - sw), (W - sw, W))
    cnt = 0
    for hs in h_slices:
        for wsl in w_slices:
            img[hs[0]:hs[1], wsl[0]:wsl[1]] = cnt
            cnt += 1
    m = img.reshape(H // ws, ws, W // ws, ws).transpose(0, 2, 1, 3).reshape(-1, ws * ws)
    diff = m[:, None, :] - m[:, :, None]
    return np.where(diff != 0.0, -100.0, 0.0).astype(np.float32)   # (nW, T, T)


def _combined_bias(rel_table, ws, n_heads, H, W, shift):
    """Relative-position bias (+ shift mask if any) precombined per (head, window)."""
    T = ws * ws
    nWm = (H // ws) * (W // ws)
    bias = relative_position_bias(rel_table, ws, n_heads)          # (nH, T, T)
    sh = 0 if ws >= H else shift
    sw = 0 if ws >= W else shift
    if sh or sw:
        mask = jnp.asarray(make_attn_mask(H, W, ws, (sh, sw)))     # (nWm, T, T)
        bm = bias[:, None, :, :] + mask[None, :, :, :]
    else:
        bm = jnp.broadcast_to(bias[:, None, :, :], (n_heads, nWm, T, T))
    return jnp.asarray(bm, jnp.float32)


def swin_block(x, bp, shift, n_heads, ws):
    B, H, W, C = x.shape
    T = ws * ws
    sh = 0 if ws >= H else shift
    sw = 0 if ws >= W else shift

    h = x
    if sh or sw:
        h = jnp.roll(h, (-sh, -sw), axis=(1, 2))
    nWh, nWw = H // ws, W // ws
    nWm = nWh * nWw
    # window partition -> (B, nW, T, C); pure permutation left to XLA (~16 KB)
    xw = h.reshape(B, nWh, ws, nWw, ws, C).transpose(0, 1, 3, 2, 4, 5).reshape(B, nWm, T, C)

    kernel = functools.partial(_swin_block_kernel, n_heads=n_heads, tokens=T, n_win=nWm)
    weights = (bp["n1_g"], bp["n1_b"], bp["qkv_w"], bp["qkv_b"], bp["biasmask"],
               bp["proj_w"], bp["proj_b"], bp["n2_g"], bp["n2_b"],
               bp["fc1_w"], bp["fc1_b"], bp["fc2_w"], bp["fc2_b"])

    y = pl.pallas_call(
        kernel,
        out_shape=jax.ShapeDtypeStruct((B, nWm, T, C), ACT_DTYPE),
        grid_spec=pltpu.PrefetchScalarGridSpec(
            num_scalar_prefetch=0,
            grid=(B,),
            in_specs=[pl.BlockSpec((1, nWm, T, C), lambda b: (b, 0, 0, 0))]
                     + [_full_spec(w) for w in weights],
            out_specs=pl.BlockSpec((1, nWm, T, C), lambda b: (b, 0, 0, 0)),
            scratch_shapes=[pltpu.VMEM((nWm * T, C), jnp.float32)]),
        compiler_params=pltpu.CompilerParams(dimension_semantics=("parallel",)),
    )(xw, *weights)

    # window de-partition + un-shift (inverse permutation)
    y = y.reshape(B, nWh, nWw, ws, ws, C).transpose(0, 1, 3, 2, 4, 5).reshape(B, H, W, C)
    if sh or sw:
        y = jnp.roll(y, (sh, sw), axis=(1, 2))
    # TODO(synk): fuse both blocks of a stage (shift via in-kernel roll) and the patch
    # merge epilogue into one pallas_call to cut the remaining launch/permute overhead.
    return y


def patch_merging(x, sp):
    B, H, W, C = x.shape
    rows = (H // 2) * (W // 2)
    x0 = x[:, 0::2, 0::2, :]
    x1 = x[:, 1::2, 0::2, :]
    x2 = x[:, 0::2, 1::2, :]
    x3 = x[:, 1::2, 1::2, :]
    xc = jnp.concatenate([x0, x1, x2, x3], axis=-1).reshape(B, rows, 4 * C)
    out = pl.pallas_call(
        _merge_kernel,
        out_shape=jax.ShapeDtypeStruct((B, rows, 2 * C), ACT_DTYPE),
        grid=(B,),
        in_specs=[pl.BlockSpec((1, rows, 4 * C), lambda b: (b, 0, 0)),
                  _full_spec(sp["merge_ln_g"]), _full_spec(sp["merge_ln_b"]),
                  _full_spec(sp["merge_w"])],
        out_specs=pl.BlockSpec((1, rows, 2 * C), lambda b: (b, 0, 0)),
        compiler_params=pltpu.CompilerParams(dimension_semantics=("parallel",)),
    )(xc, sp["merge_ln_g"], sp["merge_ln_b"], sp["merge_w"])
    return out.reshape(B, H // 2, W // 2, 2 * C)


def model_out_forward(x_nchw, pp):
    B = x_nchw.shape[0]
    # ---- patch embedding: Conv2d(3, EMBED_DIM, k=4, s=4) as patchify + fused matmul+LN ----
    Hp, Wp = IMG // PATCH, IMG // PATCH
    pdim = IN_CH * PATCH * PATCH
    patches = x_nchw.reshape(B, IN_CH, Hp, PATCH, Wp, PATCH)
    patches = patches.transpose(0, 2, 4, 1, 3, 5).reshape(B, Hp * Wp, pdim)
    x = pl.pallas_call(
        _patch_embed_kernel,
        out_shape=jax.ShapeDtypeStruct((B, Hp * Wp, EMBED_DIM), ACT_DTYPE),
        grid=(B,),
        in_specs=[pl.BlockSpec((1, Hp * Wp, pdim), lambda b: (b, 0, 0)),
                  _full_spec(pp["patch_w"]), _full_spec(pp["patch_b"]),
                  _full_spec(pp["patch_ln_g"]), _full_spec(pp["patch_ln_b"])],
        out_specs=pl.BlockSpec((1, Hp * Wp, EMBED_DIM), lambda b: (b, 0, 0)),
        compiler_params=pltpu.CompilerParams(dimension_semantics=("parallel",)),
    )(patches, pp["patch_w"], pp["patch_b"], pp["patch_ln_g"], pp["patch_ln_b"])
    x = x.reshape(B, Hp, Wp, EMBED_DIM)

    # ---- stages ----
    for s, depth in enumerate(DEPTHS):
        sp = pp["stages"][s]
        for bi in range(depth):
            shift = 0 if bi % 2 == 0 else WINDOW // 2
            x = swin_block(x, sp["blocks"][bi], shift, NUM_HEADS[s], WINDOW)
        if s < len(DEPTHS) - 1:
            x = patch_merging(x, sp)

    # ---- fused tail: final LN -> avg pool -> (collapsed) head -> softmax ----
    Bc, Hc, Wc, Cc = x.shape
    return pl.pallas_call(
        _tail_kernel,
        out_shape=jax.ShapeDtypeStruct((Bc, NUM_CLASSES), jnp.float32),
    )(x.reshape(Bc, Hc * Wc, Cc), pp["final_ln_g"], pp["final_ln_b"],
      pp["head_w"], pp["head_b"])


# ------------------------------------- parameter init ------------------------------------
def init_params(seed=0):
    """Parameters in PyTorch-equivalent shapes (Linear weights stored as weight.T)."""
    key = jax.random.PRNGKey(seed)

    def nxt(shape, scale=0.02):
        nonlocal key
        key, sub = jax.random.split(key)
        return (jax.random.normal(sub, shape, jnp.float32) * scale).astype(jnp.float32)

    ones = lambda n: jnp.ones((n,), jnp.float32)
    zeros = lambda n: jnp.zeros((n,), jnp.float32)

    p = {
        "patch_w": nxt((EMBED_DIM, IN_CH, PATCH, PATCH)),
        "patch_b": nxt((EMBED_DIM,)),
        "patch_ln_g": ones(EMBED_DIM),
        "patch_ln_b": zeros(EMBED_DIM),
        "stages": [],
    }
    for s, depth in enumerate(DEPTHS):
        dim = EMBED_DIM * 2 ** s
        n_heads = NUM_HEADS[s]
        blocks = []
        for _ in range(depth):
            blocks.append({
                "n1_g": ones(dim), "n1_b": zeros(dim),
                "qkv_w": nxt((dim, 3 * dim)), "qkv_b": nxt((3 * dim,)),
                "rel_table": nxt(((2 * WINDOW - 1) ** 2, n_heads)),
                "proj_w": nxt((dim, dim)), "proj_b": nxt((dim,)),
                "n2_g": ones(dim), "n2_b": zeros(dim),
                "fc1_w": nxt((dim, MLP_RATIO * dim)), "fc1_b": nxt((MLP_RATIO * dim,)),
                "fc2_w": nxt((MLP_RATIO * dim, dim)), "fc2_b": nxt((dim,)),
            })
        stage = {"blocks": blocks}
        if s < len(DEPTHS) - 1:
            stage["merge_ln_g"] = ones(4 * dim)
            stage["merge_ln_b"] = zeros(4 * dim)
            stage["merge_w"] = nxt((4 * dim, 2 * dim))
        p["stages"].append(stage)

    nf = EMBED_DIM * 2 ** (len(DEPTHS) - 1)
    p["final_ln_g"] = ones(nf)
    p["final_ln_b"] = zeros(nf)
    p["head_w1"] = nxt((nf, HEAD_HIDDEN))
    p["head_b1"] = nxt((HEAD_HIDDEN,))
    p["head_w2"] = nxt((HEAD_HIDDEN, NUM_CLASSES))
    p["head_b2"] = nxt((NUM_CLASSES,))
    return p


def prepare_params(p):
    """One-time restructuring into the fused-kernel layout: fused bf16 QKV with the
    attention scale folded in, precombined bias+mask, bf16 weights, collapsed head."""
    q = {
        "patch_w": p["patch_w"].reshape(EMBED_DIM, IN_CH * PATCH * PATCH).T.astype(jnp.bfloat16),
        "patch_b": p["patch_b"].reshape(1, -1),
        "patch_ln_g": p["patch_ln_g"].reshape(1, -1),
        "patch_ln_b": p["patch_ln_b"].reshape(1, -1),
        "stages": [],
    }
    res = IMG // PATCH
    for s, depth in enumerate(DEPTHS):
        dim = EMBED_DIM * 2 ** s
        nH = NUM_HEADS[s]
        H = W = res // 2 ** s
        scale = float(dim // nH) ** -0.5
        sp = p["stages"][s]
        blocks = []
        for bi in range(depth):
            bp = sp["blocks"][bi]
            shift = 0 if bi % 2 == 0 else WINDOW // 2
            # fold the attention scale into the q columns of the fused qkv projection
            qkv_w = jnp.concatenate([bp["qkv_w"][:, :dim] * scale, bp["qkv_w"][:, dim:]], axis=1)
            qkv_b = jnp.concatenate([bp["qkv_b"][:dim] * scale, bp["qkv_b"][dim:]])
            blocks.append({
                "n1_g": bp["n1_g"].reshape(1, -1), "n1_b": bp["n1_b"].reshape(1, -1),
                "qkv_w": qkv_w.astype(jnp.bfloat16), "qkv_b": qkv_b.reshape(1, -1),
                "biasmask": _combined_bias(bp["rel_table"], WINDOW, nH, H, W, shift),
                "proj_w": bp["proj_w"].astype(jnp.bfloat16),
                "proj_b": bp["proj_b"].reshape(1, -1),
                "n2_g": bp["n2_g"].reshape(1, -1), "n2_b": bp["n2_b"].reshape(1, -1),
                "fc1_w": bp["fc1_w"].astype(jnp.bfloat16), "fc1_b": bp["fc1_b"].reshape(1, -1),
                "fc2_w": bp["fc2_w"].astype(jnp.bfloat16), "fc2_b": bp["fc2_b"].reshape(1, -1),
            })
        st = {"blocks": blocks}
        if s < len(DEPTHS) - 1:
            st["merge_ln_g"] = sp["merge_ln_g"].reshape(1, -1)
            st["merge_ln_b"] = sp["merge_ln_b"].reshape(1, -1)
            st["merge_w"] = sp["merge_w"].astype(jnp.bfloat16)
        q["stages"].append(st)

    q["final_ln_g"] = p["final_ln_g"].reshape(1, -1)
    q["final_ln_b"] = p["final_ln_b"].reshape(1, -1)
    # Collapsed head: exact only because Dropout(0.4) is an eval-mode identity and there
    # is no nonlinearity between the two head Linears ('default' configuration).
    q["head_w"] = (p["head_w1"] @ p["head_w2"]).astype(jnp.bfloat16)              # (C, 3)
    q["head_b"] = (p["head_b1"] @ p["head_w2"] + p["head_b2"]).reshape(1, -1)     # (1, 3)
    return q


# TODO(synk): pretrained-weight loading (Swin_T_Weights.DEFAULT) and train-mode
# Dropout / stochastic-depth randomness are not reproduced; eval-mode identities are used.

if __name__ == "__main__":
    key = jax.random.PRNGKey(0)
    x = jax.random.normal(key, (2, IN_CH, IMG, IMG), jnp.float32)
    params = prepare_params(init_params(0))

    fwd = jax.jit(model_out_forward)
    out = jax.block_until_ready(fwd(x, params))

    assert out.shape == (2, NUM_CLASSES), out.shape
    assert bool(jnp.all(jnp.isfinite(out)))
    # softmax rows sum to ~1
    assert bool(jnp.allclose(jnp.sum(out, axis=-1), 1.0, atol=1e-3))
    print("KERNEL_OK")
</pallas_src>

<mosaic_0001>
module attributes {stable_mosaic.version = 11 : i64} {
  func.func @_patch_embed_kernel(%arg0: i32, %arg1: memref<1x64x48xf32, #tpu.memory_space<vmem>>, %arg2: memref<48x32xbf16, #tpu.memory_space<vmem>>, %arg3: memref<1x32xf32, #tpu.memory_space<vmem>>, %arg4: memref<1x32xf32, #tpu.memory_space<vmem>>, %arg5: memref<1x32xf32, #tpu.memory_space<vmem>>, %arg6: memref<1x64x32xbf16, #tpu.memory_space<vmem>>) attributes {dimension_semantics = [#tpu.dimension_semantics<parallel>], iteration_bounds = array<i64: 2>, scalar_prefetch = 0 : i64, scratch_operands = 0 : i64, tpu.core_type = #tpu.core_type<tc>, window_params = [{transform_indices = @transform_0, window_bounds = array<i64: 1, 64, 48>}, {pipeline_mode = #tpu.pipeline_mode<synchronous>, transform_indices = @transform_1, window_bounds = array<i64: 48, 32>}, {pipeline_mode = #tpu.pipeline_mode<synchronous>, transform_indices = @transform_2, window_bounds = array<i64: 1, 32>}, {pipeline_mode = #tpu.pipeline_mode<synchronous>, transform_indices = @transform_3, window_bounds = array<i64: 1, 32>}, {pipeline_mode = #tpu.pipeline_mode<synchronous>, transform_indices = @transform_4, window_bounds = array<i64: 1, 32>}, {transform_indices = @transform_5, window_bounds = array<i64: 1, 64, 32>}]} {
    %c0 = arith.constant 0 : index
    %c0_0 = arith.constant 0 : index
    %c0_1 = arith.constant 0 : index
    %0 = vector.load %arg1[%c0, %c0_0, %c0_1] : memref<1x64x48xf32, #tpu.memory_space<vmem>>, vector<1x64x48xf32>
    %1 = vector.shape_cast %0 : vector<1x64x48xf32> to vector<64x48xf32>
    %c0_2 = arith.constant 0 : index
    %c0_3 = arith.constant 0 : index
    %2 = vector.load %arg2[%c0_2, %c0_3] : memref<48x32xbf16, #tpu.memory_space<vmem>>, vector<48x32xbf16>
    %3 = arith.truncf %1 : vector<64x48xf32> to vector<64x48xbf16>
    %cst = arith.constant dense<0.000000e+00> : vector<64x32xf32>
    %4 = tpu.matmul %3, %2, %cst {dimension_numbers = #tpu.dot_dimension_numbers<[1], [0], [0], [1], [0, 0, 1, 1], [], []>} : vector<64x48xbf16>, vector<48x32xbf16>, vector<64x32xf32> -> vector<64x32xf32>
    %c0_4 = arith.constant 0 : index
    %c0_5 = arith.constant 0 : index
    %5 = vector.load %arg3[%c0_4, %c0_5] : memref<1x32xf32, #tpu.memory_space<vmem>>, vector<1x32xf32>
    %6 = vector.broadcast %5 : vector<1x32xf32> to vector<64x32xf32>
    %7 = arith.addf %4, %6 : vector<64x32xf32>
    %c0_6 = arith.constant 0 : index
    %c0_7 = arith.constant 0 : index
    %8 = vector.load %arg4[%c0_6, %c0_7] : memref<1x32xf32, #tpu.memory_space<vmem>>, vector<1x32xf32>
    %c0_8 = arith.constant 0 : index
    %c0_9 = arith.constant 0 : index
    %9 = vector.load %arg5[%c0_8, %c0_9] : memref<1x32xf32, #tpu.memory_space<vmem>>, vector<1x32xf32>
    %cst_10 = arith.constant dense<0.000000e+00> : vector<64xf32>
    %10 = vector.multi_reduction <add>, %7, %cst_10 [1] : vector<64x32xf32> to vector<64xf32>
    %11 = vector.shape_cast %10 : vector<64xf32> to vector<64x1xf32>
    %cst_11 = arith.constant 3.200000e+01 : f32
    %12 = vector.broadcast %cst_11 : f32 to vector<64x1xf32>
    %13 = arith.divf %11, %12 : vector<64x1xf32>
    %14 = vector.broadcast %13 : vector<64x1xf32> to vector<64x32xf32>
    %15 = arith.subf %7, %14 : vector<64x32xf32>
    %16 = arith.mulf %15, %15 : vector<64x32xf32>
    %cst_12 = arith.constant dense<0.000000e+00> : vector<64xf32>
    %17 = vector.multi_reduction <add>, %16, %cst_12 [1] : vector<64x32xf32> to vector<64xf32>
    %18 = vector.shape_cast %17 : vector<64xf32> to vector<64x1xf32>
    %cst_13 = arith.constant 3.200000e+01 : f32
    %19 = vector.broadcast %cst_13 : f32 to vector<64x1xf32>
    %20 = arith.divf %18, %19 : vector<64x1xf32>
    %21 = vector.broadcast %13 : vector<64x1xf32> to vector<64x32xf32>
    %22 = arith.subf %7, %21 : vector<64x32xf32>
    %cst_14 = arith.constant 9.99999974E-6 : f32
    %23 = vector.broadcast %cst_14 : f32 to vector<64x1xf32>
    %24 = arith.addf %20, %23 : vector<64x1xf32>
    %25 = math.rsqrt %24 : vector<64x1xf32>
    %26 = vector.broadcast %25 : vector<64x1xf32> to vector<64x32xf32>
    %27 = arith.mulf %22, %26 : vector<64x32xf32>
    %28 = vector.broadcast %8 : vector<1x32xf32> to vector<64x32xf32>
    %29 = arith.mulf %27, %28 : vector<64x32xf32>
    %30 = vector.broadcast %9 : vector<1x32xf32> to vector<64x32xf32>
    %31 = arith.addf %29, %30 : vector<64x32xf32>
    %32 = vector.shape_cast %31 : vector<64x32xf32> to vector<1x64x32xf32>
    %33 = arith.truncf %32 : vector<1x64x32xf32> to vector<1x64x32xbf16>
    %c0_15 = arith.constant 0 : index
    %c0_16 = arith.constant 0 : index
    %c0_17 = arith.constant 0 : index
    %34 = vector.load %arg6[%c0_15, %c0_16, %c0_17] : memref<1x64x32xbf16, #tpu.memory_space<vmem>>, vector<1x64x32xbf16>
    tpu.vector_store %arg6[%c0_15, %c0_16, %c0_17], %33 {strides = array<i32>} : memref<1x64x32xbf16, #tpu.memory_space<vmem>>, vector<1x64x32xbf16>,
    return
  }
  func.func @transform_0(%arg0: i32) -> (i32, i32, i32) {
    %c0_i32 = arith.constant 0 : i32
    %c0_i32_0 = arith.constant 0 : i32
    %c0_i32_1 = arith.constant 0 : i32
    return %arg0, %c0_i32, %c0_i32_0 : i32, i32, i32
  }
  func.func @transform_1(%arg0: i32) -> (i32, i32) {
    %c0_i32 = arith.constant 0 : i32
    %c0_i32_0 = arith.constant 0 : i32
    %c0_i32_1 = arith.constant 0 : i32
    return %c0_i32, %c0_i32_0 : i32, i32
  }
  func.func @transform_2(%arg0: i32) -> (i32, i32) {
    %c0_i32 = arith.constant 0 : i32
    %c0_i32_0 = arith.constant 0 : i32
    %c0_i32_1 = arith.constant 0 : i32
    return %c0_i32, %c0_i32_0 : i32, i32
  }
  func.func @transform_3(%arg0: i32) -> (i32, i32) {
    %c0_i32 = arith.constant 0 : i32
    %c0_i32_0 = arith.constant 0 : i32
    %c0_i32_1 = arith.constant 0 : i32
    return %c0_i32, %c0_i32_0 : i32, i32
  }
  func.func @transform_4(%arg0: i32) -> (i32, i32) {
    %c0_i32 = arith.constant 0 : i32
    %c0_i32_0 = arith.constant 0 : i32
    %c0_i32_1 = arith.constant 0 : i32
    return %c0_i32, %c0_i32_0 : i32, i32
  }
  func.func @transform_5(%arg0: i32) -> (i32, i32, i32) {
    %c0_i32 = arith.constant 0 : i32
    %c0_i32_0 = arith.constant 0 : i32
    %c0_i32_1 = arith.constant 0 : i32
    return %arg0, %c0_i32, %c0_i32_0 : i32, i32, i32
  }
}

module attributes {stable_mosaic.version = 11 : i64} {
  func.func @_swin_block_kernel(%arg0: i32, %arg1: memref<1x4x16x32xbf16, #tpu.memory_space<vmem>>, %arg2: memref<1x32xf32, #tpu.memory_space<vmem>>, %arg3: memref<1x32xf32, #tpu.memory_space<vmem>>, %arg4: memref<32x96xbf16, #tpu.memory_space<vmem>>, %arg5: memref<1x96xf32, #tpu.memory_space<vmem>>, %arg6: memref<2x4x16x16xf32, #tpu.memory_space<vmem>>, %arg7: memref<32x32xbf16, #tpu.memory_space<vmem>>, %arg8: memref<1x32xf32, #tpu.memory_space<vmem>>, %arg9: memref<1x32xf32, #tpu.memory_space<vmem>>, %arg10: memref<1x32xf32, #tpu.memory_space<vmem>>, %arg11: memref<32x128xbf16, #tpu.memory_space<vmem>>, %arg12: memref<1x128xf32, #tpu.memory_space<vmem>>, %arg13: memref<128x32xbf16, #tpu.memory_space<vmem>>, %arg14: memref<1x32xf32, #tpu.memory_space<vmem>>, %arg15: memref<1x4x16x32xbf16, #tpu.memory_space<vmem>>, %arg16: memref<64x32xf32, #tpu.memory_space<vmem>>) attributes {dimension_semantics = [#tpu.dimension_semantics<parallel>], iteration_bounds = array<i64: 2>, scalar_prefetch = 0 : i64, scratch_operands = 1 : i64, tpu.core_type = #tpu.core_type<tc>, window_params = [{transform_indices = @transform_0, window_bounds = array<i64: 1, 4, 16, 32>}, {pipeline_mode = #tpu.pipeline_mode<synchronous>, transform_indices = @transform_1, window_bounds = array<i64: 1, 32>}, {pipeline_mode = #tpu.pipeline_mode<synchronous>, transform_indices = @transform_2, window_bounds = array<i64: 1, 32>}, {pipeline_mode = #tpu.pipeline_mode<synchronous>, transform_indices = @transform_3, window_bounds = array<i64: 32, 96>}, {pipeline_mode = #tpu.pipeline_mode<synchronous>, transform_indices = @transform_4, window_bounds = array<i64: 1, 96>}, {pipeline_mode = #tpu.pipeline_mode<synchronous>, transform_indices = @transform_5, window_bounds = array<i64: 2, 4, 16, 16>}, {pipeline_mode = #tpu.pipeline_mode<synchronous>, transform_indices = @transform_6, window_bounds = array<i64: 32, 32>}, {pipeline_mode = #tpu.pipeline_mode<synchronous>, transform_indices = @transform_7, window_bounds = array<i64: 1, 32>}, {pipeline_mode = #tpu.pipeline_mode<synchronous>, transform_indices = @transform_8, window_bounds = array<i64: 1, 32>}, {pipeline_mode = #tpu.pipeline_mode<synchronous>, transform_indices = @transform_9, window_bounds = array<i64: 1, 32>}, {pipeline_mode = #tpu.pipeline_mode<synchronous>, transform_indices = @transform_10, window_bounds = array<i64: 32, 128>}, {pipeline_mode = #tpu.pipeline_mode<synchronous>, transform_indices = @transform_11, window_bounds = array<i64: 1, 128>}, {pipeline_mode = #tpu.pipeline_mode<synchronous>, transform_indices = @transform_12, window_bounds = array<i64: 128, 32>}, {pipeline_mode = #tpu.pipeline_mode<synchronous>, transform_indices = @transform_13, window_bounds = array<i64: 1, 32>}, {transform_indices = @transform_14, window_bounds = array<i64: 1, 4, 16, 32>}]} {
    %c0 = arith.constant 0 : index
    %c0_0 = arith.constant 0 : index
    %c0_1 = arith.constant 0 : index
    %c0_2 = arith.constant 0 : index
    %0 = vector.load %arg1[%c0, %c0_0, %c0_1, %c0_2] : memref<1x4x16x32xbf16, #tpu.memory_space<vmem>>, vector<1x4x16x32xbf16>
    %1 = vector.shape_cast %0 : vector<1x4x16x32xbf16> to vector<64x32xbf16>
    %2 = arith.extf %1 : vector<64x32xbf16> to vector<64x32xf32>
    %c0_3 = arith.constant 0 : index
    %c0_4 = arith.constant 0 : index
    %3 = vector.load %arg2[%c0_3, %c0_4] : memref<1x32xf32, #tpu.memory_space<vmem>>, vector<1x32xf32>
    %c0_5 = arith.constant 0 : index
    %c0_6 = arith.constant 0 : index
    %4 = vector.load %arg3[%c0_5, %c0_6] : memref<1x32xf32, #tpu.memory_space<vmem>>, vector<1x32xf32>
    %cst = arith.constant dense<0.000000e+00> : vector<64xf32>
    %5 = vector.multi_reduction <add>, %2, %cst [1] : vector<64x32xf32> to vector<64xf32>
    %6 = vector.shape_cast %5 : vector<64xf32> to vector<64x1xf32>
    %cst_7 = arith.constant 3.200000e+01 : f32
    %7 = vector.broadcast %cst_7 : f32 to vector<64x1xf32>
    %8 = arith.divf %6, %7 : vector<64x1xf32>
    %9 = vector.broadcast %8 : vector<64x1xf32> to vector<64x32xf32>
    %10 = arith.subf %2, %9 : vector<64x32xf32>
    %11 = arith.mulf %10, %10 : vector<64x32xf32>
    %cst_8 = arith.constant dense<0.000000e+00> : vector<64xf32>
    %12 = vector.multi_reduction <add>, %11, %cst_8 [1] : vector<64x32xf32> to vector<64xf32>
    %13 = vector.shape_cast %12 : vector<64xf32> to vector<64x1xf32>
    %cst_9 = arith.constant 3.200000e+01 : f32
    %14 = vector.broadcast %cst_9 : f32 to vector<64x1xf32>
    %15 = arith.divf %13, %14 : vector<64x1xf32>
    %16 = vector.broadcast %8 : vector<64x1xf32> to vector<64x32xf32>
    %17 = arith.subf %2, %16 : vector<64x32xf32>
    %cst_10 = arith.constant 9.99999974E-6 : f32
    %18 = vector.broadcast %cst_10 : f32 to vector<64x1xf32>
    %19 = arith.addf %15, %18 : vector<64x1xf32>
    %20 = math.rsqrt %19 : vector<64x1xf32>
    %21 = vector.broadcast %20 : vector<64x1xf32> to vector<64x32xf32>
    %22 = arith.mulf %17, %21 : vector<64x32xf32>
    %23 = vector.broadcast %3 : vector<1x32xf32> to vector<64x32xf32>
    %24 = arith.mulf %22, %23 : vector<64x32xf32>
    %25 = vector.broadcast %4 : vector<1x32xf32> to vector<64x32xf32>
    %26 = arith.addf %24, %25 : vector<64x32xf32>
    %27 = arith.truncf %26 : vector<64x32xf32> to vector<64x32xbf16>
    %c0_11 = arith.constant 0 : index
    %c0_12 = arith.constant 0 : index
    %28 = vector.load %arg4[%c0_11, %c0_12] : memref<32x96xbf16, #tpu.memory_space<vmem>>, vector<32x96xbf16>
    %cst_13 = arith.constant dense<0.000000e+00> : vector<64x96xf32>
    %29 = tpu.matmul %27, %28, %cst_13 {dimension_numbers = #tpu.dot_dimension_numbers<[1], [0], [0], [1], [0, 0, 1, 1], [], []>} : vector<64x32xbf16>, vector<32x96xbf16>, vector<64x96xf32> -> vector<64x96xf32>
    %c0_14 = arith.constant 0 : index
    %c0_15 = arith.constant 0 : index
    %30 = vector.load %arg5[%c0_14, %c0_15] : memref<1x96xf32, #tpu.memory_space<vmem>>, vector<1x96xf32>
    %31 = vector.broadcast %30 : vector<1x96xf32> to vector<64x96xf32>
    %32 = arith.addf %29, %31 : vector<64x96xf32>
    %33 = vector.extract_strided_slice %32 {offsets = [0, 0], sizes = [64, 16], strides = [1, 1]} : vector<64x96xf32> to vector<64x16xf32>
    %34 = vector.shape_cast %33 : vector<64x16xf32> to vector<4x16x16xf32>
    %35 = vector.extract_strided_slice %32 {offsets = [0, 32], sizes = [64, 16], strides = [1, 1]} : vector<64x96xf32> to vector<64x16xf32>
    %36 = vector.shape_cast %35 : vector<64x16xf32> to vector<4x16x16xf32>
    %37 = vector.extract_strided_slice %32 {offsets = [0, 64], sizes = [64, 16], strides = [1, 1]} : vector<64x96xf32> to vector<64x16xf32>
    %38 = vector.shape_cast %37 : vector<64x16xf32> to vector<4x16x16xf32>
    %39 = arith.truncf %34 : vector<4x16x16xf32> to vector<4x16x16xbf16>
    %40 = arith.truncf %36 : vector<4x16x16xf32> to vector<4x16x16xbf16>
    "tpu.trace_start"() <{level = 10 : i32, message = "wtd,wsd->wts"}> : () -> ()
    %cst_16 = arith.constant dense<0.000000e+00> : vector<4x16x16xf32>
    %41 = tpu.matmul %39, %40, %cst_16 {dimension_numbers = #tpu.dot_dimension_numbers<[2], [2], [1], [1], [0, 0, 0, 1, 1, 1], [0], [0]>} : vector<4x16x16xbf16>, vector<4x16x16xbf16>, vector<4x16x16xf32> -> vector<4x16x16xf32>
    "tpu.trace_stop"() : () -> ()
    %c0_17 = arith.constant 0 : index
    %c0_18 = arith.constant 0 : index
    %c0_19 = arith.constant 0 : index
    %c0_20 = arith.constant 0 : index
    %42 = vector.load %arg6[%c0_17, %c0_18, %c0_19, %c0_20] : memref<2x4x16x16xf32, #tpu.memory_space<vmem>>, vector<1x4x16x16xf32>
    %43 = vector.shape_cast %42 : vector<1x4x16x16xf32> to vector<4x16x16xf32>
    %44 = arith.addf %41, %43 : vector<4x16x16xf32>
    %cst_21 = arith.constant dense<0xFF800000> : vector<4x16xf32>
    %45 = vector.multi_reduction <maximumf>, %44, %cst_21 [2] : vector<4x16x16xf32> to vector<4x16xf32>
    %46 = vector.shape_cast %45 : vector<4x16xf32> to vector<4x16x1xf32>
    %47 = vector.broadcast %46 : vector<4x16x1xf32> to vector<4x16x16xf32>
    %48 = arith.subf %44, %47 : vector<4x16x16xf32>
    %49 = math.exp %48 : vector<4x16x16xf32>
    %cst_22 = arith.constant dense<0.000000e+00> : vector<4x16xf32>
    %50 = vector.multi_reduction <add>, %49, %cst_22 [2] : vector<4x16x16xf32> to vector<4x16xf32>
    %51 = vector.shape_cast %50 : vector<4x16xf32> to vector<4x16x1xf32>
    %52 = tpu.reciprocal %51 {approx = true} : vector<4x16x1xf32> -> vector<4x16x1xf32>
    %53 = vector.broadcast %52 : vector<4x16x1xf32> to vector<4x16x16xf32>
    %54 = arith.mulf %49, %53 : vector<4x16x16xf32>
    %55 = arith.truncf %54 : vector<4x16x16xf32> to vector<4x16x16xbf16>
    %56 = arith.truncf %38 : vector<4x16x16xf32> to vector<4x16x16xbf16>
    "tpu.trace_start"() <{level = 10 : i32, message = "wts,wsd->wtd"}> : () -> ()
    %cst_23 = arith.constant dense<0.000000e+00> : vector<4x16x16xf32>
    %57 = tpu.matmul %55, %56, %cst_23 {dimension_numbers = #tpu.dot_dimension_numbers<[2], [1], [1], [2], [0, 0, 0, 1, 1, 2], [0], [0]>} : vector<4x16x16xbf16>, vector<4x16x16xbf16>, vector<4x16x16xf32> -> vector<4x16x16xf32>
    "tpu.trace_stop"() : () -> ()
    %58 = vector.shape_cast %57 : vector<4x16x16xf32> to vector<64x16xf32>
    %c0_24 = arith.constant 0 : index
    %c0_25 = arith.constant 0 : index
    %59 = vector.load %arg16[%c0_24, %c0_25] : memref<64x32xf32, #tpu.memory_space<vmem>>, vector<64x16xf32>
    tpu.vector_store %arg16[%c0_24, %c0_25], %58 {strides = array<i32>} : memref<64x32xf32, #tpu.memory_space<vmem>>, vector<64x16xf32>,
    %60 = vector.extract_strided_slice %32 {offsets = [0, 16], sizes = [64, 16], strides = [1, 1]} : vector<64x96xf32> to vector<64x16xf32>
    %61 = vector.shape_cast %60 : vector<64x16xf32> to vector<4x16x16xf32>
    %62 = vector.extract_strided_slice %32 {offsets = [0, 48], sizes = [64, 16], strides = [1, 1]} : vector<64x96xf32> to vector<64x16xf32>
    %63 = vector.shape_cast %62 : vector<64x16xf32> to vector<4x16x16xf32>
    %64 = vector.extract_strided_slice %32 {offsets = [0, 80], sizes = [64, 16], strides = [1, 1]} : vector<64x96xf32> to vector<64x16xf32>
    %65 = vector.shape_cast %64 : vector<64x16xf32> to vector<4x16x16xf32>
    %66 = arith.truncf %61 : vector<4x16x16xf32> to vector<4x16x16xbf16>
    %67 = arith.truncf %63 : vector<4x16x16xf32> to vector<4x16x16xbf16>
    "tpu.trace_start"() <{level = 10 : i32, message = "wtd,wsd->wts"}> : () -> ()
    %cst_26 = arith.constant dense<0.000000e+00> : vector<4x16x16xf32>
    %68 = tpu.matmul %66, %67, %cst_26 {dimension_numbers = #tpu.dot_dimension_numbers<[2], [2], [1], [1], [0, 0, 0, 1, 1, 1], [0], [0]>} : vector<4x16x16xbf16>, vector<4x16x16xbf16>, vector<4x16x16xf32> -> vector<4x16x16xf32>
    "tpu.trace_stop"() : () -> ()
    %c1 = arith.constant 1 : index
    %c0_27 = arith.constant 0 : index
    %c0_28 = arith.constant 0 : index
    %c0_29 = arith.constant 0 : index
    %69 = vector.load %arg6[%c1, %c0_27, %c0_28, %c0_29] : memref<2x4x16x16xf32, #tpu.memory_space<vmem>>, vector<1x4x16x16xf32>
    %70 = vector.shape_cast %69 : vector<1x4x16x16xf32> to vector<4x16x16xf32>
    %71 = arith.addf %68, %70 : vector<4x16x16xf32>
    %cst_30 = arith.constant dense<0xFF800000> : vector<4x16xf32>
    %72 = vector.multi_reduction <maximumf>, %71, %cst_30 [2] : vector<4x16x16xf32> to vector<4x16xf32>
    %73 = vector.shape_cast %72 : vector<4x16xf32> to vector<4x16x1xf32>
    %74 = vector.broadcast %73 : vector<4x16x1xf32> to vector<4x16x16xf32>
    %75 = arith.subf %71, %74 : vector<4x16x16xf32>
    %76 = math.exp %75 : vector<4x16x16xf32>
    %cst_31 = arith.constant dense<0.000000e+00> : vector<4x16xf32>
    %77 = vector.multi_reduction <add>, %76, %cst_31 [2] : vector<4x16x16xf32> to vector<4x16xf32>
    %78 = vector.shape_cast %77 : vector<4x16xf32> to vector<4x16x1xf32>
    %79 = tpu.reciprocal %78 {approx = true} : vector<4x16x1xf32> -> vector<4x16x1xf32>
    %80 = vector.broadcast %79 : vector<4x16x1xf32> to vector<4x16x16xf32>
    %81 = arith.mulf %76, %80 : vector<4x16x16xf32>
    %82 = arith.truncf %81 : vector<4x16x16xf32> to vector<4x16x16xbf16>
    %83 = arith.truncf %65 : vector<4x16x16xf32> to vector<4x16x16xbf16>
    "tpu.trace_start"() <{level = 10 : i32, message = "wts,wsd->wtd"}> : () -> ()
    %cst_32 = arith.constant dense<0.000000e+00> : vector<4x16x16xf32>
    %84 = tpu.matmul %82, %83, %cst_32 {dimension_numbers = #tpu.dot_dimension_numbers<[2], [1], [1], [2], [0, 0, 0, 1, 1, 2], [0], [0]>} : vector<4x16x16xbf16>, vector<4x16x16xbf16>, vector<4x16x16xf32> -> vector<4x16x16xf32>
    "tpu.trace_stop"() : () -> ()
    %85 = vector.shape_cast %84 : vector<4x16x16xf32> to vector<64x16xf32>
    %c0_33 = arith.constant 0 : index
    %c16 = arith.constant 16 : index
    %86 = vector.load %arg16[%c0_33, %c16] : memref<64x32xf32, #tpu.memory_space<vmem>>, vector<64x16xf32>
    tpu.vector_store %arg16[%c0_33, %c16], %85 {strides = array<i32>} : memref<64x32xf32, #tpu.memory_space<vmem>>, vector<64x16xf32>,
    %c0_34 = arith.constant 0 : index
    %c0_35 = arith.constant 0 : index
    %87 = vector.load %arg16[%c0_34, %c0_35] : memref<64x32xf32, #tpu.memory_space<vmem>>, vector<64x32xf32>
    %c0_36 = arith.constant 0 : index
    %c0_37 = arith.constant 0 : index
    %88 = vector.load %arg7[%c0_36, %c0_37] : memref<32x32xbf16, #tpu.memory_space<vmem>>, vector<32x32xbf16>
    %89 = arith.truncf %87 : vector<64x32xf32> to vector<64x32xbf16>
    %cst_38 = arith.constant dense<0.000000e+00> : vector<64x32xf32>
    %90 = tpu.matmul %89, %88, %cst_38 {dimension_numbers = #tpu.dot_dimension_numbers<[1], [0], [0], [1], [0, 0, 1, 1], [], []>} : vector<64x32xbf16>, vector<32x32xbf16>, vector<64x32xf32> -> vector<64x32xf32>
    %91 = arith.addf %2, %90 : vector<64x32xf32>
    %c0_39 = arith.constant 0 : index
    %c0_40 = arith.constant 0 : index
    %92 = vector.load %arg8[%c0_39, %c0_40] : memref<1x32xf32, #tpu.memory_space<vmem>>, vector<1x32xf32>
    %93 = vector.broadcast %92 : vector<1x32xf32> to vector<64x32xf32>
    %94 = arith.addf %91, %93 : vector<64x32xf32>
    %c0_41 = arith.constant 0 : index
    %c0_42 = arith.constant 0 : index
    %95 = vector.load %arg9[%c0_41, %c0_42] : memref<1x32xf32, #tpu.memory_space<vmem>>, vector<1x32xf32>
    %c0_43 = arith.constant 0 : index
    %c0_44 = arith.constant 0 : index
    %96 = vector.load %arg10[%c0_43, %c0_44] : memref<1x32xf32, #tpu.memory_space<vmem>>, vector<1x32xf32>
    %cst_45 = arith.constant dense<0.000000e+00> : vector<64xf32>
    %97 = vector.multi_reduction <add>, %94, %cst_45 [1] : vector<64x32xf32> to vector<64xf32>
    %98 = vector.shape_cast %97 : vector<64xf32> to vector<64x1xf32>
    %cst_46 = arith.constant 3.200000e+01 : f32
    %99 = vector.broadcast %cst_46 : f32 to vector<64x1xf32>
    %100 = arith.divf %98, %99 : vector<64x1xf32>
    %101 = vector.broadcast %100 : vector<64x1xf32> to vector<64x32xf32>
    %102 = arith.subf %94, %101 : vector<64x32xf32>
    %103 = arith.mulf %102, %102 : vector<64x32xf32>
    %cst_47 = arith.constant dense<0.000000e+00> : vector<64xf32>
    %104 = vector.multi_reduction <add>, %103, %cst_47 [1] : vector<64x32xf32> to vector<64xf32>
    %105 = vector.shape_cast %104 : vector<64xf32> to vector<64x1xf32>
    %cst_48 = arith.constant 3.200000e+01 : f32
    %106 = vector.broadcast %cst_48 : f32 to vector<64x1xf32>
    %107 = arith.divf %105, %106 : vector<64x1xf32>
    %108 = vector.broadcast %100 : vector<64x1xf32> to vector<64x32xf32>
    %109 = arith.subf %94, %108 : vector<64x32xf32>
    %cst_49 = arith.constant 9.99999974E-6 : f32
    %110 = vector.broadcast %cst_49 : f32 to vector<64x1xf32>
    %111 = arith.addf %107, %110 : vector<64x1xf32>
    %112 = math.rsqrt %111 : vector<64x1xf32>
    %113 = vector.broadcast %112 : vector<64x1xf32> to vector<64x32xf32>
    %114 = arith.mulf %109, %113 : vector<64x32xf32>
    %115 = vector.broadcast %95 : vector<1x32xf32> to vector<64x32xf32>
    %116 = arith.mulf %114, %115 : vector<64x32xf32>
    %117 = vector.broadcast %96 : vector<1x32xf32> to vector<64x32xf32>
    %118 = arith.addf %116, %117 : vector<64x32xf32>
    %c0_50 = arith.constant 0 : index
    %c0_51 = arith.constant 0 : index
    %119 = vector.load %arg11[%c0_50, %c0_51] : memref<32x128xbf16, #tpu.memory_space<vmem>>, vector<32x128xbf16>
    %120 = arith.truncf %118 : vector<64x32xf32> to vector<64x32xbf16>
    %cst_52 = arith.constant dense<0.000000e+00> : vector<64x128xf32>
    %121 = tpu.matmul %120, %119, %cst_52 {dimension_numbers = #tpu.dot_dimension_numbers<[1], [0], [0], [1], [0, 0, 1, 1], [], []>} : vector<64x32xbf16>, vector<32x128xbf16>, vector<64x128xf32> -> vector<64x128xf32>
    %c0_53 = arith.constant 0 : index
    %c0_54 = arith.constant 0 : index
    %122 = vector.load %arg12[%c0_53, %c0_54] : memref<1x128xf32, #tpu.memory_space<vmem>>, vector<1x128xf32>
    %123 = vector.broadcast %122 : vector<1x128xf32> to vector<64x128xf32>
    %124 = arith.addf %121, %123 : vector<64x128xf32>
    %cst_55 = arith.constant 5.000000e-01 : f32
    %125 = vector.broadcast %cst_55 : f32 to vector<64x128xf32>
    %126 = arith.mulf %125, %124 : vector<64x128xf32>
    %cst_56 = arith.constant 0.707106769 : f32
    %127 = vector.broadcast %cst_56 : f32 to vector<64x128xf32>
    %128 = arith.mulf %124, %127 : vector<64x128xf32>
    %129 = math.erf %128 : vector<64x128xf32>
    %cst_57 = arith.constant 1.000000e+00 : f32
    %130 = vector.broadcast %cst_57 : f32 to vector<64x128xf32>
    %131 = arith.addf %130, %129 : vector<64x128xf32>
    %132 = arith.mulf %126, %131 : vector<64x128xf32>
    %c0_58 = arith.constant 0 : index
    %c0_59 = arith.constant 0 : index
    %133 = vector.load %arg13[%c0_58, %c0_59] : memref<128x32xbf16, #tpu.memory_space<vmem>>, vector<128x32xbf16>
    %134 = arith.truncf %132 : vector<64x128xf32> to vector<64x128xbf16>
    %cst_60 = arith.constant dense<0.000000e+00> : vector<64x32xf32>
    %135 = tpu.matmul %134, %133, %cst_60 {dimension_numbers = #tpu.dot_dimension_numbers<[1], [0], [0], [1], [0, 0, 1, 1], [], []>} : vector<64x128xbf16>, vector<128x32xbf16>, vector<64x32xf32> -> vector<64x32xf32>
    %c0_61 = arith.constant 0 : index
    %c0_62 = arith.constant 0 : index
    %136 = vector.load %arg14[%c0_61, %c0_62] : memref<1x32xf32, #tpu.memory_space<vmem>>, vector<1x32xf32>
    %137 = vector.broadcast %136 : vector<1x32xf32> to vector<64x32xf32>
    %138 = arith.addf %135, %137 : vector<64x32xf32>
    %139 = arith.addf %94, %138 : vector<64x32xf32>
    %140 = vector.shape_cast %139 : vector<64x32xf32> to vector<1x4x16x32xf32>
    %141 = arith.truncf %140 : vector<1x4x16x32xf32> to vector<1x4x16x32xbf16>
    %c0_63 = arith.constant 0 : index
    %c0_64 = arith.constant 0 : index
    %c0_65 = arith.constant 0 : index
    %c0_66 = arith.constant 0 : index
    %142 = vector.load %arg15[%c0_63, %c0_64, %c0_65, %c0_66] : memref<1x4x16x32xbf16, #tpu.memory_space<vmem>>, vector<1x4x16x32xbf16>
    tpu.vector_store %arg15[%c0_63, %c0_64, %c0_65, %c0_66], %141 {strides = array<i32>} : memref<1x4x16x32xbf16, #tpu.memory_space<vmem>>, vector<1x4x16x32xbf16>,
    return
  }
  func.func @transform_0(%arg0: i32) -> (i32, i32, i32, i32) {
    %c0_i32 = arith.constant 0 : i32
    %c0_i32_0 = arith.constant 0 : i32
    %c0_i32_1 = arith.constant 0 : i32
    %c0_i32_2 = arith.constant 0 : i32
    return %arg0, %c0_i32, %c0_i32_0, %c0_i32_1 : i32, i32, i32, i32
  }
  func.func @transform_1(%arg0: i32) -> (i32, i32) {
    %c0_i32 = arith.constant 0 : i32
    %c0_i32_0 = arith.constant 0 : i32
    %c0_i32_1 = arith.constant 0 : i32
    return %c0_i32, %c0_i32_0 : i32, i32
  }
  func.func @transform_2(%arg0: i32) -> (i32, i32) {
    %c0_i32 = arith.constant 0 : i32
    %c0_i32_0 = arith.constant 0 : i32
    %c0_i32_1 = arith.constant 0 : i32
    return %c0_i32, %c0_i32_0 : i32, i32
  }
  func.func @transform_3(%arg0: i32) -> (i32, i32) {
    %c0_i32 = arith.constant 0 : i32
    %c0_i32_0 = arith.constant 0 : i32
    %c0_i32_1 = arith.constant 0 : i32
    return %c0_i32, %c0_i32_0 : i32, i32
  }
  func.func @transform_4(%arg0: i32) -> (i32, i32) {
    %c0_i32 = arith.constant 0 : i32
    %c0_i32_0 = arith.constant 0 : i32
    %c0_i32_1 = arith.constant 0 : i32
    return %c0_i32, %c0_i32_0 : i32, i32
  }
  func.func @transform_5(%arg0: i32) -> (i32, i32, i32, i32) {
    %c0_i32 = arith.constant 0 : i32
    %c0_i32_0 = arith.constant 0 : i32
    %c0_i32_1 = arith.constant 0 : i32
    %c0_i32_2 = arith.constant 0 : i32
    %c0_i32_3 = arith.constant 0 : i32
    return %c0_i32, %c0_i32_0, %c0_i32_1, %c0_i32_2 : i32, i32, i32, i32
  }
  func.func @transform_6(%arg0: i32) -> (i32, i32) {
    %c0_i32 = arith.constant 0 : i32
    %c0_i32_0 = arith.constant 0 : i32
    %c0_i32_1 = arith.constant 0 : i32
    return %c0_i32, %c0_i32_0 : i32, i32
  }
  func.func @transform_7(%arg0: i32) -> (i32, i32) {
    %c0_i32 = arith.constant 0 : i32
    %c0_i32_0 = arith.constant 0 : i32
    %c0_i32_1 = arith.constant 0 : i32
    return %c0_i32, %c0_i32_0 : i32, i32
  }
  func.func @transform_8(%arg0: i32) -> (i32, i32) {
    %c0_i32 = arith.constant 0 : i32
    %c0_i32_0 = arith.constant 0 : i32
    %c0_i32_1 = arith.constant 0 : i32
    return %c0_i32, %c0_i32_0 : i32, i32
  }
  func.func @transform_9(%arg0: i32) -> (i32, i32) {
    %c0_i32 = arith.constant 0 : i32
    %c0_i32_0 = arith.constant 0 : i32
    %c0_i32_1 = arith.constant 0 : i32
    return %c0_i32, %c0_i32_0 : i32, i32
  }
  func.func @transform_10(%arg0: i32) -> (i32, i32) {
    %c0_i32 = arith.constant 0 : i32
    %c0_i32_0 = arith.constant 0 : i32
    %c0_i32_1 = arith.constant 0 : i32
    return %c0_i32, %c0_i32_0 : i32, i32
  }
  func.func @transform_11(%arg0: i32) -> (i32, i32) {
    %c0_i32 = arith.constant 0 : i32
    %c0_i32_0 = arith.constant 0 : i32
    %c0_i32_1 = arith.constant 0 : i32
    return %c0_i32, %c0_i32_0 : i32, i32
  }
  func.func @transform_12(%arg0: i32) -> (i32, i32) {
    %c0_i32 = arith.constant 0 : i32
    %c0_i32_0 = arith.constant 0 : i32
    %c0_i32_1 = arith.constant 0 : i32
    return %c0_i32, %c0_i32_0 : i32, i32
  }
  func.func @transform_13(%arg0: i32) -> (i32, i32) {
    %c0_i32 = arith.constant 0 : i32
    %c0_i32_0 = arith.constant 0 : i32
    %c0_i32_1 = arith.constant 0 : i32
    return %c0_i32, %c0_i32_0 : i32, i32
  }
  func.func @transform_14(%arg0: i32) -> (i32, i32, i32, i32) {
    %c0_i32 = arith.constant 0 : i32
    %c0_i32_0 = arith.constant 0 : i32
    %c0_i32_1 = arith.constant 0 : i32
    %c0_i32_2 = arith.constant 0 : i32
    return %arg0, %c0_i32, %c0_i32_0, %c0_i32_1 : i32, i32, i32, i32
  }
}

module attributes {stable_mosaic.version = 11 : i64} {
  func.func @_merge_kernel(%arg0: i32, %arg1: memref<1x16x128xbf16, #tpu.memory_space<vmem>>, %arg2: memref<1x128xf32, #tpu.memory_space<vmem>>, %arg3: memref<1x128xf32, #tpu.memory_space<vmem>>, %arg4: memref<128x64xbf16, #tpu.memory_space<vmem>>, %arg5: memref<1x16x64xbf16, #tpu.memory_space<vmem>>) attributes {dimension_semantics = [#tpu.dimension_semantics<parallel>], iteration_bounds = array<i64: 2>, scalar_prefetch = 0 : i64, scratch_operands = 0 : i64, tpu.core_type = #tpu.core_type<tc>, window_params = [{transform_indices = @transform_0, window_bounds = array<i64: 1, 16, 128>}, {pipeline_mode = #tpu.pipeline_mode<synchronous>, transform_indices = @transform_1, window_bounds = array<i64: 1, 128>}, {pipeline_mode = #tpu.pipeline_mode<synchronous>, transform_indices = @transform_2, window_bounds = array<i64: 1, 128>}, {pipeline_mode = #tpu.pipeline_mode<synchronous>, transform_indices = @transform_3, window_bounds = array<i64: 128, 64>}, {transform_indices = @transform_4, window_bounds = array<i64: 1, 16, 64>}]} {
    %c0 = arith.constant 0 : index
    %c0_0 = arith.constant 0 : index
    %c0_1 = arith.constant 0 : index
    %0 = vector.load %arg1[%c0, %c0_0, %c0_1] : memref<1x16x128xbf16, #tpu.memory_space<vmem>>, vector<1x16x128xbf16>
    %1 = vector.shape_cast %0 : vector<1x16x128xbf16> to vector<16x128xbf16>
    %2 = arith.extf %1 : vector<16x128xbf16> to vector<16x128xf32>
    %c0_2 = arith.constant 0 : index
    %c0_3 = arith.constant 0 : index
    %3 = vector.load %arg2[%c0_2, %c0_3] : memref<1x128xf32, #tpu.memory_space<vmem>>, vector<1x128xf32>
    %c0_4 = arith.constant 0 : index
    %c0_5 = arith.constant 0 : index
    %4 = vector.load %arg3[%c0_4, %c0_5] : memref<1x128xf32, #tpu.memory_space<vmem>>, vector<1x128xf32>
    %cst = arith.constant dense<0.000000e+00> : vector<16xf32>
    %5 = vector.multi_reduction <add>, %2, %cst [1] : vector<16x128xf32> to vector<16xf32>
    %6 = vector.shape_cast %5 : vector<16xf32> to vector<16x1xf32>
    %cst_6 = arith.constant 1.280000e+02 : f32
    %7 = vector.broadcast %cst_6 : f32 to vector<16x1xf32>
    %8 = arith.divf %6, %7 : vector<16x1xf32>
    %9 = vector.broadcast %8 : vector<16x1xf32> to vector<16x128xf32>
    %10 = arith.subf %2, %9 : vector<16x128xf32>
    %11 = arith.mulf %10, %10 : vector<16x128xf32>
    %cst_7 = arith.constant dense<0.000000e+00> : vector<16xf32>
    %12 = vector.multi_reduction <add>, %11, %cst_7 [1] : vector<16x128xf32> to vector<16xf32>
    %13 = vector.shape_cast %12 : vector<16xf32> to vector<16x1xf32>
    %cst_8 = arith.constant 1.280000e+02 : f32
    %14 = vector.broadcast %cst_8 : f32 to vector<16x1xf32>
    %15 = arith.divf %13, %14 : vector<16x1xf32>
    %16 = vector.broadcast %8 : vector<16x1xf32> to vector<16x128xf32>
    %17 = arith.subf %2, %16 : vector<16x128xf32>
    %cst_9 = arith.constant 9.99999974E-6 : f32
    %18 = vector.broadcast %cst_9 : f32 to vector<16x1xf32>
    %19 = arith.addf %15, %18 : vector<16x1xf32>
    %20 = math.rsqrt %19 : vector<16x1xf32>
    %21 = vector.broadcast %20 : vector<16x1xf32> to vector<16x128xf32>
    %22 = arith.mulf %17, %21 : vector<16x128xf32>
    %23 = vector.broadcast %3 : vector<1x128xf32> to vector<16x128xf32>
    %24 = arith.mulf %22, %23 : vector<16x128xf32>
    %25 = vector.broadcast %4 : vector<1x128xf32> to vector<16x128xf32>
    %26 = arith.addf %24, %25 : vector<16x128xf32>
    %c0_10 = arith.constant 0 : index
    %c0_11 = arith.constant 0 : index
    %27 = vector.load %arg4[%c0_10, %c0_11] : memref<128x64xbf16, #tpu.memory_space<vmem>>, vector<128x64xbf16>
    %28 = arith.truncf %26 : vector<16x128xf32> to vector<16x128xbf16>
    %cst_12 = arith.constant dense<0.000000e+00> : vector<16x64xf32>
    %29 = tpu.matmul %28, %27, %cst_12 {dimension_numbers = #tpu.dot_dimension_numbers<[1], [0], [0], [1], [0, 0, 1, 1], [], []>} : vector<16x128xbf16>, vector<128x64xbf16>, vector<16x64xf32> -> vector<16x64xf32>
    %30 = vector.shape_cast %29 : vector<16x64xf32> to vector<1x16x64xf32>
    %31 = arith.truncf %30 : vector<1x16x64xf32> to vector<1x16x64xbf16>
    %c0_13 = arith.constant 0 : index
    %c0_14 = arith.constant 0 : index
    %c0_15 = arith.constant 0 : index
    %32 = vector.load %arg5[%c0_13, %c0_14, %c0_15] : memref<1x16x64xbf16, #tpu.memory_space<vmem>>, vector<1x16x64xbf16>
    tpu.vector_store %arg5[%c0_13, %c0_14, %c0_15], %31 {strides = array<i32>} : memref<1x16x64xbf16, #tpu.memory_space<vmem>>, vector<1x16x64xbf16>,
    return
  }
  func.func @transform_0(%arg0: i32) -> (i32, i32, i32) {
    %c0_i32 = arith.constant 0 : i32
    %c0_i32_0 = arith.constant 0 : i32
    %c0_i32_1 = arith.constant 0 : i32
    return %arg0, %c0_i32, %c0_i32_0 : i32, i32, i32
  }
  func.func @transform_1(%arg0: i32) -> (i32, i32) {
    %c0_i32 = arith.constant 0 : i32
    %c0_i32_0 = arith.constant 0 : i32
    %c0_i32_1 = arith.constant 0 : i32
    return %c0_i32, %c0_i32_0 : i32, i32
  }
  func.func @transform_2(%arg0: i32) -> (i32, i32) {
    %c0_i32 = arith.constant 0 : i32
    %c0_i32_0 = arith.constant 0 : i32
    %c0_i32_1 = arith.constant 0 : i32
    return %c0_i32, %c0_i32_0 : i32, i32
  }
  func.func @transform_3(%arg0: i32) -> (i32, i32) {
    %c0_i32 = arith.constant 0 : i32
    %c0_i32_0 = arith.constant 0 : i32
    %c0_i32_1 = arith.constant 0 : i32
    return %c0_i32, %c0_i32_0 : i32, i32
  }
  func.func @transform_4(%arg0: i32) -> (i32, i32, i32) {
    %c0_i32 = arith.constant 0 : i32
    %c0_i32_0 = arith.constant 0 : i32
    %c0_i32_1 = arith.constant 0 : i32
    return %arg0, %c0_i32, %c0_i32_0 : i32, i32, i32
  }
}

module attributes {stable_mosaic.version = 11 : i64} {
  func.func @_swin_block_kernel(%arg0: i32, %arg1: memref<1x1x16x64xbf16, #tpu.memory_space<vmem>>, %arg2: memref<1x64xf32, #tpu.memory_space<vmem>>, %arg3: memref<1x64xf32, #tpu.memory_space<vmem>>, %arg4: memref<64x192xbf16, #tpu.memory_space<vmem>>, %arg5: memref<1x192xf32, #tpu.memory_space<vmem>>, %arg6: memref<4x1x16x16xf32, #tpu.memory_space<vmem>>, %arg7: memref<64x64xbf16, #tpu.memory_space<vmem>>, %arg8: memref<1x64xf32, #tpu.memory_space<vmem>>, %arg9: memref<1x64xf32, #tpu.memory_space<vmem>>, %arg10: memref<1x64xf32, #tpu.memory_space<vmem>>, %arg11: memref<64x256xbf16, #tpu.memory_space<vmem>>, %arg12: memref<1x256xf32, #tpu.memory_space<vmem>>, %arg13: memref<256x64xbf16, #tpu.memory_space<vmem>>, %arg14: memref<1x64xf32, #tpu.memory_space<vmem>>, %arg15: memref<1x1x16x64xbf16, #tpu.memory_space<vmem>>, %arg16: memref<16x64xf32, #tpu.memory_space<vmem>>) attributes {dimension_semantics = [#tpu.dimension_semantics<parallel>], iteration_bounds = array<i64: 2>, scalar_prefetch = 0 : i64, scratch_operands = 1 : i64, tpu.core_type = #tpu.core_type<tc>, window_params = [{transform_indices = @transform_0, window_bounds = array<i64: 1, 1, 16, 64>}, {pipeline_mode = #tpu.pipeline_mode<synchronous>, transform_indices = @transform_1, window_bounds = array<i64: 1, 64>}, {pipeline_mode = #tpu.pipeline_mode<synchronous>, transform_indices = @transform_2, window_bounds = array<i64: 1, 64>}, {pipeline_mode = #tpu.pipeline_mode<synchronous>, transform_indices = @transform_3, window_bounds = array<i64: 64, 192>}, {pipeline_mode = #tpu.pipeline_mode<synchronous>, transform_indices = @transform_4, window_bounds = array<i64: 1, 192>}, {pipeline_mode = #tpu.pipeline_mode<synchronous>, transform_indices = @transform_5, window_bounds = array<i64: 4, 1, 16, 16>}, {pipeline_mode = #tpu.pipeline_mode<synchronous>, transform_indices = @transform_6, window_bounds = array<i64: 64, 64>}, {pipeline_mode = #tpu.pipeline_mode<synchronous>, transform_indices = @transform_7, window_bounds = array<i64: 1, 64>}, {pipeline_mode = #tpu.pipeline_mode<synchronous>, transform_indices = @transform_8, window_bounds = array<i64: 1, 64>}, {pipeline_mode = #tpu.pipeline_mode<synchronous>, transform_indices = @transform_9, window_bounds = array<i64: 1, 64>}, {pipeline_mode = #tpu.pipeline_mode<synchronous>, transform_indices = @transform_10, window_bounds = array<i64: 64, 256>}, {pipeline_mode = #tpu.pipeline_mode<synchronous>, transform_indices = @transform_11, window_bounds = array<i64: 1, 256>}, {pipeline_mode = #tpu.pipeline_mode<synchronous>, transform_indices = @transform_12, window_bounds = array<i64: 256, 64>}, {pipeline_mode = #tpu.pipeline_mode<synchronous>, transform_indices = @transform_13, window_bounds = array<i64: 1, 64>}, {transform_indices = @transform_14, window_bounds = array<i64: 1, 1, 16, 64>}]} {
    %c0 = arith.constant 0 : index
    %c0_0 = arith.constant 0 : index
    %c0_1 = arith.constant 0 : index
    %c0_2 = arith.constant 0 : index
    %0 = vector.load %arg1[%c0, %c0_0, %c0_1, %c0_2] : memref<1x1x16x64xbf16, #tpu.memory_space<vmem>>, vector<1x1x16x64xbf16>
    %1 = vector.shape_cast %0 : vector<1x1x16x64xbf16> to vector<16x64xbf16>
    %2 = arith.extf %1 : vector<16x64xbf16> to vector<16x64xf32>
    %c0_3 = arith.constant 0 : index
    %c0_4 = arith.constant 0 : index
    %3 = vector.load %arg2[%c0_3, %c0_4] : memref<1x64xf32, #tpu.memory_space<vmem>>, vector<1x64xf32>
    %c0_5 = arith.constant 0 : index
    %c0_6 = arith.constant 0 : index
    %4 = vector.load %arg3[%c0_5, %c0_6] : memref<1x64xf32, #tpu.memory_space<vmem>>, vector<1x64xf32>
    %cst = arith.constant dense<0.000000e+00> : vector<16xf32>
    %5 = vector.multi_reduction <add>, %2, %cst [1] : vector<16x64xf32> to vector<16xf32>
    %6 = vector.shape_cast %5 : vector<16xf32> to vector<16x1xf32>
    %cst_7 = arith.constant 6.400000e+01 : f32
    %7 = vector.broadcast %cst_7 : f32 to vector<16x1xf32>
    %8 = arith.divf %6, %7 : vector<16x1xf32>
    %9 = vector.broadcast %8 : vector<16x1xf32> to vector<16x64xf32>
    %10 = arith.subf %2, %9 : vector<16x64xf32>
    %11 = arith.mulf %10, %10 : vector<16x64xf32>
    %cst_8 = arith.constant dense<0.000000e+00> : vector<16xf32>
    %12 = vector.multi_reduction <add>, %11, %cst_8 [1] : vector<16x64xf32> to vector<16xf32>
    %13 = vector.shape_cast %12 : vector<16xf32> to vector<16x1xf32>
    %cst_9 = arith.constant 6.400000e+01 : f32
    %14 = vector.broadcast %cst_9 : f32 to vector<16x1xf32>
    %15 = arith.divf %13, %14 : vector<16x1xf32>
    %16 = vector.broadcast %8 : vector<16x1xf32> to vector<16x64xf32>
    %17 = arith.subf %2, %16 : vector<16x64xf32>
    %cst_10 = arith.constant 9.99999974E-6 : f32
    %18 = vector.broadcast %cst_10 : f32 to vector<16x1xf32>
    %19 = arith.addf %15, %18 : vector<16x1xf32>
    %20 = math.rsqrt %19 : vector<16x1xf32>
    %21 = vector.broadcast %20 : vector<16x1xf32> to vector<16x64xf32>
    %22 = arith.mulf %17, %21 : vector<16x64xf32>
    %23 = vector.broadcast %3 : vector<1x64xf32> to vector<16x64xf32>
    %24 = arith.mulf %22, %23 : vector<16x64xf32>
    %25 = vector.broadcast %4 : vector<1x64xf32> to vector<16x64xf32>
    %26 = arith.addf %24, %25 : vector<16x64xf32>
    %27 = arith.truncf %26 : vector<16x64xf32> to vector<16x64xbf16>
    %c0_11 = arith.constant 0 : index
    %c0_12 = arith.constant 0 : index
    %28 = vector.load %arg4[%c0_11, %c0_12] : memref<64x192xbf16, #tpu.memory_space<vmem>>, vector<64x192xbf16>
    %cst_13 = arith.constant dense<0.000000e+00> : vector<16x192xf32>
    %29 = tpu.matmul %27, %28, %cst_13 {dimension_numbers = #tpu.dot_dimension_numbers<[1], [0], [0], [1], [0, 0, 1, 1], [], []>} : vector<16x64xbf16>, vector<64x192xbf16>, vector<16x192xf32> -> vector<16x192xf32>
    %c0_14 = arith.constant 0 : index
    %c0_15 = arith.constant 0 : index
    %30 = vector.load %arg5[%c0_14, %c0_15] : memref<1x192xf32, #tpu.memory_space<vmem>>, vector<1x192xf32>
    %31 = vector.broadcast %30 : vector<1x192xf32> to vector<16x192xf32>
    %32 = arith.addf %29, %31 : vector<16x192xf32>
    %33 = vector.extract_strided_slice %32 {offsets = [0, 0], sizes = [16, 16], strides = [1, 1]} : vector<16x192xf32> to vector<16x16xf32>
    %34 = vector.shape_cast %33 : vector<16x16xf32> to vector<1x16x16xf32>
    %35 = vector.extract_strided_slice %32 {offsets = [0, 64], sizes = [16, 16], strides = [1, 1]} : vector<16x192xf32> to vector<16x16xf32>
    %36 = vector.shape_cast %35 : vector<16x16xf32> to vector<1x16x16xf32>
    %37 = vector.extract_strided_slice %32 {offsets = [0, 128], sizes = [16, 16], strides = [1, 1]} : vector<16x192xf32> to vector<16x16xf32>
    %38 = vector.shape_cast %37 : vector<16x16xf32> to vector<1x16x16xf32>
    %39 = arith.truncf %34 : vector<1x16x16xf32> to vector<1x16x16xbf16>
    %40 = arith.truncf %36 : vector<1x16x16xf32> to vector<1x16x16xbf16>
    "tpu.trace_start"() <{level = 10 : i32, message = "wtd,wsd->wts"}> : () -> ()
    %cst_16 = arith.constant dense<0.000000e+00> : vector<1x16x16xf32>
    %41 = tpu.matmul %39, %40, %cst_16 {dimension_numbers = #tpu.dot_dimension_numbers<[2], [2], [1], [1], [0, 0, 0, 1, 1, 1], [0], [0]>} : vector<1x16x16xbf16>, vector<1x16x16xbf16>, vector<1x16x16xf32> -> vector<1x16x16xf32>
    "tpu.trace_stop"() : () -> ()
    %c0_17 = arith.constant 0 : index
    %c0_18 = arith.constant 0 : index
    %c0_19 = arith.constant 0 : index
    %c0_20 = arith.constant 0 : index
    %42 = vector.load %arg6[%c0_17, %c0_18, %c0_19, %c0_20] : memref<4x1x16x16xf32, #tpu.memory_space<vmem>>, vector<1x1x16x16xf32>
    %43 = vector.shape_cast %42 : vector<1x1x16x16xf32> to vector<1x16x16xf32>
    %44 = arith.addf %41, %43 : vector<1x16x16xf32>
    %cst_21 = arith.constant dense<0xFF800000> : vector<1x16xf32>
    %45 = vector.multi_reduction <maximumf>, %44, %cst_21 [2] : vector<1x16x16xf32> to vector<1x16xf32>
    %46 = vector.shape_cast %45 : vector<1x16xf32> to vector<1x16x1xf32>
    %47 = vector.broadcast %46 : vector<1x16x1xf32> to vector<1x16x16xf32>
    %48 = arith.subf %44, %47 : vector<1x16x16xf32>
    %49 = math.exp %48 : vector<1x16x16xf32>
    %cst_22 = arith.constant dense<0.000000e+00> : vector<1x16xf32>
    %50 = vector.multi_reduction <add>, %49, %cst_22 [2] : vector<1x16x16xf32> to vector<1x16xf32>
    %51 = vector.shape_cast %50 : vector<1x16xf32> to vector<1x16x1xf32>
    %52 = tpu.reciprocal %51 {approx = true} : vector<1x16x1xf32> -> vector<1x16x1xf32>
    %53 = vector.broadcast %52 : vector<1x16x1xf32> to vector<1x16x16xf32>
    %54 = arith.mulf %49, %53 : vector<1x16x16xf32>
    %55 = arith.truncf %54 : vector<1x16x16xf32> to vector<1x16x16xbf16>
    %56 = arith.truncf %38 : vector<1x16x16xf32> to vector<1x16x16xbf16>
    "tpu.trace_start"() <{level = 10 : i32, message = "wts,wsd->wtd"}> : () -> ()
    %cst_23 = arith.constant dense<0.000000e+00> : vector<1x16x16xf32>
    %57 = tpu.matmul %55, %56, %cst_23 {dimension_numbers = #tpu.dot_dimension_numbers<[2], [1], [1], [2], [0, 0, 0, 1, 1, 2], [0], [0]>} : vector<1x16x16xbf16>, vector<1x16x16xbf16>, vector<1x16x16xf32> -> vector<1x16x16xf32>
    "tpu.trace_stop"() : () -> ()
    %58 = vector.shape_cast %57 : vector<1x16x16xf32> to vector<16x16xf32>
    %c0_24 = arith.constant 0 : index
    %c0_25 = arith.constant 0 : index
    %59 = vector.load %arg16[%c0_24, %c0_25] : memref<16x64xf32, #tpu.memory_space<vmem>>, vector<16x16xf32>
    tpu.vector_store %arg16[%c0_24, %c0_25], %58 {strides = array<i32>} : memref<16x64xf32, #tpu.memory_space<vmem>>, vector<16x16xf32>,
    %60 = vector.extract_strided_slice %32 {offsets = [0, 16], sizes = [16, 16], strides = [1, 1]} : vector<16x192xf32> to vector<16x16xf32>
    %61 = vector.shape_cast %60 : vector<16x16xf32> to vector<1x16x16xf32>
    %62 = vector.extract_strided_slice %32 {offsets = [0, 80], sizes = [16, 16], strides = [1, 1]} : vector<16x192xf32> to vector<16x16xf32>
    %63 = vector.shape_cast %62 : vector<16x16xf32> to vector<1x16x16xf32>
    %64 = vector.extract_strided_slice %32 {offsets = [0, 144], sizes = [16, 16], strides = [1, 1]} : vector<16x192xf32> to vector<16x16xf32>
    %65 = vector.shape_cast %64 : vector<16x16xf32> to vector<1x16x16xf32>
    %66 = arith.truncf %61 : vector<1x16x16xf32> to vector<1x16x16xbf16>
    %67 = arith.truncf %63 : vector<1x16x16xf32> to vector<1x16x16xbf16>
    "tpu.trace_start"() <{level = 10 : i32, message = "wtd,wsd->wts"}> : () -> ()
    %cst_26 = arith.constant dense<0.000000e+00> : vector<1x16x16xf32>
    %68 = tpu.matmul %66, %67, %cst_26 {dimension_numbers = #tpu.dot_dimension_numbers<[2], [2], [1], [1], [0, 0, 0, 1, 1, 1], [0], [0]>} : vector<1x16x16xbf16>, vector<1x16x16xbf16>, vector<1x16x16xf32> -> vector<1x16x16xf32>
    "tpu.trace_stop"() : () -> ()
    %c1 = arith.constant 1 : index
    %c0_27 = arith.constant 0 : index
    %c0_28 = arith.constant 0 : index
    %c0_29 = arith.constant 0 : index
    %69 = vector.load %arg6[%c1, %c0_27, %c0_28, %c0_29] : memref<4x1x16x16xf32, #tpu.memory_space<vmem>>, vector<1x1x16x16xf32>
    %70 = vector.shape_cast %69 : vector<1x1x16x16xf32> to vector<1x16x16xf32>
    %71 = arith.addf %68, %70 : vector<1x16x16xf32>
    %cst_30 = arith.constant dense<0xFF800000> : vector<1x16xf32>
    %72 = vector.multi_reduction <maximumf>, %71, %cst_30 [2] : vector<1x16x16xf32> to vector<1x16xf32>
    %73 = vector.shape_cast %72 : vector<1x16xf32> to vector<1x16x1xf32>
    %74 = vector.broadcast %73 : vector<1x16x1xf32> to vector<1x16x16xf32>
    %75 = arith.subf %71, %74 : vector<1x16x16xf32>
    %76 = math.exp %75 : vector<1x16x16xf32>
    %cst_31 = arith.constant dense<0.000000e+00> : vector<1x16xf32>
    %77 = vector.multi_reduction <add>, %76, %cst_31 [2] : vector<1x16x16xf32> to vector<1x16xf32>
    %78 = vector.shape_cast %77 : vector<1x16xf32> to vector<1x16x1xf32>
    %79 = tpu.reciprocal %78 {approx = true} : vector<1x16x1xf32> -> vector<1x16x1xf32>
    %80 = vector.broadcast %79 : vector<1x16x1xf32> to vector<1x16x16xf32>
    %81 = arith.mulf %76, %80 : vector<1x16x16xf32>
    %82 = arith.truncf %81 : vector<1x16x16xf32> to vector<1x16x16xbf16>
    %83 = arith.truncf %65 : vector<1x16x16xf32> to vector<1x16x16xbf16>
    "tpu.trace_start"() <{level = 10 : i32, message = "wts,wsd->wtd"}> : () -> ()
    %cst_32 = arith.constant dense<0.000000e+00> : vector<1x16x16xf32>
    %84 = tpu.matmul %82, %83, %cst_32 {dimension_numbers = #tpu.dot_dimension_numbers<[2], [1], [1], [2], [0, 0, 0, 1, 1, 2], [0], [0]>} : vector<1x16x16xbf16>, vector<1x16x16xbf16>, vector<1x16x16xf32> -> vector<1x16x16xf32>
    "tpu.trace_stop"() : () -> ()
    %85 = vector.shape_cast %84 : vector<1x16x16xf32> to vector<16x16xf32>
    %c0_33 = arith.constant 0 : index
    %c16 = arith.constant 16 : index
    %86 = vector.load %arg16[%c0_33, %c16] : memref<16x64xf32, #tpu.memory_space<vmem>>, vector<16x16xf32>
    tpu.vector_store %arg16[%c0_33, %c16], %85 {strides = array<i32>} : memref<16x64xf32, #tpu.memory_space<vmem>>, vector<16x16xf32>,
    %87 = vector.extract_strided_slice %32 {offsets = [0, 32], sizes = [16, 16], strides = [1, 1]} : vector<16x192xf32> to vector<16x16xf32>
    %88 = vector.shape_cast %87 : vector<16x16xf32> to vector<1x16x16xf32>
    %89 = vector.extract_strided_slice %32 {offsets = [0, 96], sizes = [16, 16], strides = [1, 1]} : vector<16x192xf32> to vector<16x16xf32>
    %90 = vector.shape_cast %89 : vector<16x16xf32> to vector<1x16x16xf32>
    %91 = vector.extract_strided_slice %32 {offsets = [0, 160], sizes = [16, 16], strides = [1, 1]} : vector<16x192xf32> to vector<16x16xf32>
    %92 = vector.shape_cast %91 : vector<16x16xf32> to vector<1x16x16xf32>
    %93 = arith.truncf %88 : vector<1x16x16xf32> to vector<1x16x16xbf16>
    %94 = arith.truncf %90 : vector<1x16x16xf32> to vector<1x16x16xbf16>
    "tpu.trace_start"() <{level = 10 : i32, message = "wtd,wsd->wts"}> : () -> ()
    %cst_34 = arith.constant dense<0.000000e+00> : vector<1x16x16xf32>
    %95 = tpu.matmul %93, %94, %cst_34 {dimension_numbers = #tpu.dot_dimension_numbers<[2], [2], [1], [1], [0, 0, 0, 1, 1, 1], [0], [0]>} : vector<1x16x16xbf16>, vector<1x16x16xbf16>, vector<1x16x16xf32> -> vector<1x16x16xf32>
    "tpu.trace_stop"() : () -> ()
    %c2 = arith.constant 2 : index
    %c0_35 = arith.constant 0 : index
    %c0_36 = arith.constant 0 : index
    %c0_37 = arith.constant 0 : index
    %96 = vector.load %arg6[%c2, %c0_35, %c0_36, %c0_37] : memref<4x1x16x16xf32, #tpu.memory_space<vmem>>, vector<1x1x16x16xf32>
    %97 = vector.shape_cast %96 : vector<1x1x16x16xf32> to vector<1x16x16xf32>
    %98 = arith.addf %95, %97 : vector<1x16x16xf32>
    %cst_38 = arith.constant dense<0xFF800000> : vector<1x16xf32>
    %99 = vector.multi_reduction <maximumf>, %98, %cst_38 [2] : vector<1x16x16xf32> to vector<1x16xf32>
    %100 = vector.shape_cast %99 : vector<1x16xf32> to vector<1x16x1xf32>
    %101 = vector.broadcast %100 : vector<1x16x1xf32> to vector<1x16x16xf32>
    %102 = arith.subf %98, %101 : vector<1x16x16xf32>
    %103 = math.exp %102 : vector<1x16x16xf32>
    %cst_39 = arith.constant dense<0.000000e+00> : vector<1x16xf32>
    %104 = vector.multi_reduction <add>, %103, %cst_39 [2] : vector<1x16x16xf32> to vector<1x16xf32>
    %105 = vector.shape_cast %104 : vector<1x16xf32> to vector<1x16x1xf32>
    %106 = tpu.reciprocal %105 {approx = true} : vector<1x16x1xf32> -> vector<1x16x1xf32>
    %107 = vector.broadcast %106 : vector<1x16x1xf32> to vector<1x16x16xf32>
    %108 = arith.mulf %103, %107 : vector<1x16x16xf32>
    %109 = arith.truncf %108 : vector<1x16x16xf32> to vector<1x16x16xbf16>
    %110 = arith.truncf %92 : vector<1x16x16xf32> to vector<1x16x16xbf16>
    "tpu.trace_start"() <{level = 10 : i32, message = "wts,wsd->wtd"}> : () -> ()
    %cst_40 = arith.constant dense<0.000000e+00> : vector<1x16x16xf32>
    %111 = tpu.matmul %109, %110, %cst_40 {dimension_numbers = #tpu.dot_dimension_numbers<[2], [1], [1], [2], [0, 0, 0, 1, 1, 2], [0], [0]>} : vector<1x16x16xbf16>, vector<1x16x16xbf16>, vector<1x16x16xf32> -> vector<1x16x16xf32>
    "tpu.trace_stop"() : () -> ()
    %112 = vector.shape_cast %111 : vector<1x16x16xf32> to vector<16x16xf32>
    %c0_41 = arith.constant 0 : index
    %c32 = arith.constant 32 : index
    %113 = vector.load %arg16[%c0_41, %c32] : memref<16x64xf32, #tpu.memory_space<vmem>>, vector<16x16xf32>
    tpu.vector_store %arg16[%c0_41, %c32], %112 {strides = array<i32>} : memref<16x64xf32, #tpu.memory_space<vmem>>, vector<16x16xf32>,
    %114 = vector.extract_strided_slice %32 {offsets = [0, 48], sizes = [16, 16], strides = [1, 1]} : vector<16x192xf32> to vector<16x16xf32>
    %115 = vector.shape_cast %114 : vector<16x16xf32> to vector<1x16x16xf32>
    %116 = vector.extract_strided_slice %32 {offsets = [0, 112], sizes = [16, 16], strides = [1, 1]} : vector<16x192xf32> to vector<16x16xf32>
    %117 = vector.shape_cast %116 : vector<16x16xf32> to vector<1x16x16xf32>
    %118 = vector.extract_strided_slice %32 {offsets = [0, 176], sizes = [16, 16], strides = [1, 1]} : vector<16x192xf32> to vector<16x16xf32>
    %119 = vector.shape_cast %118 : vector<16x16xf32> to vector<1x16x16xf32>
    %120 = arith.truncf %115 : vector<1x16x16xf32> to vector<1x16x16xbf16>
    %121 = arith.truncf %117 : vector<1x16x16xf32> to vector<1x16x16xbf16>
    "tpu.trace_start"() <{level = 10 : i32, message = "wtd,wsd->wts"}> : () -> ()
    %cst_42 = arith.constant dense<0.000000e+00> : vector<1x16x16xf32>
    %122 = tpu.matmul %120, %121, %cst_42 {dimension_numbers = #tpu.dot_dimension_numbers<[2], [2], [1], [1], [0, 0, 0, 1, 1, 1], [0], [0]>} : vector<1x16x16xbf16>, vector<1x16x16xbf16>, vector<1x16x16xf32> -> vector<1x16x16xf32>
    "tpu.trace_stop"() : () -> ()
    %c3 = arith.constant 3 : index
    %c0_43 = arith.constant 0 : index
    %c0_44 = arith.constant 0 : index
    %c0_45 = arith.constant 0 : index
    %123 = vector.load %arg6[%c3, %c0_43, %c0_44, %c0_45] : memref<4x1x16x16xf32, #tpu.memory_space<vmem>>, vector<1x1x16x16xf32>
    %124 = vector.shape_cast %123 : vector<1x1x16x16xf32> to vector<1x16x16xf32>
    %125 = arith.addf %122, %124 : vector<1x16x16xf32>
    %cst_46 = arith.constant dense<0xFF800000> : vector<1x16xf32>
    %126 = vector.multi_reduction <maximumf>, %125, %cst_46 [2] : vector<1x16x16xf32> to vector<1x16xf32>
    %127 = vector.shape_cast %126 : vector<1x16xf32> to vector<1x16x1xf32>
    %128 = vector.broadcast %127 : vector<1x16x1xf32> to vector<1x16x16xf32>
    %129 = arith.subf %125, %128 : vector<1x16x16xf32>
    %130 = math.exp %129 : vector<1x16x16xf32>
    %cst_47 = arith.constant dense<0.000000e+00> : vector<1x16xf32>
    %131 = vector.multi_reduction <add>, %130, %cst_47 [2] : vector<1x16x16xf32> to vector<1x16xf32>
    %132 = vector.shape_cast %131 : vector<1x16xf32> to vector<1x16x1xf32>
    %133 = tpu.reciprocal %132 {approx = true} : vector<1x16x1xf32> -> vector<1x16x1xf32>
    %134 = vector.broadcast %133 : vector<1x16x1xf32> to vector<1x16x16xf32>
    %135 = arith.mulf %130, %134 : vector<1x16x16xf32>
    %136 = arith.truncf %135 : vector<1x16x16xf32> to vector<1x16x16xbf16>
    %137 = arith.truncf %119 : vector<1x16x16xf32> to vector<1x16x16xbf16>
    "tpu.trace_start"() <{level = 10 : i32, message = "wts,wsd->wtd"}> : () -> ()
    %cst_48 = arith.constant dense<0.000000e+00> : vector<1x16x16xf32>
    %138 = tpu.matmul %136, %137, %cst_48 {dimension_numbers = #tpu.dot_dimension_numbers<[2], [1], [1], [2], [0, 0, 0, 1, 1, 2], [0], [0]>} : vector<1x16x16xbf16>, vector<1x16x16xbf16>, vector<1x16x16xf32> -> vector<1x16x16xf32>
    "tpu.trace_stop"() : () -> ()
    %139 = vector.shape_cast %138 : vector<1x16x16xf32> to vector<16x16xf32>
    %c0_49 = arith.constant 0 : index
    %c48 = arith.constant 48 : index
    %140 = vector.load %arg16[%c0_49, %c48] : memref<16x64xf32, #tpu.memory_space<vmem>>, vector<16x16xf32>
    tpu.vector_store %arg16[%c0_49, %c48], %139 {strides = array<i32>} : memref<16x64xf32, #tpu.memory_space<vmem>>, vector<16x16xf32>,
    %c0_50 = arith.constant 0 : index
    %c0_51 = arith.constant 0 : index
    %141 = vector.load %arg16[%c0_50, %c0_51] : memref<16x64xf32, #tpu.memory_space<vmem>>, vector<16x64xf32>
    %c0_52 = arith.constant 0 : index
    %c0_53 = arith.constant 0 : index
    %142 = vector.load %arg7[%c0_52, %c0_53] : memref<64x64xbf16, #tpu.memory_space<vmem>>, vector<64x64xbf16>
    %143 = arith.truncf %141 : vector<16x64xf32> to vector<16x64xbf16>
    %cst_54 = arith.constant dense<0.000000e+00> : vector<16x64xf32>
    %144 = tpu.matmul %143, %142, %cst_54 {dimension_numbers = #tpu.dot_dimension_numbers<[1], [0], [0], [1], [0, 0, 1, 1], [], []>} : vector<16x64xbf16>, vector<64x64xbf16>, vector<16x64xf32> -> vector<16x64xf32>
    %145 = arith.addf %2, %144 : vector<16x64xf32>
    %c0_55 = arith.constant 0 : index
    %c0_56 = arith.constant 0 : index
    %146 = vector.load %arg8[%c0_55, %c0_56] : memref<1x64xf32, #tpu.memory_space<vmem>>, vector<1x64xf32>
    %147 = vector.broadcast %146 : vector<1x64xf32> to vector<16x64xf32>
    %148 = arith.addf %145, %147 : vector<16x64xf32>
    %c0_57 = arith.constant 0 : index
    %c0_58 = arith.constant 0 : index
    %149 = vector.load %arg9[%c0_57, %c0_58] : memref<1x64xf32, #tpu.memory_space<vmem>>, vector<1x64xf32>
    %c0_59 = arith.constant 0 : index
    %c0_60 = arith.constant 0 : index
    %150 = vector.load %arg10[%c0_59, %c0_60] : memref<1x64xf32, #tpu.memory_space<vmem>>, vector<1x64xf32>
    %cst_61 = arith.constant dense<0.000000e+00> : vector<16xf32>
    %151 = vector.multi_reduction <add>, %148, %cst_61 [1] : vector<16x64xf32> to vector<16xf32>
    %152 = vector.shape_cast %151 : vector<16xf32> to vector<16x1xf32>
    %cst_62 = arith.constant 6.400000e+01 : f32
    %153 = vector.broadcast %cst_62 : f32 to vector<16x1xf32>
    %154 = arith.divf %152, %153 : vector<16x1xf32>
    %155 = vector.broadcast %154 : vector<16x1xf32> to vector<16x64xf32>
    %156 = arith.subf %148, %155 : vector<16x64xf32>
    %157 = arith.mulf %156, %156 : vector<16x64xf32>
    %cst_63 = arith.constant dense<0.000000e+00> : vector<16xf32>
    %158 = vector.multi_reduction <add>, %157, %cst_63 [1] : vector<16x64xf32> to vector<16xf32>
    %159 = vector.shape_cast %158 : vector<16xf32> to vector<16x1xf32>
    %cst_64 = arith.constant 6.400000e+01 : f32
    %160 = vector.broadcast %cst_64 : f32 to vector<16x1xf32>
    %161 = arith.divf %159, %160 : vector<16x1xf32>
    %162 = vector.broadcast %154 : vector<16x1xf32> to vector<16x64xf32>
    %163 = arith.subf %148, %162 : vector<16x64xf32>
    %cst_65 = arith.constant 9.99999974E-6 : f32
    %164 = vector.broadcast %cst_65 : f32 to vector<16x1xf32>
    %165 = arith.addf %161, %164 : vector<16x1xf32>
    %166 = math.rsqrt %165 : vector<16x1xf32>
    %167 = vector.broadcast %166 : vector<16x1xf32> to vector<16x64xf32>
    %168 = arith.mulf %163, %167 : vector<16x64xf32>
    %169 = vector.broadcast %149 : vector<1x64xf32> to vector<16x64xf32>
    %170 = arith.mulf %168, %169 : vector<16x64xf32>
    %171 = vector.broadcast %150 : vector<1x64xf32> to vector<16x64xf32>
    %172 = arith.addf %170, %171 : vector<16x64xf32>
    %c0_66 = arith.constant 0 : index
    %c0_67 = arith.constant 0 : index
    %173 = vector.load %arg11[%c0_66, %c0_67] : memref<64x256xbf16, #tpu.memory_space<vmem>>, vector<64x256xbf16>
    %174 = arith.truncf %172 : vector<16x64xf32> to vector<16x64xbf16>
    %cst_68 = arith.constant dense<0.000000e+00> : vector<16x256xf32>
    %175 = tpu.matmul %174, %173, %cst_68 {dimension_numbers = #tpu.dot_dimension_numbers<[1], [0], [0], [1], [0, 0, 1, 1], [], []>} : vector<16x64xbf16>, vector<64x256xbf16>, vector<16x256xf32> -> vector<16x256xf32>
    %c0_69 = arith.constant 0 : index
    %c0_70 = arith.constant 0 : index
    %176 = vector.load %arg12[%c0_69, %c0_70] : memref<1x256xf32, #tpu.memory_space<vmem>>, vector<1x256xf32>
    %177 = vector.broadcast %176 : vector<1x256xf32> to vector<16x256xf32>
    %178 = arith.addf %175, %177 : vector<16x256xf32>
    %cst_71 = arith.constant 5.000000e-01 : f32
    %179 = vector.broadcast %cst_71 : f32 to vector<16x256xf32>
    %180 = arith.mulf %179, %178 : vector<16x256xf32>
    %cst_72 = arith.constant 0.707106769 : f32
    %181 = vector.broadcast %cst_72 : f32 to vector<16x256xf32>
    %182 = arith.mulf %178, %181 : vector<16x256xf32>
    %183 = math.erf %182 : vector<16x256xf32>
    %cst_73 = arith.constant 1.000000e+00 : f32
    %184 = vector.broadcast %cst_73 : f32 to vector<16x256xf32>
    %185 = arith.addf %184, %183 : vector<16x256xf32>
    %186 = arith.mulf %180, %185 : vector<16x256xf32>
    %c0_74 = arith.constant 0 : index
    %c0_75 = arith.constant 0 : index
    %187 = vector.load %arg13[%c0_74, %c0_75] : memref<256x64xbf16, #tpu.memory_space<vmem>>, vector<256x64xbf16>
    %188 = arith.truncf %186 : vector<16x256xf32> to vector<16x256xbf16>
    %cst_76 = arith.constant dense<0.000000e+00> : vector<16x64xf32>
    %189 = tpu.matmul %188, %187, %cst_76 {dimension_numbers = #tpu.dot_dimension_numbers<[1], [0], [0], [1], [0, 0, 1, 1], [], []>} : vector<16x256xbf16>, vector<256x64xbf16>, vector<16x64xf32> -> vector<16x64xf32>
    %c0_77 = arith.constant 0 : index
    %c0_78 = arith.constant 0 : index
    %190 = vector.load %arg14[%c0_77, %c0_78] : memref<1x64xf32, #tpu.memory_space<vmem>>, vector<1x64xf32>
    %191 = vector.broadcast %190 : vector<1x64xf32> to vector<16x64xf32>
    %192 = arith.addf %189, %191 : vector<16x64xf32>
    %193 = arith.addf %148, %192 : vector<16x64xf32>
    %194 = vector.shape_cast %193 : vector<16x64xf32> to vector<1x1x16x64xf32>
    %195 = arith.truncf %194 : vector<1x1x16x64xf32> to vector<1x1x16x64xbf16>
    %c0_79 = arith.constant 0 : index
    %c0_80 = arith.constant 0 : index
    %c0_81 = arith.constant 0 : index
    %c0_82 = arith.constant 0 : index
    %196 = vector.load %arg15[%c0_79, %c0_80, %c0_81, %c0_82] : memref<1x1x16x64xbf16, #tpu.memory_space<vmem>>, vector<1x1x16x64xbf16>
    tpu.vector_store %arg15[%c0_79, %c0_80, %c0_81, %c0_82], %195 {strides = array<i32>} : memref<1x1x16x64xbf16, #tpu.memory_space<vmem>>, vector<1x1x16x64xbf16>,
    return
  }
  func.func @transform_0(%arg0: i32) -> (i32, i32, i32, i32) {
    %c0_i32 = arith.constant 0 : i32
    %c0_i32_0 = arith.constant 0 : i32
    %c0_i32_1 = arith.constant 0 : i32
    %c0_i32_2 = arith.constant 0 : i32
    return %arg0, %c0_i32, %c0_i32_0, %c0_i32_1 : i32, i32, i32, i32
  }
  func.func @transform_1(%arg0: i32) -> (i32, i32) {
    %c0_i32 = arith.constant 0 : i32
    %c0_i32_0 = arith.constant 0 : i32
    %c0_i32_1 = arith.constant 0 : i32
    return %c0_i32, %c0_i32_0 : i32, i32
  }
  func.func @transform_2(%arg0: i32) -> (i32, i32) {
    %c0_i32 = arith.constant 0 : i32
    %c0_i32_0 = arith.constant 0 : i32
    %c0_i32_1 = arith.constant 0 : i32
    return %c0_i32, %c0_i32_0 : i32, i32
  }
  func.func @transform_3(%arg0: i32) -> (i32, i32) {
    %c0_i32 = arith.constant 0 : i32
    %c0_i32_0 = arith.constant 0 : i32
    %c0_i32_1 = arith.constant 0 : i32
    return %c0_i32, %c0_i32_0 : i32, i32
  }
  func.func @transform_4(%arg0: i32) -> (i32, i32) {
    %c0_i32 = arith.constant 0 : i32
    %c0_i32_0 = arith.constant 0 : i32
    %c0_i32_1 = arith.constant 0 : i32
    return %c0_i32, %c0_i32_0 : i32, i32
  }
  func.func @transform_5(%arg0: i32) -> (i32, i32, i32, i32) {
    %c0_i32 = arith.constant 0 : i32
    %c0_i32_0 = arith.constant 0 : i32
    %c0_i32_1 = arith.constant 0 : i32
    %c0_i32_2 = arith.constant 0 : i32
    %c0_i32_3 = arith.constant 0 : i32
    return %c0_i32, %c0_i32_0, %c0_i32_1, %c0_i32_2 : i32, i32, i32, i32
  }
  func.func @transform_6(%arg0: i32) -> (i32, i32) {
    %c0_i32 = arith.constant 0 : i32
    %c0_i32_0 = arith.constant 0 : i32
    %c0_i32_1 = arith.constant 0 : i32
    return %c0_i32, %c0_i32_0 : i32, i32
  }
  func.func @transform_7(%arg0: i32) -> (i32, i32) {
    %c0_i32 = arith.constant 0 : i32
    %c0_i32_0 = arith.constant 0 : i32
    %c0_i32_1 = arith.constant 0 : i32
    return %c0_i32, %c0_i32_0 : i32, i32
  }
  func.func @transform_8(%arg0: i32) -> (i32, i32) {
    %c0_i32 = arith.constant 0 : i32
    %c0_i32_0 = arith.constant 0 : i32
    %c0_i32_1 = arith.constant 0 : i32
    return %c0_i32, %c0_i32_0 : i32, i32
  }
  func.func @transform_9(%arg0: i32) -> (i32, i32) {
    %c0_i32 = arith.constant 0 : i32
    %c0_i32_0 = arith.constant 0 : i32
    %c0_i32_1 = arith.constant 0 : i32
    return %c0_i32, %c0_i32_0 : i32, i32
  }
  func.func @transform_10(%arg0: i32) -> (i32, i32) {
    %c0_i32 = arith.constant 0 : i32
    %c0_i32_0 = arith.constant 0 : i32
    %c0_i32_1 = arith.constant 0 : i32
    return %c0_i32, %c0_i32_0 : i32, i32
  }
  func.func @transform_11(%arg0: i32) -> (i32, i32) {
    %c0_i32 = arith.constant 0 : i32
    %c0_i32_0 = arith.constant 0 : i32
    %c0_i32_1 = arith.constant 0 : i32
    return %c0_i32, %c0_i32_0 : i32, i32
  }
  func.func @transform_12(%arg0: i32) -> (i32, i32) {
    %c0_i32 = arith.constant 0 : i32
    %c0_i32_0 = arith.constant 0 : i32
    %c0_i32_1 = arith.constant 0 : i32
    return %c0_i32, %c0_i32_0 : i32, i32
  }
  func.func @transform_13(%arg0: i32) -> (i32, i32) {
    %c0_i32 = arith.constant 0 : i32
    %c0_i32_0 = arith.constant 0 : i32
    %c0_i32_1 = arith.constant 0 : i32
    return %c0_i32, %c0_i32_0 : i32, i32
  }
  func.func @transform_14(%arg0: i32) -> (i32, i32, i32, i32) {
    %c0_i32 = arith.constant 0 : i32
    %c0_i32_0 = arith.constant 0 : i32
    %c0_i32_1 = arith.constant 0 : i32
    %c0_i32_2 = arith.constant 0 : i32
    return %arg0, %c0_i32, %c0_i32_0, %c0_i32_1 : i32, i32, i32, i32
  }
}

module attributes {stable_mosaic.version = 11 : i64} {
  func.func @_tail_kernel(%arg0: memref<2x16x64xbf16, #tpu.memory_space<vmem>>, %arg1: memref<1x64xf32, #tpu.memory_space<vmem>>, %arg2: memref<1x64xf32, #tpu.memory_space<vmem>>, %arg3: memref<64x3xbf16, #tpu.memory_space<vmem>>, %arg4: memref<1x3xf32, #tpu.memory_space<vmem>>, %arg5: memref<2x3xf32, #tpu.memory_space<vmem>>) attributes {dimension_semantics = [], scalar_prefetch = 0 : i64, scratch_operands = 0 : i64, tpu.core_type = #tpu.core_type<tc>} {
    %c0 = arith.constant 0 : index
    %c0_0 = arith.constant 0 : index
    %c0_1 = arith.constant 0 : index
    %0 = vector.load %arg0[%c0, %c0_0, %c0_1] : memref<2x16x64xbf16, #tpu.memory_space<vmem>>, vector<2x16x64xbf16>
    %1 = arith.extf %0 : vector<2x16x64xbf16> to vector<2x16x64xf32>
    %c0_2 = arith.constant 0 : index
    %c0_3 = arith.constant 0 : index
    %2 = vector.load %arg1[%c0_2, %c0_3] : memref<1x64xf32, #tpu.memory_space<vmem>>, vector<1x64xf32>
    %c0_4 = arith.constant 0 : index
    %c0_5 = arith.constant 0 : index
    %3 = vector.load %arg2[%c0_4, %c0_5] : memref<1x64xf32, #tpu.memory_space<vmem>>, vector<1x64xf32>
    %cst = arith.constant dense<0.000000e+00> : vector<2x16xf32>
    %4 = vector.multi_reduction <add>, %1, %cst [2] : vector<2x16x64xf32> to vector<2x16xf32>
    %5 = vector.shape_cast %4 : vector<2x16xf32> to vector<2x16x1xf32>
    %cst_6 = arith.constant 6.400000e+01 : f32
    %6 = vector.broadcast %cst_6 : f32 to vector<2x16x1xf32>
    %7 = arith.divf %5, %6 : vector<2x16x1xf32>
    %8 = vector.broadcast %7 : vector<2x16x1xf32> to vector<2x16x64xf32>
    %9 = arith.subf %1, %8 : vector<2x16x64xf32>
    %10 = arith.mulf %9, %9 : vector<2x16x64xf32>
    %cst_7 = arith.constant dense<0.000000e+00> : vector<2x16xf32>
    %11 = vector.multi_reduction <add>, %10, %cst_7 [2] : vector<2x16x64xf32> to vector<2x16xf32>
    %12 = vector.shape_cast %11 : vector<2x16xf32> to vector<2x16x1xf32>
    %cst_8 = arith.constant 6.400000e+01 : f32
    %13 = vector.broadcast %cst_8 : f32 to vector<2x16x1xf32>
    %14 = arith.divf %12, %13 : vector<2x16x1xf32>
    %15 = vector.broadcast %7 : vector<2x16x1xf32> to vector<2x16x64xf32>
    %16 = arith.subf %1, %15 : vector<2x16x64xf32>
    %cst_9 = arith.constant 9.99999974E-6 : f32
    %17 = vector.broadcast %cst_9 : f32 to vector<2x16x1xf32>
    %18 = arith.addf %14, %17 : vector<2x16x1xf32>
    %19 = math.rsqrt %18 : vector<2x16x1xf32>
    %20 = vector.broadcast %19 : vector<2x16x1xf32> to vector<2x16x64xf32>
    %21 = arith.mulf %16, %20 : vector<2x16x64xf32>
    %22 = vector.shape_cast %2 : vector<1x64xf32> to vector<1x1x64xf32>
    %23 = vector.broadcast %22 : vector<1x1x64xf32> to vector<2x16x64xf32>
    %24 = arith.mulf %21, %23 : vector<2x16x64xf32>
    %25 = vector.shape_cast %3 : vector<1x64xf32> to vector<1x1x64xf32>
    %26 = vector.broadcast %25 : vector<1x1x64xf32> to vector<2x16x64xf32>
    %27 = arith.addf %24, %26 : vector<2x16x64xf32>
    %cst_10 = arith.constant dense<0.000000e+00> : vector<2x64xf32>
    %28 = vector.multi_reduction <add>, %27, %cst_10 [1] : vector<2x16x64xf32> to vector<2x64xf32>
    %cst_11 = arith.constant 1.600000e+01 : f32
    %29 = vector.broadcast %cst_11 : f32 to vector<2x64xf32>
    %30 = arith.divf %28, %29 : vector<2x64xf32>
    %c0_12 = arith.constant 0 : index
    %c0_13 = arith.constant 0 : index
    %31 = vector.load %arg3[%c0_12, %c0_13] : memref<64x3xbf16, #tpu.memory_space<vmem>>, vector<64x3xbf16>
    %32 = arith.truncf %30 : vector<2x64xf32> to vector<2x64xbf16>
    %cst_14 = arith.constant dense<0.000000e+00> : vector<2x3xf32>
    %33 = tpu.matmul %32, %31, %cst_14 {dimension_numbers = #tpu.dot_dimension_numbers<[1], [0], [0], [1], [0, 0, 1, 1], [], []>} : vector<2x64xbf16>, vector<64x3xbf16>, vector<2x3xf32> -> vector<2x3xf32>
    %c0_15 = arith.constant 0 : index
    %c0_16 = arith.constant 0 : index
    %34 = vector.load %arg4[%c0_15, %c0_16] : memref<1x3xf32, #tpu.memory_space<vmem>>, vector<1x3xf32>
    %35 = vector.broadcast %34 : vector<1x3xf32> to vector<2x3xf32>
    %36 = arith.addf %33, %35 : vector<2x3xf32>
    %cst_17 = arith.constant dense<0xFF800000> : vector<2xf32>
    %37 = vector.multi_reduction <maximumf>, %36, %cst_17 [1] : vector<2x3xf32> to vector<2xf32>
    %38 = vector.shape_cast %37 : vector<2xf32> to vector<2x1xf32>
    %39 = vector.broadcast %38 : vector<2x1xf32> to vector<2x3xf32>
    %40 = arith.subf %36, %39 : vector<2x3xf32>
    %41 = math.exp %40 : vector<2x3xf32>
    %cst_18 = arith.constant dense<0.000000e+00> : vector<2xf32>
    %42 = vector.multi_reduction <add>, %41, %cst_18 [1] : vector<2x3xf32> to vector<2xf32>
    %43 = vector.shape_cast %42 : vector<2xf32> to vector<2x1xf32>
    %44 = vector.broadcast %43 : vector<2x1xf32> to vector<2x3xf32>
    %45 = arith.divf %41, %44 : vector<2x3xf32>
    %c0_19 = arith.constant 0 : index
    %c0_20 = arith.constant 0 : index
    %46 = vector.load %arg5[%c0_19, %c0_20] : memref<2x3xf32, #tpu.memory_space<vmem>>, vector<2x3xf32>
    tpu.vector_store %arg5[%c0_19, %c0_20], %45 {strides = array<i32>} : memref<2x3xf32, #tpu.memory_space<vmem>>, vector<2x3xf32>,
    return
  }
}

</mosaic_0001>

<bundles_post_ra>
// kernel: model_out_forward.7
= control target key start
LH: loop header
LB: loop body
LE: loop exit
PB: predicated region body
PF: predicated region fallthrough
CT: control target
= control target key end

     0   :  { %s698_s18 = smov 0   ;;  %s880_s0 = inlined_call_operand.vmem [shape: f32[2,64,48], index: 0, kind: input, shape index: {}]   ;;  %s881_s1 = inlined_call_operand.vmem [shape: bf16[48,32], index: 1, kind: input, shape index: {}]   ;;  %s882_s2 = inlined_call_operand.vmem [shape: f32[1,32], index: 2, kind: input, shape index: {}]   ;;  %s883_s3 = inlined_call_operand.vmem [shape: f32[1,32], index: 3, kind: input, shape index: {}]   ;;  %s884_s4 = inlined_call_operand.vmem [shape: f32[1,32], index: 4, kind: input, shape index: {}]   ;;  %s885_s5 = inlined_call_operand.vmem [shape: bf16[2,64,32], index: 5, kind: output, shape index: {}]  }
   0x1 LB: > { %s588_s19 = sadd.s32 4294967295, %s665_s18   ;;  %p592_p0 = scmp.ge.s32.totalorder %s665_s18, 1  ;;  %s665_s18 = sphi %s698_s18, %s15_s18  }
   0x2   : > { %p187_p1 = scmp.lt.s32.totalorder %s665_s18, 3 }
   0x4   : > { %p188_p2 = pnand %p592_p0, %p187_p1 }
   0x5   : > { %p215_p3 = scmp.lt.s32.totalorder (!%p188_p2), %s588_s19, 1 }
   0x6   : > { %191 = sbr.rel (%p188_p2) target bundleno = 445 (0x1bd), region = 40 }
   0xb   : > { %v619_v0 = vld [vmem:[%s881_s1 + $0x10] sm:$0xff]  ;;  %v618_v1 = vld [vmem:[%s881_s1 + $0x8] sm:$0xff]  ;;  %s887_s19 = smov (!%p215_p3, %s588_s19), 1  ;;  %v617_v2 = vld [vmem:[%s881_s1] sm:$0xff]  ;;  %vm266_vm0 = vcmask 392192   ;;  %vm310_vm1 = vcmask 261120  }
   0xc   : > { %284 = vmatpush.bf16.msra.mxu0 %v619_v0  ;;  %620 = vmatpush.bf16.msra.mxu1 %v619_v0  ;;  %s615_s24 = sshll.u32 %s887_s19, 6  ;;  %v638_v15 = vld [vmem:[%s882_s2] ss:$0 sm:$0xff]  ;;  %v667_v40 = vmov 32.0   ;;  %s616_s11 = sshll.u32 %s887_s19, 5  ;;  %vm524_vm9 = vcmask 257024  }
   0xd   : > { %621 = vmatpush.bf16.msra.mxu2 %v619_v0  ;;  %622 = vmatpush.bf16.msra.mxu3 %v619_v0  ;;  %s219_s29 = scalar_lea.vmem %s880_s0, %s615_s24  ;;  %641 = vrcp.f32 %v667_v40  ;;  %s829_s14 = scalar_lea.vmem %s885_s5, %s616_s11 }
   0xe   : > { %v226_v3 = vld [vmem:[%s219_s29] sm:$0xff]  ;;  %v227_v4 = vld [vmem:[%s219_s29 + $0x8] sm:$0xff]  ;;  %v228_v5 = vld [vmem:[%s219_s29 + $0x10] sm:$0xff] }
   0xf   : > { %v229_v6 = vld [vmem:[%s219_s29 + $0x18] sm:$0xff]  ;;  %v230_v7 = vld [vmem:[%s219_s29 + $0x20] sm:$0xff]  ;;  %v231_v8 = vld [vmem:[%s219_s29 + $0x28] sm:$0xff]  ;;  %v240_v11 = vpack.c.bf16 %v227_v4, %v226_v3 }
  0x10   : > { %285 = vmatpush.bf16.msra.mxu0 %v618_v1  ;;  %623 = vmatpush.bf16.msra.mxu1 %v618_v1  ;;  %v232_v9 = vld [vmem:[%s219_s29 + $0x30] sm:$0xff]  ;;  %v233_v10 = vld [vmem:[%s219_s29 + $0x38] sm:$0xff]  ;;  %v241_v12 = vpack.c.bf16 %v229_v6, %v228_v5  ;;  %v242_v13 = vpack.c.bf16 %v231_v8, %v230_v7 }
  0x11   : > { %624 = vmatpush.bf16.msra.mxu2 %v618_v1  ;;  %625 = vmatpush.bf16.msra.mxu3 %v618_v1  ;;  %v243_v14 = vpack.c.bf16 %v233_v10, %v232_v9 }
  0x13   : > { %v642_v41 = vpop.eup %641 }
  0x14   : > { %286 = vmatpush.bf16.msra.mxu0 %v617_v2  ;;  %626 = vmatpush.bf16.msra.mxu1 %v617_v2  ;;  %v336_v42 = vmul.f32 32.0, %v642_v41  ;;  %vm340_vm2 = vweird.f32 %v642_v41 }
  0x15   : > { %627 = vmatpush.bf16.msra.mxu2 %v617_v2  ;;  %628 = vmatpush.bf16.msra.mxu3 %v617_v2 }
  0x16   : > { %v337_v43 = vsub.f32 1.0, %v336_v42 }
  0x17   : > { %609 = vmatmul.msk.bf16.vlgmr.msra.gmra.mxu0 %vm266_vm0, %v240_v11  ;;  %610 = vmatmul.msk.bf16.vlgmr.msra.gmra.mxu1 %vm266_vm0, %v241_v12 }
  0x18   : > { %611 = vmatmul.msk.bf16.vlgmr.msra.gmra.mxu2 %vm266_vm0, %v242_v13  ;;  %612 = vmatmul.msk.bf16.vlgmr.msra.gmra.mxu3 %vm266_vm0, %v243_v14  ;;  %v338_v44 = vmul.f32 %v642_v41, %v337_v43 }
  0x1a   : > { %v339_v45 = vadd.f32 %v642_v41, %v338_v44 }
  0x1c   : > { %v732_v46 = vsel %vm340_vm2, %v642_v41, %v339_v45 }
  0x94   : > { %v288_v16 = vpop.f32.mrf.mxu0  ;;  %v293_v17 = vpop.f32.mrf.mxu1 }
  0x95   : > { %v289_v18 = vadd.f32 %v638_v15, %v288_v16  ;;  %v294_v19 = vadd.f32 %v638_v15, %v293_v17 }
  0x97   : > { %v317_v20 = vsel %vm310_vm1, %v294_v19, 0.0  ;;  %v311_v21 = vsel %vm310_vm1, %v289_v18, 0.0 }
  0x98   : > { %318 = vadd.xlane.f32.xlu1 %v317_v20  ;;  %312 = vadd.xlane.f32.xlu0 %v311_v21 }
  0x9b   : > { %v298_v22 = vpop.f32.mrf.mxu2  ;;  %v303_v23 = vpop.f32.mrf.mxu3 }
  0x9c   : > { %v299_v24 = vadd.f32 %v638_v15, %v298_v22  ;;  %v290_v25 = vpop.f32.mrf.mxu0  ;;  %v295_v26 = vpop.f32.mrf.mxu1  ;;  %v304_v32 = vadd.f32 %v638_v15, %v303_v23 }
  0x9d   : > { %v291_v27 = vadd.f32 %v638_v15, %v290_v25  ;;  %v296_v28 = vadd.f32 %v638_v15, %v295_v26 }
  0x9e   : > { %v323_v29 = vsel %vm310_vm1, %v299_v24, 0.0  ;;  %v329_v39 = vsel %vm310_vm1, %v304_v32, 0.0 }
  0x9f   : > { %324 = vadd.xlane.f32.xlu2 %v323_v29  ;;  %v320_v30 = vsel %vm310_vm1, %v296_v28, 0.0  ;;  %v314_v31 = vsel %vm310_vm1, %v291_v27, 0.0 }
  0xa0   : > { %321 = vadd.xlane.f32.xlu1 %v320_v30  ;;  %315 = vadd.xlane.f32.xlu0 %v314_v31 }
  0xa3   : > { %v300_v33 = vpop.f32.mrf.mxu2  ;;  %v305_v34 = vpop.f32.mrf.mxu3 }
  0xa4   : > { %v301_v35 = vadd.f32 %v638_v15, %v300_v33  ;;  %v306_v36 = vadd.f32 %v638_v15, %v305_v34 }
  0xa6   : > { %v326_v37 = vsel %vm310_vm1, %v301_v35, 0.0  ;;  %v332_v38 = vsel %vm310_vm1, %v306_v36, 0.0 }
  0xa7   : > { %327 = vadd.xlane.f32.xlu2 %v326_v37 }
  0xa8   : > { %333 = vadd.xlane.f32.xlu1 %v332_v38  ;;  %330 = vadd.xlane.f32.xlu0 %v329_v39 }
 0x10b   : > { %v319_v47 = vpop.xlane.xlu1 %318  ;;  %v313_v48 = vpop.xlane.xlu0 %312 }
 0x10c   : > { %v344_v49 = vmul.f32 %v732_v46, %v319_v47  ;;  %v342_v50 = vmul.f32 %v732_v46, %v313_v48 }
 0x10e   : > { %v736_v51 = vsub.f32 %v294_v19, %v344_v49  ;;  %v738_v52 = vsub.f32 %v289_v18, %v342_v50 }
 0x110   : > { %v360_v53 = vmul.f32 %v736_v51, %v736_v51  ;;  %v358_v54 = vmul.f32 %v738_v52, %v738_v52 }
 0x112   : > { %v325_v55 = vpop.xlane.xlu2 %324  ;;  %v372_v56 = vsel %vm310_vm1, %v360_v53, 0.0  ;;  %v366_v57 = vsel %vm310_vm1, %v358_v54, 0.0 }
 0x113   : > { %v346_v58 = vmul.f32 %v732_v46, %v325_v55  ;;  %373 = vadd.xlane.f32.xlu1 %v372_v56  ;;  %v322_v59 = vpop.xlane.xlu1 %321  ;;  %367 = vadd.xlane.f32.xlu2 %v366_v57  ;;  %v316_v60 = vpop.xlane.xlu0 %315 }
 0x114   : > { %v345_v61 = vmul.f32 %v732_v46, %v322_v59  ;;  %v343_v63 = vmul.f32 %v732_v46, %v316_v60 }
 0x115   : > { %v748_v62 = vsub.f32 %v299_v24, %v346_v58 }
 0x116   : > { %v751_v0 = vsub.f32 %v296_v28, %v345_v61  ;;  %v757_v3 = vsub.f32 %v291_v27, %v343_v63  ;;  %v807_v63 = vld [vmem:[%s883_s3] ss:$0 sm:$0xff] }
 0x117   : > { %v362_v1 = vmul.f32 %v748_v62, %v748_v62 }
 0x118   : > { %v361_v2 = vmul.f32 %v751_v0, %v751_v0  ;;  %v359_v13 = vmul.f32 %v757_v3, %v757_v3 }
 0x119   : > { %v378_v4 = vsel %vm310_vm1, %v362_v1, 0.0 }
 0x11a   : > { %v328_v5 = vpop.xlane.xlu2 %327  ;;  %379 = vadd.xlane.f32.xlu0 %v378_v4  ;;  %v375_v6 = vsel %vm310_vm1, %v361_v2, 0.0  ;;  %v369_v19 = vsel %vm310_vm1, %v359_v13, 0.0 }
 0x11b   : > { %v347_v7 = vmul.f32 %v732_v46, %v328_v5  ;;  %v334_v8 = vpop.xlane.xlu1 %333  ;;  %376 = vadd.xlane.f32.xlu2 %v375_v6  ;;  %v331_v9 = vpop.xlane.xlu0 %330  ;;  %v814_v6 = vld [vmem:[%s884_s4] ss:$0 sm:$0xff] }
 0x11c   : > { %v348_v10 = vmul.f32 %v732_v46, %v331_v9  ;;  %v349_v12 = vmul.f32 %v732_v46, %v334_v8 }
 0x11d   : > { %v763_v11 = vsub.f32 %v301_v35, %v347_v7 }
 0x11e   : > { %v768_v14 = vsub.f32 %v304_v32, %v348_v10  ;;  %v774_v17 = vsub.f32 %v306_v36, %v349_v12 }
 0x11f   : > { %v363_v15 = vmul.f32 %v763_v11, %v763_v11 }
 0x120   : > { %v364_v16 = vmul.f32 %v768_v14, %v768_v14  ;;  %v365_v21 = vmul.f32 %v774_v17, %v774_v17 }
 0x121   : > { %v381_v18 = vsel %vm310_vm1, %v363_v15, 0.0 }
 0x122   : > { %382 = vadd.xlane.f32.xlu1 %v381_v18  ;;  %370 = vadd.xlane.f32.xlu0 %v369_v19  ;;  %v384_v20 = vsel %vm310_vm1, %v364_v16, 0.0  ;;  %v387_v22 = vsel %vm310_vm1, %v365_v21, 0.0 }
 0x123   : > { %385 = vadd.xlane.f32.xlu2 %v384_v20 }
 0x12a   : > { %388 = vadd.xlane.f32.xlu0 %v387_v22 }
 0x186   : > { %v374_v23 = vpop.xlane.xlu1 %373  ;;  %v368_v24 = vpop.xlane.xlu2 %367 }
 0x187   : > { %v392_v25 = vmul.f32 %v374_v23, %v732_v46  ;;  %v390_v26 = vmul.f32 %v368_v24, %v732_v46 }
 0x189   : > { %v400_v27 = vadd.f32 1e-05, %v392_v25  ;;  %v398_v28 = vadd.f32 1e-05, %v390_v26 }
 0x18b   : > { %643 = vrsqrt.f32 %v400_v27  ;;  %vm432_vm5 = vweird.f32 %v400_v27  ;;  %vm412_vm7 = vweird.f32 %v398_v28 }
 0x18c   : > { %645 = vrsqrt.f32 %v398_v28 }
 0x18d   : > { %v380_v29 = vpop.xlane.xlu0 %379 }
 0x18e   : > { %v394_v30 = vmul.f32 %v380_v29, %v732_v46  ;;  %v377_v31 = vpop.xlane.xlu2 %376 }
 0x18f   : > { %v393_v32 = vmul.f32 %v377_v31, %v732_v46 }
 0x190   : > { %v786_v33 = vadd.f32 1e-05, %v394_v30 }
 0x191   : > { %v644_v34 = vpop.eup %643  ;;  %v788_v35 = vadd.f32 1e-05, %v393_v32 }
 0x192   : > { %v646_v36 = vpop.eup %645  ;;  %v427_v37 = vmul.f32 %v644_v34, %v400_v27  ;;  %647 = vrsqrt.f32 %v786_v33  ;;  %vm433_vm3 = vweird.f32 %v644_v34  ;;  %vm452_vm11 = vweird.f32 %v786_v33 }
 0x193   : > { %v407_v38 = vmul.f32 %v646_v36, %v398_v28  ;;  %649 = vrsqrt.f32 %v788_v35  ;;  %vm413_vm4 = vweird.f32 %v646_v36  ;;  %vm434_vm6 = vmor %vm432_vm5, %vm433_vm3  ;;  %vm442_vm13 = vweird.f32 %v788_v35 }
 0x194   : > { %v428_v39 = vmul.f32 %v644_v34, %v427_v37  ;;  %vm414_vm8 = vmor %vm412_vm7, %vm413_vm4 }
 0x195   : > { %v408_v40 = vmul.f32 %v646_v36, %v407_v38  ;;  %v383_v41 = vpop.xlane.xlu1 %382  ;;  %v371_v42 = vpop.xlane.xlu0 %370 }
 0x196   : > { %v429_v43 = vmul.f32 0.5, %v428_v39  ;;  %v395_v44 = vmul.f32 %v383_v41, %v732_v46  ;;  %v391_v45 = vmul.f32 %v371_v42, %v732_v46  ;;  %v386_v47 = vpop.xlane.xlu2 %385 }
 0x197   : > { %v409_v48 = vmul.f32 0.5, %v408_v40  ;;  %v396_v49 = vmul.f32 %v386_v47, %v732_v46 }
 0x198   : > { %v648_v50 = vpop.eup %647  ;;  %v430_v53 = vsub.f32 1.5, %v429_v43  ;;  %v795_v54 = vadd.f32 1e-05, %v395_v44  ;;  %v797_v55 = vadd.f32 1e-05, %v391_v45 }
 0x199   : > { %v650_v56 = vpop.eup %649  ;;  %v410_v57 = vsub.f32 1.5, %v409_v48  ;;  %v447_v58 = vmul.f32 %v648_v50, %v786_v33  ;;  %v800_v59 = vadd.f32 1e-05, %v396_v49  ;;  %vm453_vm10 = vweird.f32 %v648_v50 }
 0x19a   : > { %v431_v60 = vmul.f32 %v644_v34, %v430_v53  ;;  %v437_v61 = vmul.f32 %v650_v56, %v788_v35  ;;  %651 = vrsqrt.f32 %v795_v54  ;;  %vm443_vm12 = vweird.f32 %v650_v56  ;;  %vm454_vm14 = vmor %vm452_vm11, %vm453_vm10 }
 0x19b   : > { %v411_v1 = vmul.f32 %v646_v36, %v410_v57  ;;  %v448_v2 = vmul.f32 %v648_v50, %v447_v58  ;;  %653 = vrsqrt.f32 %v797_v55  ;;  %vm444_vm15 = vmor %vm442_vm13, %vm443_vm12  ;;  %vm462_vm1 = vweird.f32 %v795_v54 }
 0x19c   : > { %v435_v4 = vsel %vm434_vm6, %v644_v34, %v431_v60  ;;  %v438_v5 = vmul.f32 %v650_v56, %v437_v61  ;;  %655 = vrsqrt.f32 %v800_v59  ;;  %vm422_vm5 = vweird.f32 %v797_v55 }
 0x19d   : > { %v488_v7 = vmul.f32 %v435_v4, %v736_v51  ;;  %v415_v8 = vsel %vm414_vm8, %v646_v36, %v411_v1  ;;  %v449_v9 = vmul.f32 0.5, %v448_v2  ;;  %v389_v10 = vpop.xlane.xlu0 %388  ;;  %vm472_vm7 = vweird.f32 %v800_v59 }
 0x19e   : > { %v486_v12 = vmul.f32 %v415_v8, %v738_v52  ;;  %v439_v13 = vmul.f32 0.5, %v438_v5  ;;  %v397_v15 = vmul.f32 %v389_v10, %v732_v46 }
 0x19f   : > { %v499_v16 = vmul.f32 %v807_v63, %v488_v7  ;;  %v450_v18 = vsub.f32 1.5, %v449_v9 }
 0x1a0   : > { %v652_v19 = vpop.eup %651  ;;  %v497_v20 = vmul.f32 %v807_v63, %v486_v12  ;;  %v440_v51 = vsub.f32 1.5, %v439_v13  ;;  %v833_v27 = vadd.f32 1e-05, %v397_v15 }
 0x1a1   : > { %v654_v21 = vpop.eup %653  ;;  %v510_v22 = vadd.f32 %v814_v6, %v499_v16  ;;  %v451_v52 = vmul.f32 %v648_v50, %v450_v18  ;;  %v457_v46 = vmul.f32 %v652_v19, %v795_v54  ;;  %vm463_vm0 = vweird.f32 %v652_v19 }
 0x1a2   : > { %v656_v23 = vpop.eup %655  ;;  %v508_v24 = vadd.f32 %v814_v6, %v497_v20  ;;  %v441_v25 = vmul.f32 %v650_v56, %v440_v51  ;;  %v417_v26 = vmul.f32 %v654_v21, %v797_v55  ;;  %657 = vrsqrt.f32 %v833_v27  ;;  %vm464_vm4 = vmor %vm462_vm1, %vm463_vm0 }
 0x1a3   : > { %v518_v28 = vpack.c.bf16 %v510_v22, %v510_v22  ;;  %v455_v29 = vsel %vm454_vm14, %v648_v50, %v451_v52  ;;  %v458_v30 = vmul.f32 %v652_v19, %v457_v46  ;;  %v467_v31 = vmul.f32 %v656_v23, %v800_v59 }
 0x1a4   : > { %v516_v32 = vpack.c.bf16 %v508_v24, %v508_v24  ;;  %v490_v33 = vmul.f32 %v455_v29, %v748_v62  ;;  %v445_v34 = vsel %vm444_vm15, %v650_v56, %v441_v25  ;;  %v418_v35 = vmul.f32 %v654_v21, %v417_v26 }
 0x1a5   : > { %527 = vst.msk [vmem:[%s829_s14 + $0x8] sm:$0xf] %vm524_vm9, %v518_v28  ;;  %v489_v36 = vmul.f32 %v445_v34, %v751_v0  ;;  %v459_v37 = vmul.f32 0.5, %v458_v30  ;;  %v468_v38 = vmul.f32 %v656_v23, %v467_v31  ;;  %vm423_vm2 = vweird.f32 %v654_v21 }
 0x1a6   : > { %525 = vst.msk [vmem:[%s829_s14] sm:$0xf] %vm524_vm9, %v516_v32  ;;  %v501_v39 = vmul.f32 %v807_v63, %v490_v33  ;;  %v419_v40 = vmul.f32 0.5, %v418_v35  ;;  %vm473_vm3 = vweird.f32 %v656_v23  ;;  %vm424_vm6 = vmor %vm422_vm5, %vm423_vm2  ;;  %vm482_vm11 = vweird.f32 %v833_v27 }
 0x1a7   : > { %v500_v41 = vmul.f32 %v807_v63, %v489_v36  ;;  %v460_v42 = vsub.f32 1.5, %v459_v37  ;;  %v469_v62 = vmul.f32 0.5, %v468_v38  ;;  %vm474_vm8 = vmor %vm472_vm7, %vm473_vm3 }
 0x1a8   : > { %v512_v43 = vadd.f32 %v814_v6, %v501_v39  ;;  %v420_v44 = vsub.f32 1.5, %v419_v40  ;;  %v658_v54 = vpop.eup %657 }
 0x1a9   : > { %v511_v0 = vadd.f32 %v814_v6, %v500_v41  ;;  %v461_v45 = vmul.f32 %v652_v19, %v460_v42  ;;  %v470_v47 = vsub.f32 1.5, %v469_v62  ;;  %v477_v55 = vmul.f32 %v658_v54, %v833_v27 }
 0x1aa   : > { %v520_v48 = vpack.c.bf16 %v512_v43, %v512_v43  ;;  %v421_v49 = vmul.f32 %v654_v21, %v420_v44  ;;  %vm483_vm10 = vweird.f32 %v658_v54 }
 0x1ab   : > { %v519_v50 = vpack.c.bf16 %v511_v0, %v511_v0  ;;  %v465_v53 = vsel %vm464_vm4, %v652_v19, %v461_v45  ;;  %v471_v56 = vmul.f32 %v656_v23, %v470_v47  ;;  %v478_v4 = vmul.f32 %v658_v54, %v477_v55  ;;  %vm484_vm12 = vmor %vm482_vm11, %vm483_vm10 }
 0x1ac   : > { %529 = vst.msk [vmem:[%s829_s14 + $0x10] sm:$0xf] %vm524_vm9, %v520_v48  ;;  %v491_v57 = vmul.f32 %v465_v53, %v763_v11  ;;  %v425_v58 = vsel %vm424_vm6, %v654_v21, %v421_v49 }
 0x1ad   : > { %528 = vst.msk [vmem:[%s829_s14 + $0xc] sm:$0xf] %vm524_vm9, %v519_v50  ;;  %v487_v60 = vmul.f32 %v425_v58, %v757_v3  ;;  %v475_v61 = vsel %vm474_vm8, %v656_v23, %v471_v56  ;;  %v479_v3 = vmul.f32 0.5, %v478_v4 }
 0x1ae   : > { %v502_v1 = vmul.f32 %v807_v63, %v491_v57  ;;  %v492_v59 = vmul.f32 %v475_v61, %v768_v14 }
 0x1af   : > { %v498_v2 = vmul.f32 %v807_v63, %v487_v60  ;;  %v480_v12 = vsub.f32 1.5, %v479_v3 }
 0x1b0   : > { %v513_v11 = vadd.f32 %v814_v6, %v502_v1  ;;  %v503_v5 = vmul.f32 %v807_v63, %v492_v59 }
 0x1b1   : > { %v509_v7 = vadd.f32 %v814_v6, %v498_v2  ;;  %v481_v13 = vmul.f32 %v658_v54, %v480_v12 }
 0x1b2   : > { %v521_v8 = vpack.c.bf16 %v513_v11, %v513_v11  ;;  %v514_v9 = vadd.f32 %v814_v6, %v503_v5 }
 0x1b3   : > { %v517_v10 = vpack.c.bf16 %v509_v7, %v509_v7  ;;  %v485_v15 = vsel %vm484_vm12, %v658_v54, %v481_v13 }
 0x1b4   : > { %530 = vst.msk [vmem:[%s829_s14 + $0x14] sm:$0xf] %vm524_vm9, %v521_v8  ;;  %v522_v14 = vpack.c.bf16 %v514_v9, %v514_v9  ;;  %v493_v16 = vmul.f32 %v485_v15, %v774_v17 }
 0x1b5   : > { %526 = vst.msk [vmem:[%s829_s14 + $0x4] sm:$0xf] %vm524_vm9, %v517_v10 }
 0x1b6   : > { %531 = vst.msk [vmem:[%s829_s14 + $0x18] sm:$0xf] %vm524_vm9, %v522_v14  ;;  %v504_v18 = vmul.f32 %v807_v63, %v493_v16 }
 0x1b8   : > { %v515_v19 = vadd.f32 %v814_v6, %v504_v18 }
 0x1ba   : > { %v523_v20 = vpack.c.bf16 %v515_v19, %v515_v19 }
 0x1bc   : > { %532 = vst.msk [vmem:[%s829_s14 + $0x1c] sm:$0xf] %vm524_vm9, %v523_v20 }
 0x1bd PF: > { %s15_s18 = sadd.s32 1, %s665_s18  }
 0x1be   : > { %p12_p4 = scmp.ge.s32.totalorder %s15_s18, 4  }
 0x1c0   :  { %14 = sbr.rel (!%p12_p4) target bundleno = 1 (0x1), region = 70 }

// kernel: model_out_forward.8
= control target key start
LH: loop header
LB: loop body
LE: loop exit
PB: predicated region body
PF: predicated region fallthrough
CT: control target
= control target key end

     0   :  { %s2689_s29 = smov 0   ;;  %s3462_s0 = inlined_call_operand.vmem [shape: bf16[2,4,16,32], index: 0, kind: input, shape index: {}]   ;;  %s3463_s1 = inlined_call_operand.vmem [shape: f32[1,32], index: 1, kind: input, shape index: {}]   ;;  %s3464_s2 = inlined_call_operand.vmem [shape: f32[1,32], index: 2, kind: input, shape index: {}]   ;;  %s3465_s3 = inlined_call_operand.vmem [shape: bf16[32,96], index: 3, kind: input, shape index: {}]   ;;  %s3466_s4 = inlined_call_operand.vmem [shape: f32[1,96], index: 4, kind: input, shape index: {}]   ;;  %s3467_s5 = inlined_call_operand.vmem [shape: f32[2,4,16,16], index: 5, kind: input, shape index: {}]   ;;  %s3468_s6 = inlined_call_operand.vmem [shape: bf16[32,32], index: 6, kind: input, shape index: {}]   ;;  %s3469_s7 = inlined_call_operand.vmem [shape: f32[1,32], index: 7, kind: input, shape index: {}]   ;;  %s3470_s8 = inlined_call_operand.vmem [shape: f32[1,32], index: 8, kind: input, shape index: {}]   ;;  %s3471_s9 = inlined_call_operand.vmem [shape: f32[1,32], index: 9, kind: input, shape index: {}]   ;;  %s3472_s10 = inlined_call_operand.vmem [shape: bf16[32,128], index: 10, kind: input, shape index: {}]   ;;  %s3473_s11 = inlined_call_operand.vmem [shape: f32[1,128], index: 11, kind: input, shape index: {}]   ;;  %s3474_s12 = inlined_call_operand.vmem [shape: bf16[128,32], index: 12, kind: input, shape index: {}]   ;;  %s3475_s13 = inlined_call_operand.vmem [shape: f32[1,32], index: 13, kind: input, shape index: {}]   ;;  %s3476_s14 = inlined_call_operand.vmem [shape: bf16[2,4,16,32], index: 14, kind: output, shape index: {}]  }
   0x1 LB: > { %s2316_s30 = sadd.s32 4294967295, %s2605_s29   ;;  %p2320_p0 = scmp.ge.s32.totalorder %s2605_s29, 1  ;;  %s2605_s29 = sphi %s2689_s29, %s24_s29  }
   0x2   : > { %p412_p1 = scmp.lt.s32.totalorder %s2605_s29, 3 }
   0x4   : > { %p413_p2 = pnand %p2320_p0, %p412_p1 }
   0x5   : > { %p458_p3 = scmp.lt.s32.totalorder (!%p413_p2), %s2316_s30, 1  ;;  %s2608_s16 = smov (!%p413_p2), 96  }
   0x6   : > { %416 = sbr.rel (%p413_p2) target bundleno = 2506 (0x9ca), region = 76  ;;  %s2609_s17 = smov (!%p413_p2), 64  }
   0x7   : > { %s2611_s19 = smov (!%p413_p2), 80   ;;  %s2612_s26 = smov (!%p413_p2), 48  }
   0xb   : > { %s3478_s30 = smov (!%p458_p3, %s2316_s30), 1  ;;  %vm487_vm0 = vcmask 261120   ;;  %v2607_v18 = vmov 32.0   ;;  %v2430_v62 = vld [vmem:[%s3465_s3 + $0x8] sm:$0xff] }
   0xc   : > { %s2427_s15 = sshll.u32 %s3478_s30, 5  ;;  %2485 = vrcp.f32 %v2607_v18  ;;  %735 = vmatpush.bf16.msra.mxu0 %v2430_v62 }
   0xd   : > { %s462_s18 = scalar_lea.vmem %s3462_s0, %s2427_s15 }
   0xe   : > { %v2460_v0 = vld [vmem:[%s462_s18 + $0x10] sm:$0xff]   ;;  %v2459_v1 = vld [vmem:[%s462_s18 + $0x8] sm:$0xff]   ;;  %v2444_v2 = vld [vmem:[%s462_s18] sm:$0xff]  }
   0xf   : > { %v2705_v3 = vunpack.c.l.bf16 %v2460_v0  ;;  %v2707_v4 = vunpack.c.l.bf16 %v2459_v1  ;;  %v2709_v5 = vunpack.c.l.bf16 %v2444_v2  ;;  %v2717_v9 = vunpack.c.h.bf16 %v2460_v0  ;;  %v2461_v15 = vld [vmem:[%s462_s18 + $0x18] sm:$0xff]   ;;  %s2610_s18 = smov 112  }
  0x10   : > { %v2719_v10 = vunpack.c.h.bf16 %v2459_v1  ;;  %v2721_v11 = vunpack.c.h.bf16 %v2444_v2  ;;  %v2729_v16 = vunpack.c.l.bf16 %v2461_v15  ;;  %v2746_v39 = vunpack.c.h.bf16 %v2461_v15  ;;  %v2429_v2 = vld [vmem:[%s3465_s3] sm:$0xff] }
  0x11   : > { %v500_v6 = vsel %vm487_vm0, %v2705_v3, 0.0  ;;  %v494_v7 = vsel %vm487_vm0, %v2707_v4, 0.0  ;;  %v488_v8 = vsel %vm487_vm0, %v2709_v5, 0.0  ;;  %v503_v12 = vsel %vm487_vm0, %v2717_v9, 0.0  ;;  %736 = vmatpush.bf16.msra.mxu0 %v2429_v2 }
  0x12   : > { %501 = vadd.xlane.f32.xlu2 %v500_v6  ;;  %495 = vadd.xlane.f32.xlu1 %v494_v7  ;;  %v497_v13 = vsel %vm487_vm0, %v2719_v10, 0.0  ;;  %v491_v14 = vsel %vm487_vm0, %v2721_v11, 0.0  ;;  %v506_v17 = vsel %vm487_vm0, %v2729_v16, 0.0  ;;  %v2486_v19 = vpop.eup %2485  ;;  %v509_v45 = vsel %vm487_vm0, %v2746_v39, 0.0 }
  0x13   : > { %489 = vadd.xlane.f32.xlu0 %v488_v8  ;;  %v513_v20 = vmul.f32 32.0, %v2486_v19  ;;  %vm517_vm1 = vweird.f32 %v2486_v19 }
  0x15   : > { %v514_v21 = vsub.f32 1.0, %v513_v20 }
  0x17   : > { %v515_v22 = vmul.f32 %v2486_v19, %v514_v21 }
  0x19   : > { %v516_v23 = vadd.f32 %v2486_v19, %v515_v22 }
  0x1a   : > { %504 = vadd.xlane.f32.xlu2 %v503_v12  ;;  %498 = vadd.xlane.f32.xlu1 %v497_v13 }
  0x1b   : > { %492 = vadd.xlane.f32.xlu0 %v491_v14  ;;  %v2733_v24 = vsel %vm517_vm1, %v2486_v19, %v516_v23 }
  0x22   : > { %507 = vadd.xlane.f32.xlu2 %v506_v17 }
  0x85   : > { %v502_v25 = vpop.xlane.xlu2 %501  ;;  %v496_v26 = vpop.xlane.xlu1 %495 }
  0x86   : > { %v490_v27 = vpop.xlane.xlu0 %489  ;;  %v523_v36 = vmul.f32 %v2733_v24, %v502_v25  ;;  %v521_v37 = vmul.f32 %v2733_v24, %v496_v26 }
  0x87   : > { %v519_v28 = vmul.f32 %v2733_v24, %v490_v27 }
  0x88   : > { %v2757_v43 = vsub.f32 %v2705_v3, %v523_v36  ;;  %v2760_v44 = vsub.f32 %v2707_v4, %v521_v37 }
  0x89   : > { %v2737_v29 = vsub.f32 %v2709_v5, %v519_v28 }
  0x8a   : > { %v539_v52 = vmul.f32 %v2757_v43, %v2757_v43  ;;  %v537_v53 = vmul.f32 %v2760_v44, %v2760_v44 }
  0x8b   : > { %v535_v30 = vmul.f32 %v2737_v29, %v2737_v29 }
  0x8c   : > { %v555_v57 = vsel %vm487_vm0, %v539_v52, 0.0  ;;  %v549_v58 = vsel %vm487_vm0, %v537_v53, 0.0 }
  0x8d   : > { %v505_v31 = vpop.xlane.xlu2 %504  ;;  %v499_v32 = vpop.xlane.xlu1 %498  ;;  %v543_v33 = vsel %vm487_vm0, %v535_v30, 0.0 }
  0x8e   : > { %v522_v34 = vmul.f32 %v2733_v24, %v499_v32  ;;  %544 = vadd.xlane.f32.xlu0 %v543_v33  ;;  %v493_v35 = vpop.xlane.xlu0 %492  ;;  %v524_v51 = vmul.f32 %v2733_v24, %v505_v31 }
  0x8f   : > { %v520_v38 = vmul.f32 %v2733_v24, %v493_v35 }
  0x90   : > { %v2749_v40 = vsub.f32 %v2719_v10, %v522_v34  ;;  %v2780_v56 = vsub.f32 %v2717_v9, %v524_v51 }
  0x91   : > { %v2752_v41 = vsub.f32 %v2721_v11, %v520_v38 }
  0x92   : > { %v538_v42 = vmul.f32 %v2749_v40, %v2749_v40  ;;  %v540_v60 = vmul.f32 %v2780_v56, %v2780_v56 }
  0x93   : > { %v536_v46 = vmul.f32 %v2752_v41, %v2752_v41 }
  0x94   : > { %v552_v47 = vsel %vm487_vm0, %v538_v42, 0.0  ;;  %v558_v61 = vsel %vm487_vm0, %v540_v60, 0.0 }
  0x95   : > { %v508_v48 = vpop.xlane.xlu2 %507  ;;  %553 = vadd.xlane.f32.xlu2 %v552_v47  ;;  %v546_v49 = vsel %vm487_vm0, %v536_v46, 0.0 }
  0x96   : > { %v525_v50 = vmul.f32 %v2733_v24, %v508_v48  ;;  %510 = vadd.xlane.f32.xlu0 %v509_v45  ;;  %547 = vadd.xlane.f32.xlu1 %v546_v49 }
  0x98   : > { %v2775_v54 = vsub.f32 %v2729_v16, %v525_v50 }
  0x9a   : > { %v541_v55 = vmul.f32 %v2775_v54, %v2775_v54 }
  0x9c   : > { %v561_v59 = vsel %vm487_vm0, %v541_v55, 0.0 }
  0x9d   : > { %562 = vadd.xlane.f32.xlu2 %v561_v59 }
  0x9e   : > { %556 = vadd.xlane.f32.xlu0 %v555_v57  ;;  %550 = vadd.xlane.f32.xlu1 %v549_v58  ;;  %v2822_v58 = vld [vmem:[%s3463_s1] ss:$0 sm:$0xff] }
  0xa6   : > { %559 = vadd.xlane.f32.xlu1 %v558_v61 }
 0x101   : > { %v545_v63 = vpop.xlane.xlu0 %544 }
 0x102   : > { %v567_v0 = vmul.f32 %v545_v63, %v2733_v24 }
 0x104   : > { %v575_v1 = vadd.f32 1e-05, %v567_v0 }
 0x106   : > { %2487 = vrsqrt.f32 %v575_v1  ;;  %vm589_vm3 = vweird.f32 %v575_v1 }
 0x108   : > { %v554_v6 = vpop.xlane.xlu2 %553 }
 0x109   : > { %v570_v7 = vmul.f32 %v554_v6, %v2733_v24  ;;  %v548_v8 = vpop.xlane.xlu1 %547  ;;  %v511_v12 = vpop.xlane.xlu0 %510 }
 0x10a   : > { %v568_v13 = vmul.f32 %v548_v8, %v2733_v24  ;;  %v526_v14 = vmul.f32 %v2733_v24, %v511_v12 }
 0x10b   : > { %v2798_v15 = vadd.f32 1e-05, %v570_v7 }
 0x10c   : > { %v2488_v17 = vpop.eup %2487  ;;  %v576_v18 = vadd.f32 1e-05, %v568_v13  ;;  %v2801_v19 = vsub.f32 %v2746_v39, %v526_v14 }
 0x10d   : > { %v584_v20 = vmul.f32 %v2488_v17, %v575_v1  ;;  %2489 = vrsqrt.f32 %v2798_v15  ;;  %vm590_vm2 = vweird.f32 %v2488_v17  ;;  %vm619_vm10 = vweird.f32 %v2798_v15 }
 0x10e   : > { %2491 = vrsqrt.f32 %v576_v18  ;;  %v542_v21 = vmul.f32 %v2801_v19, %v2801_v19  ;;  %vm591_vm4 = vmor %vm589_vm3, %vm590_vm2  ;;  %vm599_vm6 = vweird.f32 %v576_v18 }
 0x10f   : > { %v585_v22 = vmul.f32 %v2488_v17, %v584_v20 }
 0x110   : > { %v564_v23 = vsel %vm487_vm0, %v542_v21, 0.0 }
 0x111   : > { %v586_v25 = vmul.f32 0.5, %v585_v22  ;;  %v551_v26 = vpop.xlane.xlu1 %550  ;;  %565 = vadd.xlane.f32.xlu0 %v564_v23  ;;  %v557_v28 = vpop.xlane.xlu0 %556 }
 0x112   : > { %v569_v27 = vmul.f32 %v551_v26, %v2733_v24  ;;  %v571_v35 = vmul.f32 %v557_v28, %v2733_v24 }
 0x113   : > { %v2808_v30 = vpop.eup %2489  ;;  %v587_v31 = vsub.f32 1.5, %v586_v25 }
 0x114   : > { %v2492_v32 = vpop.eup %2491  ;;  %v577_v33 = vadd.f32 1e-05, %v569_v27  ;;  %v614_v37 = vmul.f32 %v2808_v30, %v2798_v15  ;;  %v2813_v45 = vadd.f32 1e-05, %v571_v35  ;;  %vm620_vm11 = vweird.f32 %v2808_v30 }
 0x115   : > { %v594_v34 = vmul.f32 %v2492_v32, %v576_v18  ;;  %v588_v36 = vmul.f32 %v2488_v17, %v587_v31  ;;  %vm600_vm5 = vweird.f32 %v2492_v32  ;;  %vm621_vm13 = vmor %vm619_vm10, %vm620_vm11  ;;  %vm781_vm11 = vcmask 130048  }
 0x116   : > { %2493 = vrsqrt.f32 %v577_v33  ;;  %v615_v48 = vmul.f32 %v2808_v30, %v614_v37  ;;  %vm601_vm7 = vmor %vm599_vm6, %vm600_vm5  ;;  %vm609_vm8 = vweird.f32 %v577_v33  ;;  %vm629_vm1 = vweird.f32 %v2813_v45 }
 0x117   : > { %v595_v38 = vmul.f32 %v2492_v32, %v594_v34  ;;  %v592_v47 = vsel %vm591_vm4, %v2488_v17, %v588_v36  ;;  %2495 = vrsqrt.f32 %v2813_v45 }
 0x118   : > { %v663_v53 = vmul.f32 %v592_v47, %v2737_v29  ;;  %v616_v59 = vmul.f32 0.5, %v615_v48  ;;  %v2829_v29 = vld [vmem:[%s3464_s2] ss:$0 sm:$0xff] }
 0x119   : > { %v596_v42 = vmul.f32 0.5, %v595_v38  ;;  %v560_v46 = vpop.xlane.xlu1 %559 }
 0x11a   : > { %v572_v49 = vmul.f32 %v560_v46, %v2733_v24  ;;  %v674_v0 = vmul.f32 %v2822_v58, %v663_v53  ;;  %v617_v1 = vsub.f32 1.5, %v616_v59 }
 0x11b   : > { %v597_v50 = vsub.f32 1.5, %v596_v42 }
 0x11c   : > { %v2494_v51 = vpop.eup %2493  ;;  %v580_v52 = vadd.f32 1e-05, %v572_v49  ;;  %v685_v13 = vadd.f32 %v2829_v29, %v674_v0  ;;  %v618_v14 = vmul.f32 %v2808_v30, %v617_v1 }
 0x11d   : > { %v598_v55 = vmul.f32 %v2492_v32, %v597_v50  ;;  %v604_v57 = vmul.f32 %v2494_v51, %v577_v33  ;;  %vm610_vm9 = vweird.f32 %v2494_v51  ;;  %v2496_v6 = vpop.eup %2495 }
 0x11e   : > { %2497 = vrsqrt.f32 %v580_v52  ;;  %vm611_vm12 = vmor %vm609_vm8, %vm610_vm9  ;;  %v624_v17 = vmul.f32 %v2496_v6, %v2813_v45  ;;  %v622_v15 = vsel %vm621_vm13, %v2808_v30, %v618_v14  ;;  %vm639_vm14 = vweird.f32 %v580_v52 }
 0x11f   : > { %v602_v60 = vsel %vm601_vm7, %v2492_v32, %v598_v55  ;;  %v605_v61 = vmul.f32 %v2494_v51, %v604_v57  ;;  %v666_v27 = vmul.f32 %v622_v15, %v2749_v40  ;;  %vm630_vm2 = vweird.f32 %v2496_v6 }
 0x120   : > { %v664_v62 = vmul.f32 %v602_v60, %v2752_v41  ;;  %v625_v23 = vmul.f32 %v2496_v6, %v624_v17  ;;  %vm631_vm4 = vmor %vm629_vm1, %vm630_vm2 }
 0x121   : > { %v606_v63 = vmul.f32 0.5, %v605_v61  ;;  %v677_v33 = vmul.f32 %v2822_v58, %v666_v27 }
 0x122   : > { %v675_v2 = vmul.f32 %v2822_v58, %v664_v62  ;;  %v626_v28 = vmul.f32 0.5, %v625_v23 }
 0x123   : > { %v607_v7 = vsub.f32 1.5, %v606_v63 }
 0x124   : > { %v686_v41 = vadd.f32 %v2829_v29, %v675_v2  ;;  %v2498_v8 = vpop.eup %2497  ;;  %v627_v34 = vsub.f32 1.5, %v626_v28 }
 0x125   : > { %v608_v12 = vmul.f32 %v2494_v51, %v607_v7  ;;  %v634_v18 = vmul.f32 %v2498_v8, %v580_v52  ;;  %vm640_vm15 = vweird.f32 %v2498_v8 }
 0x126   : > { %v693_v20 = vpack.c.bf16 %v686_v41, %v685_v13  ;;  %vm641_vm3 = vmor %vm639_vm14, %vm640_vm15  ;;  %v628_v36 = vmul.f32 %v2496_v6, %v627_v34 }
 0x127   : > { %v612_v21 = vsel %vm611_vm12, %v2494_v51, %v608_v12  ;;  %v635_v22 = vmul.f32 %v2498_v8, %v634_v18  ;;  %v563_v51 = vpop.xlane.xlu2 %562  ;;  %vm1420_vm12 = vcmask 261248  }
 0x128   : > { %2333 = vmatmul.msk.bf16.vlgmr.msra.gmra.mxu0 %vm487_vm0, %v693_v20  ;;  %v665_v25 = vmul.f32 %v612_v21, %v2760_v44  ;;  %v688_v44 = vadd.f32 %v2829_v29, %v677_v33  ;;  %v632_v38 = vsel %vm631_vm4, %v2496_v6, %v628_v36  ;;  %v573_v52 = vmul.f32 %v563_v51, %v2733_v24 }
 0x129   : > { %v636_v26 = vmul.f32 0.5, %v635_v22  ;;  %v667_v46 = vmul.f32 %v632_v38, %v2757_v43 }
 0x12a   : > { %v676_v31 = vmul.f32 %v2822_v58, %v665_v25  ;;  %v581_v53 = vadd.f32 1e-05, %v573_v52 }
 0x12b   : > { %v637_v32 = vsub.f32 1.5, %v636_v26  ;;  %v678_v45 = vmul.f32 %v2822_v58, %v667_v46 }
 0x12c   : > { %v687_v35 = vadd.f32 %v2829_v29, %v676_v31  ;;  %2499 = vrsqrt.f32 %v581_v53  ;;  %vm649_vm5 = vweird.f32 %v581_v53 }
 0x12d   : > { %v638_v30 = vmul.f32 %v2498_v8, %v637_v32  ;;  %v689_v49 = vadd.f32 %v2829_v29, %v678_v45 }
 0x12e   : > { %v694_v40 = vpack.c.bf16 %v688_v44, %v687_v35 }
 0x12f   : > { %v642_v37 = vsel %vm641_vm3, %v2498_v8, %v638_v30 }
 0x130   : > { %v668_v42 = vmul.f32 %v642_v37, %v2780_v56 }
 0x132   : > { %v679_v47 = vmul.f32 %v2822_v58, %v668_v42  ;;  %v2500_v55 = vpop.eup %2499 }
 0x133   : > { %v644_v56 = vmul.f32 %v2500_v55, %v581_v53  ;;  %vm650_vm6 = vweird.f32 %v2500_v55 }
 0x134   : > { %v690_v48 = vadd.f32 %v2829_v29, %v679_v47  ;;  %vm651_vm7 = vmor %vm649_vm5, %vm650_vm6 }
 0x135   : > { %v645_v57 = vmul.f32 %v2500_v55, %v644_v56 }
 0x136   : > { %v695_v50 = vpack.c.bf16 %v690_v48, %v689_v49 }
 0x137   : > { %v646_v61 = vmul.f32 0.5, %v645_v57 }
 0x138   : > { %2334 = vmatmul.msk.bf16.gmra.mxu0 %vm487_vm0, %v694_v40 }
 0x139   : > { %v647_v62 = vsub.f32 1.5, %v646_v61 }
 0x13b   : > { %v648_v0 = vmul.f32 %v2500_v55, %v647_v62 }
 0x13d   : > { %v652_v6 = vsel %vm651_vm7, %v2500_v55, %v648_v0 }
 0x13e   : > { %v669_v8 = vmul.f32 %v652_v6, %v2775_v54  ;;  %v2479_v54 = vld [vmem:[%s3466_s4] ss:$0 sm:$0xff] }
 0x140   : > { %v680_v17 = vmul.f32 %v2822_v58, %v669_v8 }
 0x142   : > { %v691_v20 = vadd.f32 %v2829_v29, %v680_v17 }
 0x148   : > { %2335 = vmatmul.msk.bf16.gmra.mxu0 %vm487_vm0, %v695_v50 }
 0x184   : > { %v566_v43 = vpop.xlane.xlu0 %565 }
 0x185   : > { %v574_v59 = vmul.f32 %v566_v43, %v2733_v24 }
 0x187   : > { %v582_v60 = vadd.f32 1e-05, %v574_v59 }
 0x189   : > { %2501 = vrsqrt.f32 %v582_v60  ;;  %vm659_vm9 = vweird.f32 %v582_v60 }
 0x18f   : > { %v2502_v63 = vpop.eup %2501 }
 0x190   : > { %v654_v1 = vmul.f32 %v2502_v63, %v582_v60  ;;  %vm660_vm8 = vweird.f32 %v2502_v63 }
 0x191   : > { %vm661_vm10 = vmor %vm659_vm9, %vm660_vm8 }
 0x192   : > { %v655_v2 = vmul.f32 %v2502_v63, %v654_v1 }
 0x194   : > { %v656_v7 = vmul.f32 0.5, %v655_v2 }
 0x196   : > { %v657_v41 = vsub.f32 1.5, %v656_v7 }
 0x198   : > { %v658_v12 = vmul.f32 %v2502_v63, %v657_v41 }
 0x19a   : > { %v662_v13 = vsel %vm661_vm10, %v2502_v63, %v658_v12 }
 0x19b   : > { %v670_v14 = vmul.f32 %v662_v13, %v2801_v19  ;;  %v766_v13 = vld [vmem:[%s3467_s5] sm:$0xff] }
 0x19d   : > { %v681_v18 = vmul.f32 %v2822_v58, %v670_v14 }
 0x19f   : > { %v692_v21 = vadd.f32 %v2829_v29, %v681_v18 }
 0x1a1   : > { %v696_v22 = vpack.c.bf16 %v692_v21, %v691_v20  ;;  %v767_v20 = vld [vmem:[%s3467_s5 + $0x8] sm:$0xff] }
 0x1a3   : > { %2336 = vmatmul.msk.bf16.gmra.mxu0 %vm487_vm0, %v696_v22 }
 0x1a5   : > { %v738_v15 = vpop.f32.mrf.mxu0 }
 0x1a6   : > { %v739_v23 = vadd.f32 %v2479_v54, %v738_v15 }
 0x1a8   : > { %v758_v26 = vpack.c.bf16 %v739_v23, %v739_v23 }
 0x1aa   : > { %v776_v28 = vunpack.c.l.b16 %v758_v26 }
 0x1ad   : > { %v740_v25 = vpop.f32.mrf.mxu0 }
 0x1ae   : > { %v741_v19 = vadd.f32 %v2479_v54, %v740_v25 }
 0x1b0   : > { %v759_v27 = vpack.c.bf16 %v741_v19, %v741_v19  ;;  %v769_v19 = vld [vmem:[%s3467_s5 + $0x18] sm:$0xff] }
 0x1b2   : > { %v777_v31 = vunpack.c.l.b16 %v759_v27 }
 0x1b4   : > { %v2867_v58 = vpack.c.b16 %v777_v31, %v776_v28 }
 0x1b5   : > { %v743_v32 = vpop.f32.mrf.mxu0 }
 0x1b6   : > { %779 = vrot.lane.b32.xlu1 %v2867_v58, %s2608_s16  ;;  %v744_v29 = vadd.f32 %v2479_v54, %v743_v32  ;;  %v770_v32 = vld [vmem:[%s3467_s5 + $0x20] sm:$0xff] }
 0x1b8   : > { %v760_v34 = vpack.c.bf16 %v744_v29, %v744_v29 }
 0x1ba   : > { %v804_v44 = vunpack.c.l.b16 %v760_v34 }
 0x1bd   : > { %v745_v33 = vpop.f32.mrf.mxu0 }
 0x1be   : > { %v746_v35 = vadd.f32 %v2479_v54, %v745_v33 }
 0x1c0   : > { %v761_v30 = vpack.c.bf16 %v746_v35, %v746_v35  ;;  %v771_v35 = vld [vmem:[%s3467_s5 + $0x28] sm:$0xff] }
 0x1c2   : > { %v805_v36 = vunpack.c.l.b16 %v761_v30 }
 0x1c4   : > { %v2871_v40 = vpack.c.b16 %v805_v36, %v804_v44 }
 0x1c5   : > { %v748_v37 = vpop.f32.mrf.mxu0 }
 0x1c6   : > { %807 = vrot.lane.b32.xlu2 %v2871_v40, %s2608_s16  ;;  %v749_v38 = vadd.f32 %v2479_v54, %v748_v37  ;;  %v772_v37 = vld [vmem:[%s3467_s5 + $0x30] sm:$0xff] }
 0x1c8   : > { %v762_v46 = vpack.c.bf16 %v749_v38, %v749_v38 }
 0x1ca   : > { %v831_v48 = vunpack.c.l.b16 %v762_v46 }
 0x1cd   : > { %v750_v42 = vpop.f32.mrf.mxu0 }
 0x1ce   : > { %v751_v47 = vadd.f32 %v2479_v54, %v750_v42 }
 0x1d0   : > { %v763_v45 = vpack.c.bf16 %v751_v47, %v751_v47  ;;  %v773_v47 = vld [vmem:[%s3467_s5 + $0x38] sm:$0xff] }
 0x1d2   : > { %v832_v49 = vunpack.c.l.b16 %v763_v45 }
 0x1d4   : > { %v2875_v50 = vpack.c.b16 %v832_v49, %v831_v48 }
 0x1d6   : > { %834 = vrot.lane.b32.xlu0 %v2875_v50, %s2608_s16 }
 0x1de   : > { %1009 = vrot.lane.b32.xlu0 %v2871_v40, %s2609_s17 }
 0x1e6   : > { %1096 = vrot.lane.b32.xlu0 %v2867_v58, %s2610_s18 }
 0x220   : > { %v753_v51 = vpop.f32.mrf.mxu0  ;;  %v808_v53 = vpop.permute.xlu2 %807 }
 0x221   : > { %v754_v52 = vadd.f32 %v2479_v54, %v753_v51  ;;  %v813_v61 = vsel %vm781_vm11, %v808_v53, 0 }
 0x223   : > { %v764_v56 = vpack.c.bf16 %v754_v52, %v754_v52 }
 0x225   : > { %v858_v62 = vunpack.c.l.b16 %v764_v56 }
 0x228   : > { %v755_v55 = vpop.f32.mrf.mxu0  ;;  %v780_v57 = vpop.permute.xlu1 %779 }
 0x229   : > { %v756_v43 = vadd.f32 %v2479_v54, %v755_v55  ;;  %v786_v59 = vsel %vm781_vm11, %v780_v57, 0  ;;  %v768_v54 = vld [vmem:[%s3467_s5 + $0x10] sm:$0xff] }
 0x22a   : > { %795 = vmatpush.bf16.xpose.msra.mxu3 %v786_v59 }
 0x22b   : > { %v765_v60 = vpack.c.bf16 %v756_v43, %v756_v43 }
 0x22d   : > { %v859_v63 = vunpack.c.l.b16 %v765_v60 }
 0x22f   : > { %v2885_v0 = vpack.c.b16 %v859_v63, %v858_v62 }
 0x231   : > { %861 = vrot.lane.b32.xlu2 %v2885_v0, %s2608_s16  ;;  %2337 = vmatmul.msk.bf16.vlgmr.msra.gmra.mxu3 %vm781_vm11, %v2867_v58  ;;  %s2613_s16 = smov 16  }
 0x232   : > { %822 = vmatpush.bf16.xpose.msrb.mxu3 %v813_v61 }
 0x239   : > { %1098 = vrot.lane.b32.xlu2 %v2867_v58, %s2611_s19 }
 0x241   : > { %2338 = vmatmul.msk.bf16.vlgmr.msrb.gmra.mxu3 %vm781_vm11, %v2871_v40 }
 0x248   : > { %v835_v1 = vpop.permute.xlu0 %834 }
 0x249   : > { %v840_v2 = vsel %vm781_vm11, %v835_v1, 0 }
 0x24a   : > { %849 = vmatpush.bf16.xpose.msra.mxu3 %v840_v2 }
 0x250   : > { %v1010_v6 = vpop.permute.xlu0 %1009 }
 0x251   : > { %2339 = vmatmul.msk.bf16.vlgmr.msra.gmra.mxu3 %vm781_vm11, %v2875_v50 }
 0x252   : > { %1022 = vmatpush.bf16.msrb.mxu3 %v1010_v6 }
 0x258   : > { %v2942_v60 = vpop.permute.xlu0 %1096 }
 0x28b   : > { %v862_v7 = vpop.permute.xlu2 %861 }
 0x28c   : > { %v867_v41 = vsel %vm781_vm11, %v862_v7, 0 }
 0x28d   : > { %876 = vmatpush.bf16.xpose.msra.mxu1 %v867_v41 }
 0x293   : > { %v1099_v8 = vpop.permute.xlu2 %1098 }
 0x294   : > { %v1104_v12 = vsel %vm781_vm11, %v1099_v8, 0  ;;  %2340 = vmatmul.msk.bf16.vlgmr.msra.gmra.mxu1 %vm781_vm11, %v2885_v0 }
 0x295   : > { %1113 = vmatpush.bf16.xpose.msra.mxu3 %v1104_v12 }
 0x2b4   : > { %v797_v14 = vpop.f32.mrf.mxu3 }
 0x2b5   : > { %v798_v17 = vadd.f32 %v797_v14, %v766_v13 }
 0x2b7   : > { %v883_v18 = vsel %vm781_vm11, %v798_v17, -inf }
 0x2b8   : > { %884 = vmax.xlane.f32.xlu2 %v883_v18 }
 0x2bc   : > { %v799_v21 = vpop.f32.mrf.mxu3 }
 0x2bd   : > { %v800_v22 = vadd.f32 %v799_v21, %v767_v20 }
 0x2bf   : > { %v886_v15 = vsel %vm781_vm11, %v800_v22, -inf }
 0x2c0   : > { %887 = vmax.xlane.f32.xlu1 %v886_v15 }
 0x2c4   : > { %v824_v23 = vpop.f32.mrf.mxu3 }
 0x2c5   : > { %v825_v25 = vadd.f32 %v824_v23, %v768_v54 }
 0x2c7   : > { %v889_v26 = vsel %vm781_vm11, %v825_v25, -inf }
 0x2c8   : > { %890 = vmax.xlane.f32.xlu1 %v889_v26 }
 0x2cc   : > { %v826_v27 = vpop.f32.mrf.mxu3 }
 0x2cd   : > { %v827_v28 = vadd.f32 %v826_v27, %v769_v19 }
 0x2cf   : > { %v892_v31 = vsel %vm781_vm11, %v827_v28, -inf }
 0x2d0   : > { %893 = vmax.xlane.f32.xlu0 %v892_v31 }
 0x2d4   : > { %v851_v29 = vpop.f32.mrf.mxu3 }
 0x2d5   : > { %v852_v33 = vadd.f32 %v851_v29, %v770_v32 }
 0x2d7   : > { %v895_v34 = vsel %vm781_vm11, %v852_v33, -inf }
 0x2d8   : > { %896 = vmax.xlane.f32.xlu0 %v895_v34 }
 0x2dc   : > { %v853_v30 = vpop.f32.mrf.mxu3 }
 0x2dd   : > { %v854_v44 = vadd.f32 %v853_v30, %v771_v35 }
 0x2df   : > { %v898_v36 = vsel %vm781_vm11, %v854_v44, -inf }
 0x2e0   : > { %899 = vmax.xlane.f32.xlu2 %v898_v36 }
 0x2e1   : > { %984 = vrot.lane.b32.xlu1 %v2867_v58, %s2609_s17 }
 0x311   : > { %v878_v38 = vpop.f32.mrf.mxu1 }
 0x312   : > { %v879_v42 = vadd.f32 %v878_v38, %v772_v37 }
 0x314   : > { %v901_v46 = vsel %vm781_vm11, %v879_v42, -inf }
 0x315   : > { %902 = vmax.xlane.f32.xlu1 %v901_v46 }
 0x319   : > { %v880_v45 = vpop.f32.mrf.mxu1 }
 0x31a   : > { %v881_v48 = vadd.f32 %v880_v45, %v773_v47 }
 0x31c   : > { %v904_v49 = vsel %vm781_vm11, %v881_v48, -inf }
 0x31d   : > { %905 = vmax.xlane.f32.xlu0 %v904_v49 }
 0x32b   : > { %v885_v51 = vpop.xlane.xlu2 %884 }
 0x32c   : > { %v907_v52 = vsub.f32 %v798_v17, %v885_v51 }
 0x32e   : > { %v915_v53 = vmul.f32 1.442695, %v907_v52 }
 0x330   : > { %2503 = vpow2.f32 %v915_v53 }
 0x331   : > { %1059 = vrot.lane.b32.xlu0 %v2885_v0, %s2609_s17 }
 0x333   : > { %v888_v55 = vpop.xlane.xlu1 %887 }
 0x334   : > { %v908_v56 = vsub.f32 %v800_v22, %v888_v55 }
 0x336   : > { %v2938_v57 = vpop.eup %2503  ;;  %v917_v43 = vmul.f32 1.442695, %v908_v56 }
 0x337   : > { %v931_v59 = vsel %vm781_vm11, %v2938_v57, 0.0 }
 0x338   : > { %2505 = vpow2.f32 %v917_v43  ;;  %932 = vadd.xlane.f32.xlu2 %v931_v59 }
 0x33b   : > { %v891_v61 = vpop.xlane.xlu1 %890 }
 0x33c   : > { %v909_v62 = vsub.f32 %v825_v25, %v891_v61 }
 0x33e   : > { %v2506_v63 = vpop.eup %2505  ;;  %v919_v1 = vmul.f32 1.442695, %v909_v62 }
 0x33f   : > { %v934_v2 = vsel %vm781_vm11, %v2506_v63, 0.0 }
 0x340   : > { %2507 = vpow2.f32 %v919_v1  ;;  %935 = vadd.xlane.f32.xlu1 %v934_v2 }
 0x343   : > { %v894_v6 = vpop.xlane.xlu0 %893 }
 0x344   : > { %v910_v7 = vsub.f32 %v827_v28, %v894_v6 }
 0x346   : > { %v2945_v41 = vpop.eup %2507  ;;  %v921_v8 = vmul.f32 1.442695, %v910_v7 }
 0x347   : > { %v937_v12 = vsel %vm781_vm11, %v2945_v41, 0.0 }
 0x348   : > { %2509 = vpow2.f32 %v921_v8  ;;  %938 = vadd.xlane.f32.xlu2 %v937_v12 }
 0x34b   : > { %v897_v13 = vpop.xlane.xlu0 %896 }
 0x34c   : > { %v911_v14 = vsub.f32 %v852_v33, %v897_v13 }
 0x34e   : > { %v2949_v17 = vpop.eup %2509  ;;  %v923_v18 = vmul.f32 1.442695, %v911_v14 }
 0x34f   : > { %v940_v20 = vsel %vm781_vm11, %v2949_v17, 0.0 }
 0x350   : > { %2511 = vpow2.f32 %v923_v18  ;;  %941 = vadd.xlane.f32.xlu1 %v940_v20 }
 0x353   : > { %v985_v21 = vpop.permute.xlu1 %984  ;;  %v900_v22 = vpop.xlane.xlu2 %899 }
 0x354   : > { %v912_v15 = vsub.f32 %v854_v44, %v900_v22  ;;  %997 = vmatpush.bf16.msra.mxu2 %v985_v21 }
 0x356   : > { %v2953_v54 = vpop.eup %2511  ;;  %v925_v23 = vmul.f32 1.442695, %v912_v15 }
 0x357   : > { %v943_v25 = vsel %vm781_vm11, %v2953_v54, 0.0 }
 0x358   : > { %2513 = vpow2.f32 %v925_v23  ;;  %944 = vadd.xlane.f32.xlu1 %v943_v25 }
 0x35e   : > { %v2957_v26 = vpop.eup %2513 }
 0x35f   : > { %v946_v19 = vsel %vm781_vm11, %v2957_v26, 0.0 }
 0x360   : > { %1034 = vrot.lane.b32.xlu2 %v2875_v50, %s2609_s17  ;;  %947 = vadd.xlane.f32.xlu0 %v946_v19 }
 0x374   : > { %1146 = vrot.lane.b32.xlu0 %v2875_v50, %s2611_s19 }
 0x37c   : > { %1120 = vrot.lane.b32.xlu0 %v2871_v40, %s2610_s18 }
 0x384   : > { %1170 = vrot.lane.b32.xlu0 %v2885_v0, %s2611_s19 }
 0x388   : > { %v903_v27 = vpop.xlane.xlu1 %902 }
 0x389   : > { %v913_v28 = vsub.f32 %v879_v42, %v903_v27 }
 0x38b   : > { %v927_v31 = vmul.f32 1.442695, %v913_v28 }
 0x38d   : > { %2515 = vpow2.f32 %v927_v31 }
 0x390   : > { %v906_v32 = vpop.xlane.xlu0 %905 }
 0x391   : > { %v914_v29 = vsub.f32 %v881_v48, %v906_v32 }
 0x393   : > { %v2969_v33 = vpop.eup %2515  ;;  %v929_v34 = vmul.f32 1.442695, %v914_v29 }
 0x394   : > { %v949_v35 = vsel %vm781_vm11, %v2969_v33, 0.0 }
 0x395   : > { %2517 = vpow2.f32 %v929_v34  ;;  %950 = vadd.xlane.f32.xlu2 %v949_v35 }
 0x39b   : > { %v2973_v30 = vpop.eup %2517 }
 0x39c   : > { %v952_v44 = vsel %vm781_vm11, %v2973_v30, 0.0 }
 0x39d   : > { %953 = vadd.xlane.f32.xlu1 %v952_v44 }
 0x3a3   : > { %v1060_v36 = vpop.permute.xlu0 %1059 }
 0x3a4   : > { %1072 = vmatpush.bf16.msrb.mxu2 %v1060_v36 }
 0x3ab   : > { %v933_v37 = vpop.xlane.xlu2 %932 }
 0x3ac   : > { %2519 = vrcp.f32 %v933_v37 }
 0x3ad   : > { %1144 = vrot.lane.b32.xlu2 %v2875_v50, %s2610_s18 }
 0x3b2   : > { %v2520_v42 = vpop.eup %2519 }
 0x3b3   : > { %v936_v38 = vpop.xlane.xlu1 %935  ;;  %v963_v46 = vmul.f32 %v2520_v42, %v2938_v57 }
 0x3b4   : > { %2521 = vrcp.f32 %v936_v38 }
 0x3b5   : > { %1168 = vrot.lane.b32.xlu2 %v2885_v0, %s2610_s18  ;;  %v971_v49 = vpack.c.bf16 %v963_v46, %v963_v46 }
 0x3b6   : > { %1122 = vrot.lane.b32.xlu1 %v2871_v40, %s2611_s19  ;;  %s3434_s19 = scalar_lea.vmem %s3476_s14, %s2427_s15 }
 0x3b7   : > { %v981_v52 = vunpack.c.l.b16 %v971_v49 }
 0x3ba   : > { %v2522_v47 = vpop.eup %2521 }
 0x3bb   : > { %v939_v45 = vpop.xlane.xlu2 %938  ;;  %v964_v48 = vmul.f32 %v2522_v47, %v2506_v63 }
 0x3bc   : > { %2523 = vrcp.f32 %v939_v45 }
 0x3bd   : > { %v972_v51 = vpack.c.bf16 %v964_v48, %v964_v48 }
 0x3bf   : > { %v982_v53 = vunpack.c.l.b16 %v972_v51  ;;  %v2345_v51 = vld [vmem:[%s3467_s5 + $0x40] sm:$0xff] }
 0x3c1   : > { %v983_v55 = vpack.c.b16 %v982_v53, %v981_v52 }
 0x3c2   : > { %v2524_v59 = vpop.eup %2523 }
 0x3c3   : > { %2341 = vmatmul.msk.bf16.vlgmr.msra.gmra.mxu2 %vm781_vm11, %v983_v55  ;;  %v1035_v56 = vpop.permute.xlu2 %1034  ;;  %v942_v43 = vpop.xlane.xlu1 %941  ;;  %v965_v61 = vmul.f32 %v2524_v59, %v2945_v41 }
 0x3c4   : > { %2525 = vrcp.f32 %v942_v43  ;;  %1047 = vmatpush.bf16.msrb.mxu1 %v1035_v56  ;;  %v2346_v43 = vld [vmem:[%s3467_s5 + $0x48] sm:$0xff] }
 0x3c5   : > { %v973_v57 = vpack.c.bf16 %v965_v61, %v965_v61 }
 0x3c7   : > { %v1006_v6 = vunpack.c.l.b16 %v973_v57 }
 0x3ca   : > { %v2526_v62 = vpop.eup %2525 }
 0x3cb   : > { %v966_v1 = vmul.f32 %v2526_v62, %v2949_v17  ;;  %v945_v63 = vpop.xlane.xlu1 %944 }
 0x3cc   : > { %2527 = vrcp.f32 %v945_v63 }
 0x3cd   : > { %v974_v2 = vpack.c.bf16 %v966_v1, %v966_v1  ;;  %v2352_v1 = vld [vmem:[%s3467_s5 + $0x78] sm:$0xff] }
 0x3cf   : > { %v1007_v7 = vunpack.c.l.b16 %v974_v2 }
 0x3d1   : > { %v1008_v8 = vpack.c.b16 %v1007_v7, %v1006_v6 }
 0x3d2   : > { %v2528_v13 = vpop.eup %2527 }
 0x3d3   : > { %2342 = vmatmul.msk.bf16.vlgmr.msrb.gmra.mxu3 %vm781_vm11, %v1008_v8  ;;  %v948_v12 = vpop.xlane.xlu0 %947  ;;  %v967_v14 = vmul.f32 %v2528_v13, %v2953_v54 }
 0x3d4   : > { %2529 = vrcp.f32 %v948_v12  ;;  %v2347_v12 = vld [vmem:[%s3467_s5 + $0x50] sm:$0xff] }
 0x3d5   : > { %v975_v20 = vpack.c.bf16 %v967_v14, %v967_v14 }
 0x3d7   : > { %v1031_v22 = vunpack.c.l.b16 %v975_v20  ;;  %v2349_v20 = vld [vmem:[%s3467_s5 + $0x60] sm:$0xff] }
 0x3da   : > { %v2530_v18 = vpop.eup %2529 }
 0x3db   : > { %v968_v41 = vmul.f32 %v2530_v18, %v2957_v26 }
 0x3dd   : > { %v976_v21 = vpack.c.bf16 %v968_v41, %v968_v41 }
 0x3df   : > { %v1032_v17 = vunpack.c.l.b16 %v976_v21 }
 0x3e1   : > { %v1033_v15 = vpack.c.b16 %v1032_v17, %v1031_v22  ;;  %v2348_v22 = vld [vmem:[%s3467_s5 + $0x58] sm:$0xff] }
 0x3e3   : > { %2343 = vmatmul.msk.bf16.vlgmr.msrb.gmra.mxu1 %vm781_vm11, %v1033_v15  ;;  %2353 = vmatmul.msk.bf16.vlgmr.msra.gmra.mxu3 %vm781_vm11, %v2942_v60 }
 0x3e6   : > { %v1147_v23 = vpop.permute.xlu0 %1146 }
 0x3e7   : > { %v1152_v25 = vsel %vm781_vm11, %v1147_v23, 0 }
 0x3e8   : > { %1161 = vmatpush.bf16.xpose.msra.mxu2 %v1152_v25 }
 0x3ee   : > { %v1121_v19 = vpop.permute.xlu0 %1120 }
 0x3f6   : > { %v1171_v27 = vpop.permute.xlu0 %1170 }
 0x3f7   : > { %v1176_v54 = vsel %vm781_vm11, %v1171_v27, 0  ;;  %v2351_v27 = vld [vmem:[%s3467_s5 + $0x70] sm:$0xff] }
 0x3f8   : > { %1185 = vmatpush.bf16.xpose.msrb.mxu3 %v1176_v54 }
 0x408   : > { %v951_v28 = vpop.xlane.xlu2 %950 }
 0x409   : > { %2531 = vrcp.f32 %v951_v28 }
 0x40f   : > { %v2532_v32 = vpop.eup %2531 }
 0x410   : > { %v1145_v26 = vpop.permute.xlu2 %1144  ;;  %v954_v31 = vpop.xlane.xlu1 %953  ;;  %v969_v29 = vmul.f32 %v2532_v32, %v2969_v33 }
 0x411   : > { %2533 = vrcp.f32 %v954_v31 }
 0x412   : > { %v977_v35 = vpack.c.bf16 %v969_v29, %v969_v29 }
 0x414   : > { %v1056_v37 = vunpack.c.l.b16 %v977_v35 }
 0x417   : > { %v2534_v34 = vpop.eup %2533 }
 0x418   : > { %v970_v60 = vmul.f32 %v2534_v34, %v2973_v30  ;;  %v1169_v44 = vpop.permute.xlu2 %1168 }
 0x419   : > { %2356 = vmatmul.msk.bf16.vlgmr.msrb.gmra.mxu3 %vm781_vm11, %v1169_v44 }
 0x41a   : > { %v978_v36 = vpack.c.bf16 %v970_v60, %v970_v60 }
 0x41c   : > { %v1057_v38 = vunpack.c.l.b16 %v978_v36 }
 0x41e   : > { %v1058_v42 = vpack.c.b16 %v1057_v38, %v1056_v37 }
 0x420   : > { %2344 = vmatmul.msk.bf16.vlgmr.msrb.gmra.mxu2 %vm781_vm11, %v1058_v42 }
 0x428   : > { %v1123_v46 = vpop.permute.xlu1 %1122 }
 0x429   : > { %v1128_v47 = vsel %vm781_vm11, %v1123_v46, 0 }
 0x42a   : > { %1137 = vmatpush.bf16.xpose.msra.mxu1 %v1128_v47 }
 0x430   : > { %2355 = vmatmul.msk.bf16.vlgmr.msra.gmra.mxu2 %vm781_vm11, %v1145_v26 }
 0x431   : > { %2354 = vmatmul.msk.bf16.vlgmr.msra.gmra.mxu1 %vm781_vm11, %v1121_v19  ;;  %v2350_v19 = vld [vmem:[%s3467_s5 + $0x68] sm:$0xff] }
 0x446   : > { %v999_v33 = vpop.f32.mrf.mxu2 }
 0x447   : > { %1079 = vst.msk [vmem:[#allocation2] sm:$0xff] %vm781_vm11, %v999_v33 }
 0x44e   : > { %v1001_v30 = vpop.f32.mrf.mxu2 }
 0x44f   : > { %1080 = vst.msk [vmem:[#allocation2 + $0x8] sm:$0xff] %vm781_vm11, %v1001_v30 }
 0x456   : > { %v1024_v45 = vpop.f32.mrf.mxu3 }
 0x457   : > { %1081 = vst.msk [vmem:[#allocation2 + $0x10] sm:$0xff] %vm781_vm11, %v1024_v45 }
 0x45e   : > { %v1026_v48 = vpop.f32.mrf.mxu3 }
 0x45f   : > { %1082 = vst.msk [vmem:[#allocation2 + $0x18] sm:$0xff] %vm781_vm11, %v1026_v48 }
 0x460   : > { %v1049_v49 = vpop.f32.mrf.mxu1 }
 0x461   : > { %1083 = vst.msk [vmem:[#allocation2 + $0x20] sm:$0xff] %vm781_vm11, %v1049_v49 }
 0x466   : > { %v1115_v52 = vpop.f32.mrf.mxu3 }
 0x467   : > { %v1116_v53 = vadd.f32 %v2345_v51, %v1115_v52 }
 0x468   : > { %v1051_v55 = vpop.f32.mrf.mxu1 }
 0x469   : > { %1084 = vst.msk [vmem:[#allocation2 + $0x28] sm:$0xff] %vm781_vm11, %v1051_v55  ;;  %v1192_v56 = vsel %vm781_vm11, %v1116_v53, -inf }
 0x46a   : > { %1193 = vmax.xlane.f32.xlu1 %v1192_v56 }
 0x46e   : > { %v1117_v59 = vpop.f32.mrf.mxu3 }
 0x46f   : > { %v1118_v61 = vadd.f32 %v2346_v43, %v1117_v59 }
 0x471   : > { %v1195_v62 = vsel %vm781_vm11, %v1118_v61, -inf }
 0x472   : > { %1196 = vmax.xlane.f32.xlu0 %v1195_v62 }
 0x49c   : > { %v1187_v57 = vpop.f32.mrf.mxu3 }
 0x49d   : > { %v1188_v26 = vadd.f32 %v2351_v27, %v1187_v57 }
 0x49f   : > { %v1210_v32 = vsel %vm781_vm11, %v1188_v26, -inf }
 0x4a3   : > { %v1074_v63 = vpop.f32.mrf.mxu2 }
 0x4a4   : > { %1085 = vst.msk [vmem:[#allocation2 + $0x30] sm:$0xff] %vm781_vm11, %v1074_v63  ;;  %v1189_v2 = vpop.f32.mrf.mxu3 }
 0x4a5   : > { %v1190_v6 = vadd.f32 %v2352_v1, %v1189_v2 }
 0x4a7   : > { %v1213_v7 = vsel %vm781_vm11, %v1190_v6, -inf }
 0x4a8   : > { %1214 = vmax.xlane.f32.xlu0 %v1213_v7 }
 0x4ab   : > { %v1076_v8 = vpop.f32.mrf.mxu2 }
 0x4ac   : > { %1086 = vst.msk [vmem:[#allocation2 + $0x38] sm:$0xff] %vm781_vm11, %v1076_v8 }
 0x4ae   : > { %v1139_v13 = vpop.f32.mrf.mxu1 }
 0x4af   : > { %v1140_v14 = vadd.f32 %v2347_v12, %v1139_v13 }
 0x4b1   : > { %v1198_v18 = vsel %vm781_vm11, %v1140_v14, -inf }
 0x4b2   : > { %1199 = vmax.xlane.f32.xlu2 %v1198_v18 }
 0x4b3   : > { %v1163_v41 = vpop.f32.mrf.mxu2 }
 0x4b4   : > { %v1164_v21 = vadd.f32 %v2349_v20, %v1163_v41 }
 0x4b6   : > { %v1141_v17 = vpop.f32.mrf.mxu1  ;;  %v1204_v15 = vsel %vm781_vm11, %v1164_v21, -inf }
 0x4b7   : > { %v1142_v23 = vadd.f32 %v2348_v22, %v1141_v17  ;;  %1205 = vmax.xlane.f32.xlu0 %v1204_v15 }
 0x4b9   : > { %v1201_v25 = vsel %vm781_vm11, %v1142_v23, -inf }
 0x4ba   : > { %1202 = vmax.xlane.f32.xlu1 %v1201_v25 }
 0x4bb   : > { %v1165_v54 = vpop.f32.mrf.mxu2 }
 0x4bc   : > { %v1166_v28 = vadd.f32 %v2350_v19, %v1165_v54 }
 0x4be   : > { %v1207_v31 = vsel %vm781_vm11, %v1166_v28, -inf }
 0x4bf   : > { %1208 = vmax.xlane.f32.xlu2 %v1207_v31 }
 0x4c2   : > { %1211 = vmax.xlane.f32.xlu1 %v1210_v32 }
 0x4cb   : > { %1293 = vrot.lane.b32.xlu0 %v2867_v58, %s2612_s26 }
 0x4d3   : > { %1343 = vrot.lane.b32.xlu0 %v2875_v50, %s2612_s26 }
 0x4dd   : > { %v1194_v29 = vpop.xlane.xlu1 %1193 }
 0x4de   : > { %v1216_v34 = vsub.f32 %v1116_v53, %v1194_v29 }
 0x4e0   : > { %v1224_v35 = vmul.f32 1.442695, %v1216_v34 }
 0x4e2   : > { %2535 = vpow2.f32 %v1224_v35 }
 0x4e5   : > { %v1197_v60 = vpop.xlane.xlu0 %1196 }
 0x4e6   : > { %v1217_v44 = vsub.f32 %v1118_v61, %v1197_v60 }
 0x4e8   : > { %v2536_v36 = vpop.eup %2535  ;;  %v1226_v37 = vmul.f32 1.442695, %v1217_v44 }
 0x4e9   : > { %v1240_v38 = vsel %vm781_vm11, %v2536_v36, 0.0 }
 0x4ea   : > { %2537 = vpow2.f32 %v1226_v37  ;;  %1241 = vadd.xlane.f32.xlu2 %v1240_v38 }
 0x4f0   : > { %v2538_v42 = vpop.eup %2537 }
 0x4f1   : > { %v1243_v46 = vsel %vm781_vm11, %v2538_v42, 0.0 }
 0x4f2   : > { %1244 = vadd.xlane.f32.xlu1 %v1243_v46 }
 0x51b   : > { %v1215_v58 = vpop.xlane.xlu0 %1214 }
 0x51c   : > { %v1223_v47 = vsub.f32 %v1190_v6, %v1215_v58 }
 0x51e   : > { %v1238_v33 = vmul.f32 1.442695, %v1223_v47 }
 0x520   : > { %2539 = vpow2.f32 %v1238_v33 }
 0x525   : > { %v1200_v50 = vpop.xlane.xlu2 %1199 }
 0x526   : > { %v3048_v30 = vpop.eup %2539  ;;  %v1218_v45 = vsub.f32 %v1140_v14, %v1200_v50 }
 0x527   : > { %v1261_v48 = vsel %vm781_vm11, %v3048_v30, 0.0 }
 0x528   : > { %v1228_v49 = vmul.f32 1.442695, %v1218_v45  ;;  %1262 = vadd.xlane.f32.xlu0 %v1261_v48 }
 0x52a   : > { %2541 = vpow2.f32 %v1228_v49  ;;  %v1206_v51 = vpop.xlane.xlu0 %1205 }
 0x52b   : > { %v1220_v52 = vsub.f32 %v1164_v21, %v1206_v51 }
 0x52d   : > { %v1232_v53 = vmul.f32 1.442695, %v1220_v52  ;;  %v1203_v55 = vpop.xlane.xlu1 %1202 }
 0x52e   : > { %v1219_v56 = vsub.f32 %v1142_v23, %v1203_v55 }
 0x52f   : > { %2543 = vpow2.f32 %v1232_v53 }
 0x530   : > { %v2542_v43 = vpop.eup %2541  ;;  %v1230_v59 = vmul.f32 1.442695, %v1219_v56 }
 0x531   : > { %v1246_v61 = vsel %vm781_vm11, %v2542_v43, 0.0 }
 0x532   : > { %2545 = vpow2.f32 %v1230_v59  ;;  %1247 = vadd.xlane.f32.xlu2 %v1246_v61  ;;  %v1209_v62 = vpop.xlane.xlu2 %1208 }
 0x533   : > { %v1221_v6 = vsub.f32 %v1166_v28, %v1209_v62 }
 0x535   : > { %v1212_v57 = vpop.xlane.xlu1 %1211  ;;  %v2544_v1 = vpop.eup %2543  ;;  %v1234_v13 = vmul.f32 1.442695, %v1221_v6 }
 0x536   : > { %v1222_v63 = vsub.f32 %v1188_v26, %v1212_v57  ;;  %v1252_v12 = vsel %vm781_vm11, %v2544_v1, 0.0 }
 0x538   : > { %v2546_v2 = vpop.eup %2545  ;;  %v1236_v7 = vmul.f32 1.442695, %v1222_v63 }
 0x539   : > { %v1249_v8 = vsel %vm781_vm11, %v2546_v2, 0.0 }
 0x53a   : > { %2547 = vpow2.f32 %v1236_v7  ;;  %1250 = vadd.xlane.f32.xlu1 %v1249_v8  ;;  %1253 = vadd.xlane.f32.xlu2 %v1252_v12  ;;  %v2432_v12 = vld [vmem:[%s3468_s6 + $0x8] sm:$0xff] }
 0x53b   : > { %2549 = vpow2.f32 %v1234_v13  ;;  %1475 = vmatpush.bf16.msrb.mxu0 %v2432_v12 }
 0x53d   : > { %v1294_v14 = vpop.permute.xlu0 %1293 }
 0x53e   : > { %1306 = vmatpush.bf16.msra.mxu3 %v1294_v14  ;;  %v2431_v14 = vld [vmem:[%s3468_s6] sm:$0xff] }
 0x53f   : > { %1476 = vmatpush.bf16.msrb.mxu0 %v2431_v14 }
 0x540   : > { %v2548_v18 = vpop.eup %2547 }
 0x541   : > { %v1258_v20 = vsel %vm781_vm11, %v2548_v18, 0.0  ;;  %v2550_v21 = vpop.eup %2549 }
 0x542   : > { %1259 = vadd.xlane.f32.xlu1 %v1258_v20  ;;  %v1255_v22 = vsel %vm781_vm11, %v2550_v21, 0.0 }
 0x545   : > { %v1344_v41 = vpop.permute.xlu0 %1343 }
 0x546   : > { %1356 = vmatpush.bf16.msrb.mxu2 %v1344_v41 }
 0x54a   : > { %1256 = vadd.xlane.f32.xlu1 %v1255_v22 }
 0x552   : > { %1318 = vrot.lane.b32.xlu2 %v2871_v40, %s2612_s26 }
 0x55d   : > { %v1242_v17 = vpop.xlane.xlu2 %1241 }
 0x55e   : > { %2551 = vrcp.f32 %v1242_v17 }
 0x563   : > { %1368 = vrot.lane.b32.xlu1 %v2885_v0, %s2612_s26 }
 0x564   : > { %v2552_v23 = vpop.eup %2551 }
 0x565   : > { %v1245_v15 = vpop.xlane.xlu1 %1244  ;;  %v1272_v25 = vmul.f32 %v2552_v23, %v2536_v36 }
 0x566   : > { %2553 = vrcp.f32 %v1245_v15 }
 0x567   : > { %v1280_v27 = vpack.c.bf16 %v1272_v25, %v1272_v25 }
 0x569   : > { %v1290_v26 = vunpack.c.l.b16 %v1280_v27 }
 0x56c   : > { %v2554_v19 = vpop.eup %2553 }
 0x56d   : > { %v1273_v54 = vmul.f32 %v2554_v19, %v2538_v42 }
 0x56f   : > { %v1281_v28 = vpack.c.bf16 %v1273_v54, %v1273_v54 }
 0x571   : > { %v1291_v31 = vunpack.c.l.b16 %v1281_v28 }
 0x573   : > { %v1292_v32 = vpack.c.b16 %v1291_v31, %v1290_v26 }
 0x575   : > { %2357 = vmatmul.msk.bf16.vlgmr.msra.gmra.mxu3 %vm781_vm11, %v1292_v32 }
 0x59b   : > { %v1263_v45 = vpop.xlane.xlu0 %1262 }
 0x5a5   : > { %v1248_v29 = vpop.xlane.xlu2 %1247 }
 0x5a6   : > { %2555 = vrcp.f32 %v1248_v29 }
 0x5ac   : > { %v2556_v35 = vpop.eup %2555 }
 0x5ad   : > { %v1251_v40 = vpop.xlane.xlu1 %1250  ;;  %v1254_v34 = vpop.xlane.xlu2 %1253  ;;  %v1274_v0 = vmul.f32 %v2556_v35, %v2542_v43 }
 0x5ae   : > { %2557 = vrcp.f32 %v1251_v40 }
 0x5af   : > { %v1282_v44 = vpack.c.bf16 %v1274_v0, %v1274_v0  ;;  %2559 = vrcp.f32 %v1254_v34 }
 0x5b1   : > { %v1315_v46 = vunpack.c.l.b16 %v1282_v44 }
 0x5b4   : > { %v2558_v60 = vpop.eup %2557 }
 0x5b5   : > { %v1275_v37 = vmul.f32 %v2558_v60, %v2546_v2  ;;  %v1260_v36 = vpop.xlane.xlu1 %1259  ;;  %v1319_v38 = vpop.permute.xlu2 %1318 }
 0x5b6   : > { %1331 = vmatpush.bf16.msrb.mxu1 %v1319_v38  ;;  %v2560_v50 = vpop.eup %2559 }
 0x5b7   : > { %v1283_v42 = vpack.c.bf16 %v1275_v37, %v1275_v37  ;;  %v1276_v48 = vmul.f32 %v2560_v50, %v2544_v1 }
 0x5b9   : > { %v1316_v58 = vunpack.c.l.b16 %v1283_v42  ;;  %v1284_v51 = vpack.c.bf16 %v1276_v48, %v1276_v48  ;;  %v2480_v42 = vld [vmem:[%s3469_s7] ss:$0 sm:$0xff] }
 0x5bb   : > { %v1317_v47 = vpack.c.b16 %v1316_v58, %v1315_v46  ;;  %v1340_v56 = vunpack.c.l.b16 %v1284_v51 }
 0x5bd   : > { %v1257_v33 = vpop.xlane.xlu1 %1256  ;;  %2358 = vmatmul.msk.bf16.vlgmr.msrb.gmra.mxu1 %vm781_vm11, %v1317_v47 }
 0x5be   : > { %2561 = vrcp.f32 %v1257_v33 }
 0x5bf   : > { %2563 = vrcp.f32 %v1260_v36 }
 0x5c0   : > { %2565 = vrcp.f32 %v1263_v45 }
 0x5c4   : > { %v2562_v49 = vpop.eup %2561 }
 0x5c5   : > { %v1277_v52 = vmul.f32 %v2562_v49, %v2550_v21  ;;  %v2564_v55 = vpop.eup %2563 }
 0x5c6   : > { %v2566_v59 = vpop.eup %2565  ;;  %v1278_v61 = vmul.f32 %v2564_v55, %v2548_v18 }
 0x5c7   : > { %v1285_v53 = vpack.c.bf16 %v1277_v52, %v1277_v52  ;;  %v1279_v57 = vmul.f32 %v2566_v59, %v3048_v30 }
 0x5c8   : > { %v1286_v63 = vpack.c.bf16 %v1278_v61, %v1278_v61 }
 0x5c9   : > { %v1341_v43 = vunpack.c.l.b16 %v1285_v53  ;;  %v1287_v2 = vpack.c.bf16 %v1279_v57, %v1279_v57 }
 0x5ca   : > { %v1365_v6 = vunpack.c.l.b16 %v1286_v63 }
 0x5cb   : > { %v1342_v62 = vpack.c.b16 %v1341_v43, %v1340_v56  ;;  %v1366_v1 = vunpack.c.l.b16 %v1287_v2 }
 0x5cd   : > { %2359 = vmatmul.msk.bf16.vlgmr.msrb.gmra.mxu2 %vm781_vm11, %v1342_v62  ;;  %v1367_v8 = vpack.c.b16 %v1366_v1, %v1365_v6 }
 0x5d5   : > { %v1369_v7 = vpop.permute.xlu1 %1368 }
 0x5d6   : > { %1381 = vmatpush.bf16.msrb.mxu3 %v1369_v7 }
 0x5d9   : > { %2360 = vmatmul.msk.bf16.vlgmr.msrb.gmra.mxu3 %vm781_vm11, %v1367_v8 }
 0x5f8   : > { %v1308_v13 = vpop.f32.mrf.mxu3 }
 0x5f9   : > { %1396 = vrot.lane.b32.xlu2 %v1308_v13, %s2613_s16 }
 0x600   : > { %v1310_v30 = vpop.f32.mrf.mxu3 }
 0x601   : > { %1398 = vrot.lane.b32.xlu2 %v1310_v30, %s2613_s16 }
 0x63a   : > { %v1333_v18 = vpop.f32.mrf.mxu1 }
 0x63b   : > { %1400 = vrot.lane.b32.xlu1 %v1333_v18, %s2613_s16 }
 0x642   : > { %v1335_v20 = vpop.f32.mrf.mxu1 }
 0x643   : > { %1402 = vrot.lane.b32.xlu2 %v1335_v20, %s2613_s16 }
 0x650   : > { %v1358_v41 = vpop.f32.mrf.mxu2 }
 0x651   : > { %1404 = vrot.lane.b32.xlu1 %v1358_v41, %s2613_s16 }
 0x653   : > { %v1397_v21 = vpop.permute.xlu2 %1396 }
 0x654   : > { %1421 = vst.msk [vmem:[#allocation2] sm:$0xff] %vm1420_vm12, %v1397_v21 }
 0x658   : > { %v1360_v22 = vpop.f32.mrf.mxu2 }
 0x659   : > { %1406 = vrot.lane.b32.xlu2 %v1360_v22, %s2613_s16 }
 0x65b   : > { %v1399_v17 = vpop.permute.xlu2 %1398  ;;  %v1429_v25 = vld [vmem:[#allocation2] sm:$0xff] }
 0x65c   : > { %v1383_v15 = vpop.f32.mrf.mxu3  ;;  %1422 = vst.msk [vmem:[#allocation2 + $0x8] sm:$0xff] %vm1420_vm12, %v1399_v17 }
 0x65d   : > { %1408 = vrot.lane.b32.xlu0 %v1383_v15, %s2613_s16 }
 0x663   : > { %v1430_v19 = vld [vmem:[#allocation2 + $0x8] sm:$0xff] }
 0x664   : > { %v1385_v23 = vpop.f32.mrf.mxu3  ;;  %v1441_v27 = vpack.c.bf16 %v1430_v19, %v1429_v25 }
 0x665   : > { %1410 = vrot.lane.b32.xlu1 %v1385_v23, %s2613_s16 }
 0x666   : > { %2369 = vmatmul.msk.bf16.vlgmr.msrb.gmra.mxu0 %vm487_vm0, %v1441_v27 }
 0x69d   : > { %v1403_v54 = vpop.permute.xlu2 %1402 }
 0x69e   : > { %1424 = vst.msk [vmem:[#allocation2 + $0x18] sm:$0xff] %vm1420_vm12, %v1403_v54 }
 0x6a5   : > { %v1432_v32 = vld [vmem:[#allocation2 + $0x18] sm:$0xff] }
 0x6ad   : > { %v1401_v28 = vpop.permute.xlu1 %1400 }
 0x6ae   : > { %1423 = vst.msk [vmem:[#allocation2 + $0x10] sm:$0xff] %vm1420_vm12, %v1401_v28 }
 0x6b3   : > { %v1407_v26 = vpop.permute.xlu2 %1406 }
 0x6b4   : > { %1426 = vst.msk [vmem:[#allocation2 + $0x28] sm:$0xff] %vm1420_vm12, %v1407_v26 }
 0x6b5   : > { %v1431_v31 = vld [vmem:[#allocation2 + $0x10] sm:$0xff] }
 0x6b6   : > { %v1442_v29 = vpack.c.bf16 %v1432_v32, %v1431_v31 }
 0x6b8   : > { %2370 = vmatmul.msk.bf16.gmra.mxu0 %vm487_vm0, %v1442_v29 }
 0x6bb   : > { %v1434_v35 = vld [vmem:[#allocation2 + $0x28] sm:$0xff] }
 0x6c3   : > { %v1405_v40 = vpop.permute.xlu1 %1404 }
 0x6c4   : > { %1425 = vst.msk [vmem:[#allocation2 + $0x20] sm:$0xff] %vm1420_vm12, %v1405_v40 }
 0x6cb   : > { %v1433_v34 = vld [vmem:[#allocation2 + $0x20] sm:$0xff] }
 0x6cc   : > { %v1443_v0 = vpack.c.bf16 %v1434_v35, %v1433_v34 }
 0x6ce   : > { %2371 = vmatmul.msk.bf16.gmra.mxu0 %vm487_vm0, %v1443_v0 }
 0x6cf   : > { %v1409_v60 = vpop.permute.xlu0 %1408 }
 0x6d0   : > { %1427 = vst.msk [vmem:[#allocation2 + $0x30] sm:$0xff] %vm1420_vm12, %v1409_v60 }
 0x6d7   : > { %v1411_v44 = vpop.permute.xlu1 %1410  ;;  %v1435_v37 = vld [vmem:[#allocation2 + $0x30] sm:$0xff] }
 0x6d8   : > { %1428 = vst.msk [vmem:[#allocation2 + $0x38] sm:$0xff] %vm1420_vm12, %v1411_v44 }
 0x6df   : > { %v1436_v36 = vld [vmem:[#allocation2 + $0x38] sm:$0xff] }
 0x6e0   : > { %v1444_v38 = vpack.c.bf16 %v1436_v36, %v1435_v37 }
 0x6e2   : > { %2372 = vmatmul.msk.bf16.gmra.mxu0 %vm487_vm0, %v1444_v38 }
 0x6e3   : > { %v1478_v46 = vpop.f32.mrf.mxu0 }
 0x6e4   : > { %v1498_v58 = vadd.f32 %v2709_v5, %v1478_v46 }
 0x6e6   : > { %v3088_v47 = vadd.f32 %v2480_v42, %v1498_v58 }
 0x6e8   : > { %v1520_v33 = vsel %vm487_vm0, %v3088_v47, 0.0 }
 0x6e9   : > { %1521 = vadd.xlane.f32.xlu2 %v1520_v33 }
 0x6eb   : > { %v1480_v50 = vpop.f32.mrf.mxu0 }
 0x6ec   : > { %v1499_v45 = vadd.f32 %v2721_v11, %v1480_v50 }
 0x6ee   : > { %v3093_v48 = vadd.f32 %v2480_v42, %v1499_v45 }
 0x6f0   : > { %v1523_v49 = vsel %vm487_vm0, %v3093_v48, 0.0 }
 0x6f1   : > { %1524 = vadd.xlane.f32.xlu1 %v1523_v49 }
 0x735   : > { %v1483_v51 = vpop.f32.mrf.mxu0 }
 0x736   : > { %v1500_v52 = vadd.f32 %v2707_v4, %v1483_v51  ;;  %v2433_v51 = vld [vmem:[%s3472_s10] sm:$0xff] }
 0x738   : > { %v3098_v53 = vadd.f32 %v2480_v42, %v1500_v52 }
 0x73a   : > { %v1526_v5 = vsel %vm487_vm0, %v3098_v53, 0.0 }
 0x73b   : > { %1527 = vadd.xlane.f32.xlu0 %v1526_v5 }
 0x73d   : > { %v1485_v55 = vpop.f32.mrf.mxu0 }
 0x73e   : > { %v1501_v56 = vadd.f32 %v2719_v10, %v1485_v55 }
 0x740   : > { %v3103_v43 = vadd.f32 %v2480_v42, %v1501_v56 }
 0x742   : > { %v1529_v11 = vsel %vm487_vm0, %v3103_v43, 0.0 }
 0x743   : > { %1530 = vadd.xlane.f32.xlu2 %v1529_v11 }
 0x74b   : > { %v1488_v59 = vpop.f32.mrf.mxu0 }
 0x74c   : > { %v1502_v61 = vadd.f32 %v2705_v3, %v1488_v59 }
 0x74e   : > { %v3108_v62 = vadd.f32 %v2480_v42, %v1502_v61 }
 0x750   : > { %v1532_v4 = vsel %vm487_vm0, %v3108_v62, 0.0 }
 0x751   : > { %1533 = vadd.xlane.f32.xlu1 %v1532_v4 }
 0x753   : > { %v1490_v57 = vpop.f32.mrf.mxu0 }
 0x754   : > { %v1503_v63 = vadd.f32 %v2717_v9, %v1490_v57 }
 0x756   : > { %v3113_v2 = vadd.f32 %v2480_v42, %v1503_v63 }
 0x758   : > { %v1535_v10 = vsel %vm487_vm0, %v3113_v2, 0.0 }
 0x759   : > { %1536 = vadd.xlane.f32.xlu2 %v1535_v10 }
 0x75c   : > { %v1522_v6 = vpop.xlane.xlu2 %1521 }
 0x75d   : > { %v1544_v1 = vmul.f32 %v1522_v6, %v2733_v24 }
 0x75f   : > { %v1493_v7 = vpop.f32.mrf.mxu0  ;;  %v3119_v3 = vsub.f32 %v3088_v47, %v1544_v1 }
 0x760   : > { %v1504_v8 = vadd.f32 %v2729_v16, %v1493_v7 }
 0x761   : > { %v1560_v9 = vmul.f32 %v3119_v3, %v3119_v3 }
 0x762   : > { %v3122_v12 = vadd.f32 %v2480_v42, %v1504_v8 }
 0x763   : > { %v1568_v13 = vsel %vm487_vm0, %v1560_v9, 0.0 }
 0x764   : > { %v1538_v30 = vsel %vm487_vm0, %v3122_v12, 0.0  ;;  %1569 = vadd.xlane.f32.xlu1 %v1568_v13  ;;  %v1525_v14 = vpop.xlane.xlu1 %1524 }
 0x765   : > { %1539 = vadd.xlane.f32.xlu0 %v1538_v30  ;;  %v1545_v18 = vmul.f32 %v1525_v14, %v2733_v24 }
 0x767   : > { %v1495_v20 = vpop.f32.mrf.mxu0  ;;  %v3131_v41 = vsub.f32 %v3093_v48, %v1545_v18 }
 0x768   : > { %v1505_v16 = vadd.f32 %v2746_v39, %v1495_v20 }
 0x769   : > { %v1561_v22 = vmul.f32 %v3131_v41, %v3131_v41 }
 0x76a   : > { %v3134_v21 = vadd.f32 %v2480_v42, %v1505_v16  ;;  %v2434_v42 = vld [vmem:[%s3472_s10 + $0x8] sm:$0xff] }
 0x76b   : > { %v1571_v17 = vsel %vm487_vm0, %v1561_v22, 0.0  ;;  %1760 = vmatpush.bf16.msra.mxu1 %v2434_v42  ;;  %v3194_v22 = vld [vmem:[%s3470_s8] ss:$0 sm:$0xff] }
 0x76c   : > { %v1541_v15 = vsel %vm487_vm0, %v3134_v21, 0.0  ;;  %1572 = vadd.xlane.f32.xlu2 %v1571_v17 }
 0x76d   : > { %1542 = vadd.xlane.f32.xlu1 %v1541_v15 }
 0x76f   : > { %1761 = vmatpush.bf16.msra.mxu1 %v2433_v51 }
 0x7ae   : > { %v1528_v23 = vpop.xlane.xlu0 %1527 }
 0x7af   : > { %v1546_v25 = vmul.f32 %v1528_v23, %v2733_v24 }
 0x7b1   : > { %v3143_v19 = vsub.f32 %v3098_v53, %v1546_v25  ;;  %v3200_v25 = vld [vmem:[%s3471_s9] ss:$0 sm:$0xff] }
 0x7b3   : > { %v1562_v39 = vmul.f32 %v3143_v19, %v3143_v19 }
 0x7b5   : > { %v1574_v27 = vsel %vm487_vm0, %v1562_v39, 0.0 }
 0x7b6   : > { %v1531_v54 = vpop.xlane.xlu2 %1530  ;;  %1575 = vadd.xlane.f32.xlu2 %v1574_v27 }
 0x7b7   : > { %v1547_v28 = vmul.f32 %v1531_v54, %v2733_v24 }
 0x7b9   : > { %v3150_v26 = vsub.f32 %v3103_v43, %v1547_v28 }
 0x7bb   : > { %v1563_v31 = vmul.f32 %v3150_v26, %v3150_v26 }
 0x7bd   : > { %v1577_v32 = vsel %vm487_vm0, %v1563_v31, 0.0 }
 0x7be   : > { %1578 = vadd.xlane.f32.xlu0 %v1577_v32 }
 0x7c4   : > { %v1534_v29 = vpop.xlane.xlu1 %1533 }
 0x7c5   : > { %v1548_v40 = vmul.f32 %v1534_v29, %v2733_v24 }
 0x7c7   : > { %v3157_v34 = vsub.f32 %v3108_v62, %v1548_v40 }
 0x7c9   : > { %v1564_v35 = vmul.f32 %v3157_v34, %v3157_v34 }
 0x7cb   : > { %v1580_v0 = vsel %vm487_vm0, %v1564_v35, 0.0 }
 0x7cc   : > { %v1537_v60 = vpop.xlane.xlu2 %1536  ;;  %1581 = vadd.xlane.f32.xlu1 %v1580_v0 }
 0x7cd   : > { %v1549_v44 = vmul.f32 %v1537_v60, %v2733_v24 }
 0x7cf   : > { %v3164_v37 = vsub.f32 %v3113_v2, %v1549_v44 }
 0x7d1   : > { %v1565_v36 = vmul.f32 %v3164_v37, %v3164_v37 }
 0x7d3   : > { %v1583_v38 = vsel %vm487_vm0, %v1565_v36, 0.0 }
 0x7d4   : > { %1584 = vadd.xlane.f32.xlu2 %v1583_v38 }
 0x7d7   : > { %v1570_v46 = vpop.xlane.xlu1 %1569 }
 0x7d8   : > { %v1540_v58 = vpop.xlane.xlu0 %1539  ;;  %v1592_v33 = vmul.f32 %v1570_v46, %v2733_v24 }
 0x7d9   : > { %v1550_v50 = vmul.f32 %v1540_v58, %v2733_v24 }
 0x7da   : > { %v1600_v45 = vadd.f32 1e-05, %v1592_v33 }
 0x7db   : > { %v3175_v49 = vsub.f32 %v3122_v12, %v1550_v50 }
 0x7dc   : > { %2567 = vrsqrt.f32 %v1600_v45  ;;  %vm1614_vm14 = vweird.f32 %v1600_v45 }
 0x7dd   : > { %v1566_v52 = vmul.f32 %v3175_v49, %v3175_v49 }
 0x7df   : > { %v1586_v5 = vsel %vm487_vm0, %v1566_v52, 0.0  ;;  %v1573_v55 = vpop.xlane.xlu2 %1572 }
 0x7e0   : > { %1587 = vadd.xlane.f32.xlu0 %v1586_v5  ;;  %v1543_v56 = vpop.xlane.xlu1 %1542  ;;  %v1593_v11 = vmul.f32 %v1573_v55, %v2733_v24 }
 0x7e1   : > { %v1551_v59 = vmul.f32 %v1543_v56, %v2733_v24 }
 0x7e2   : > { %v2568_v61 = vpop.eup %2567  ;;  %v1601_v4 = vadd.f32 1e-05, %v1593_v11 }
 0x7e3   : > { %v3186_v57 = vsub.f32 %v3134_v21, %v1551_v59  ;;  %v1609_v63 = vmul.f32 %v2568_v61, %v1600_v45  ;;  %vm1615_vm13 = vweird.f32 %v2568_v61 }
 0x7e4   : > { %2569 = vrsqrt.f32 %v1601_v4  ;;  %vm1616_vm15 = vmor %vm1614_vm14, %vm1615_vm13  ;;  %vm1624_vm2 = vweird.f32 %v1601_v4 }
 0x7e5   : > { %v1567_v10 = vmul.f32 %v3186_v57, %v3186_v57  ;;  %v1610_v6 = vmul.f32 %v2568_v61, %v1609_v63 }
 0x7e7   : > { %v1589_v1 = vsel %vm487_vm0, %v1567_v10, 0.0  ;;  %v1611_v7 = vmul.f32 0.5, %v1610_v6 }
 0x7e8   : > { %1590 = vadd.xlane.f32.xlu1 %v1589_v1 }
 0x7e9   : > { %v1612_v8 = vsub.f32 1.5, %v1611_v7 }
 0x7ea   : > { %v2570_v9 = vpop.eup %2569 }
 0x7eb   : > { %v1613_v13 = vmul.f32 %v2568_v61, %v1612_v8  ;;  %v1619_v30 = vmul.f32 %v2570_v9, %v1601_v4  ;;  %vm1625_vm1 = vweird.f32 %v2570_v9 }
 0x7ec   : > { %vm1626_vm3 = vmor %vm1624_vm2, %vm1625_vm1 }
 0x7ed   : > { %v1620_v14 = vmul.f32 %v2570_v9, %v1619_v30  ;;  %v1617_v18 = vsel %vm1616_vm15, %v2568_v61, %v1613_v13 }
 0x7ee   : > { %v1688_v17 = vmul.f32 %v1617_v18, %v3119_v3 }
 0x7ef   : > { %v1621_v20 = vmul.f32 0.5, %v1620_v14 }
 0x7f0   : > { %v1699_v39 = vmul.f32 %v3194_v22, %v1688_v17 }
 0x7f1   : > { %v1622_v16 = vsub.f32 1.5, %v1621_v20 }
 0x7f2   : > { %v1710_v28 = vadd.f32 %v3200_v25, %v1699_v39 }
 0x7f3   : > { %v1623_v15 = vmul.f32 %v2570_v9, %v1622_v16 }
 0x7f5   : > { %v1627_v23 = vsel %vm1626_vm3, %v2570_v9, %v1623_v15 }
 0x7f6   : > { %v1689_v27 = vmul.f32 %v1627_v23, %v3131_v41 }
 0x7f8   : > { %v1700_v54 = vmul.f32 %v3194_v22, %v1689_v27 }
 0x7fa   : > { %v1711_v31 = vadd.f32 %v3200_v25, %v1700_v54 }
 0x7fc   : > { %v1722_v3 = vpack.c.bf16 %v1711_v31, %v1710_v28 }
 0x7fe   : > { %2381 = vmatmul.msk.bf16.vlgmr.msra.gmra.mxu1 %vm487_vm0, %v1722_v3 }
 0x829   : > { %v1576_v32 = vpop.xlane.xlu2 %1575 }
 0x82a   : > { %v1594_v29 = vmul.f32 %v1576_v32, %v2733_v24 }
 0x82c   : > { %v1602_v40 = vadd.f32 1e-05, %v1594_v29 }
 0x82e   : > { %2571 = vrsqrt.f32 %v1602_v40  ;;  %vm1634_vm5 = vweird.f32 %v1602_v40 }
 0x831   : > { %v1579_v35 = vpop.xlane.xlu0 %1578 }
 0x832   : > { %v1595_v0 = vmul.f32 %v1579_v35, %v2733_v24 }
 0x834   : > { %v2572_v60 = vpop.eup %2571  ;;  %v1603_v44 = vadd.f32 1e-05, %v1595_v0 }
 0x835   : > { %v1629_v41 = vmul.f32 %v2572_v60, %v1602_v40  ;;  %vm1635_vm4 = vweird.f32 %v2572_v60 }
 0x836   : > { %2573 = vrsqrt.f32 %v1603_v44  ;;  %vm1636_vm6 = vmor %vm1634_vm5, %vm1635_vm4  ;;  %vm1644_vm8 = vweird.f32 %v1603_v44 }
 0x837   : > { %v1630_v36 = vmul.f32 %v2572_v60, %v1629_v41 }
 0x839   : > { %v1631_v38 = vmul.f32 0.5, %v1630_v36 }
 0x83b   : > { %v1632_v42 = vsub.f32 1.5, %v1631_v38 }
 0x83c   : > { %v2574_v46 = vpop.eup %2573 }
 0x83d   : > { %v1633_v58 = vmul.f32 %v2572_v60, %v1632_v42  ;;  %v1639_v33 = vmul.f32 %v2574_v46, %v1603_v44  ;;  %vm1645_vm7 = vweird.f32 %v2574_v46 }
 0x83e   : > { %vm1646_vm9 = vmor %vm1644_vm8, %vm1645_vm7 }
 0x83f   : > { %v1640_v50 = vmul.f32 %v2574_v46, %v1639_v33  ;;  %v1582_v45 = vpop.xlane.xlu1 %1581  ;;  %v1637_v52 = vsel %vm1636_vm6, %v2572_v60, %v1633_v58 }
 0x840   : > { %v1596_v51 = vmul.f32 %v1582_v45, %v2733_v24  ;;  %v1690_v11 = vmul.f32 %v1637_v52, %v3143_v19 }
 0x841   : > { %v1641_v5 = vmul.f32 0.5, %v1640_v50 }
 0x842   : > { %v1604_v55 = vadd.f32 1e-05, %v1596_v51  ;;  %v1701_v6 = vmul.f32 %v3194_v22, %v1690_v11 }
 0x843   : > { %v1642_v56 = vsub.f32 1.5, %v1641_v5 }
 0x844   : > { %2575 = vrsqrt.f32 %v1604_v55  ;;  %v1712_v19 = vadd.f32 %v3200_v25, %v1701_v6  ;;  %vm1654_vm11 = vweird.f32 %v1604_v55 }
 0x845   : > { %v1643_v59 = vmul.f32 %v2574_v46, %v1642_v56 }
 0x847   : > { %v1647_v61 = vsel %vm1646_vm9, %v2574_v46, %v1643_v59  ;;  %v1585_v4 = vpop.xlane.xlu2 %1584 }
 0x848   : > { %v1691_v63 = vmul.f32 %v1647_v61, %v3150_v26  ;;  %v1597_v10 = vmul.f32 %v1585_v4, %v2733_v24 }
 0x84a   : > { %v2576_v1 = vpop.eup %2575  ;;  %v1605_v7 = vadd.f32 1e-05, %v1597_v10  ;;  %v1702_v8 = vmul.f32 %v3194_v22, %v1691_v63 }
 0x84b   : > { %v1649_v9 = vmul.f32 %v2576_v1, %v1604_v55  ;;  %vm1655_vm10 = vweird.f32 %v2576_v1 }
 0x84c   : > { %2577 = vrsqrt.f32 %v1605_v7  ;;  %v1713_v13 = vadd.f32 %v3200_v25, %v1702_v8  ;;  %vm1656_vm12 = vmor %vm1654_vm11, %vm1655_vm10  ;;  %vm1664_vm14 = vweird.f32 %v1605_v7 }
 0x84d   : > { %v1650_v30 = vmul.f32 %v2576_v1, %v1649_v9  ;;  %v2441_v9 = vld [vmem:[%s3474_s12 + $0x30] sm:$0xff] }
 0x84e   : > { %v1723_v14 = vpack.c.bf16 %v1713_v13, %v1712_v19 }
 0x84f   : > { %v1651_v18 = vmul.f32 0.5, %v1650_v30 }
 0x850   : > { %2382 = vmatmul.msk.bf16.gmra.mxu1 %vm487_vm0, %v1723_v14 }
 0x851   : > { %v1652_v26 = vsub.f32 1.5, %v1651_v18 }
 0x852   : > { %v2578_v20 = vpop.eup %2577 }
 0x853   : > { %v1653_v16 = vmul.f32 %v2576_v1, %v1652_v26  ;;  %v1659_v17 = vmul.f32 %v2578_v20, %v1605_v7  ;;  %v1588_v15 = vpop.xlane.xlu0 %1587  ;;  %vm1665_vm13 = vweird.f32 %v2578_v20  ;;  %v3237_v7 = vld [vmem:[%s3473_s11] ss:$0 sm:$0xff]  ;;  %v2440_v26 = vld [vmem:[%s3474_s12 + $0x28] sm:$0xff] }
 0x854   : > { %v1598_v23 = vmul.f32 %v1588_v15, %v2733_v24  ;;  %vm1666_vm15 = vmor %vm1664_vm14, %vm1665_vm13 }
 0x855   : > { %v1660_v39 = vmul.f32 %v2578_v20, %v1659_v17  ;;  %v1657_v54 = vsel %vm1656_vm12, %v2576_v1, %v1653_v16 }
 0x856   : > { %v1606_v27 = vadd.f32 1e-05, %v1598_v23  ;;  %v1692_v3 = vmul.f32 %v1657_v54, %v3157_v34  ;;  %v2439_v23 = vld [vmem:[%s3474_s12 + $0x20] sm:$0xff] }
 0x857   : > { %v1661_v28 = vmul.f32 0.5, %v1660_v39 }
 0x858   : > { %2579 = vrsqrt.f32 %v1606_v27  ;;  %v1703_v41 = vmul.f32 %v3194_v22, %v1692_v3  ;;  %vm1674_vm2 = vweird.f32 %v1606_v27  ;;  %v2438_v3 = vld [vmem:[%s3474_s12 + $0x18] sm:$0xff] }
 0x859   : > { %v1662_v31 = vsub.f32 1.5, %v1661_v28 }
 0x85a   : > { %v1714_v34 = vadd.f32 %v3200_v25, %v1703_v41  ;;  %v2437_v41 = vld [vmem:[%s3474_s12 + $0x10] sm:$0xff] }
 0x85b   : > { %v1663_v32 = vmul.f32 %v2578_v20, %v1662_v31  ;;  %v1591_v29 = vpop.xlane.xlu1 %1590 }
 0x85c   : > { %v1599_v40 = vmul.f32 %v1591_v29, %v2733_v24 }
 0x85d   : > { %v1667_v35 = vsel %vm1666_vm15, %v2578_v20, %v1663_v32 }
 0x85e   : > { %v2580_v0 = vpop.eup %2579  ;;  %v1693_v60 = vmul.f32 %v1667_v35, %v3164_v37  ;;  %v1607_v44 = vadd.f32 1e-05, %v1599_v40 }
 0x85f   : > { %v1669_v36 = vmul.f32 %v2580_v0, %v1606_v27  ;;  %vm1675_vm1 = vweird.f32 %v2580_v0 }
 0x860   : > { %2581 = vrsqrt.f32 %v1607_v44  ;;  %v1704_v38 = vmul.f32 %v3194_v22, %v1693_v60  ;;  %vm1676_vm3 = vmor %vm1674_vm2, %vm1675_vm1  ;;  %vm1684_vm5 = vweird.f32 %v1607_v44 }
 0x861   : > { %v1670_v42 = vmul.f32 %v2580_v0, %v1669_v36 }
 0x862   : > { %v1715_v46 = vadd.f32 %v3200_v25, %v1704_v38 }
 0x863   : > { %v1671_v58 = vmul.f32 0.5, %v1670_v42 }
 0x864   : > { %v1724_v33 = vpack.c.bf16 %v1715_v46, %v1714_v34 }
 0x865   : > { %v1672_v50 = vsub.f32 1.5, %v1671_v58 }
 0x866   : > { %v2582_v24 = vpop.eup %2581  ;;  %2383 = vmatmul.msk.bf16.gmra.mxu1 %vm487_vm0, %v1724_v33 }
 0x867   : > { %v1673_v45 = vmul.f32 %v2580_v0, %v1672_v50  ;;  %v1679_v37 = vmul.f32 %v2582_v24, %v1607_v44  ;;  %vm1685_vm4 = vweird.f32 %v2582_v24  ;;  %v2436_v50 = vld [vmem:[%s3474_s12 + $0x8] sm:$0xff] }
 0x868   : > { %vm1686_vm6 = vmor %vm1684_vm5, %vm1685_vm4 }
 0x869   : > { %v1680_v51 = vmul.f32 %v2582_v24, %v1679_v37  ;;  %v1677_v52 = vsel %vm1676_vm3, %v2580_v0, %v1673_v45 }
 0x86a   : > { %v1694_v56 = vmul.f32 %v1677_v52, %v3175_v49 }
 0x86b   : > { %v1681_v5 = vmul.f32 0.5, %v1680_v51 }
 0x86c   : > { %v1705_v4 = vmul.f32 %v3194_v22, %v1694_v56 }
 0x86d   : > { %v1682_v55 = vsub.f32 1.5, %v1681_v5  ;;  %v2435_v5 = vld [vmem:[%s3474_s12] sm:$0xff] }
 0x86e   : > { %v1716_v10 = vadd.f32 %v3200_v25, %v1705_v4 }
 0x86f   : > { %v1683_v11 = vmul.f32 %v2582_v24, %v1682_v55 }
 0x871   : > { %v1687_v59 = vsel %vm1686_vm6, %v2582_v24, %v1683_v11 }
 0x872   : > { %v1695_v61 = vmul.f32 %v1687_v59, %v3186_v57  ;;  %v2442_v57 = vld [vmem:[%s3474_s12 + $0x38] sm:$0xff] }
 0x873   : > { %2207 = vmatpush.bf16.msra.mxu2 %v2442_v57 }
 0x874   : > { %v1706_v63 = vmul.f32 %v3194_v22, %v1695_v61 }
 0x876   : > { %v1717_v6 = vadd.f32 %v3200_v25, %v1706_v63 }
 0x877   : > { %2208 = vmatpush.bf16.msra.mxu2 %v2441_v9 }
 0x878   : > { %v1725_v1 = vpack.c.bf16 %v1717_v6, %v1716_v10 }
 0x87a   : > { %2384 = vmatmul.msk.bf16.gmra.mxu1 %vm487_vm0, %v1725_v1 }
 0x87b   : > { %v1763_v49 = vpop.f32.mrf.mxu1  ;;  %2209 = vmatpush.bf16.msra.mxu2 %v2440_v26 }
 0x87c   : > { %v3241_v8 = vadd.f32 %v3237_v7, %v1763_v49 }
 0x87e   : > { %v3247_v22 = vmul.f32 0.70710677, %v3241_v8 }
 0x87f   : > { %2210 = vmatpush.bf16.msra.mxu2 %v2439_v23 }
 0x880   : > { %v1799_v25 = vmul.f32 %v3247_v22, %v3247_v22 }
 0x882   : > { %v1800_v19 = vmin.f32 %v1799_v25, 16.0 }
 0x883   : > { %v1765_v13 = vpop.f32.mrf.mxu1  ;;  %2211 = vmatpush.bf16.msra.mxu2 %v2438_v3 }
 0x884   : > { %v1801_v30 = vmul.f32 2.1237322e-06, %v1800_v19  ;;  %v1812_v14 = vmul.f32 3.8918573e-05, %v1800_v19  ;;  %v3255_v18 = vadd.f32 %v3237_v7, %v1765_v13 }
 0x886   : > { %v1802_v20 = vadd.f32 0.00028619796, %v1801_v30  ;;  %v1813_v16 = vadd.f32 0.001143296, %v1812_v14  ;;  %v3261_v17 = vmul.f32 0.70710677, %v3255_v18 }
 0x887   : > { %2212 = vmatpush.bf16.msra.mxu2 %v2437_v41 }
 0x888   : > { %v1814_v15 = vmul.f32 %v1813_v16, %v1800_v19  ;;  %v1839_v39 = vmul.f32 %v3261_v17, %v3261_v17  ;;  %v1803_v27 = vmul.f32 %v1802_v20, %v1800_v19 }
 0x88a   : > { %v1815_v54 = vadd.f32 0.014752088, %v1814_v15  ;;  %v1840_v28 = vmin.f32 %v1839_v39, 16.0  ;;  %v1804_v40 = vadd.f32 0.0036580483, %v1803_v27 }
 0x88b   : > { %2213 = vmatpush.bf16.msra.mxu2 %v2436_v50 }
 0x88c   : > { %v1816_v31 = vmul.f32 %v1815_v54, %v1800_v19  ;;  %v1841_v32 = vmul.f32 2.1237322e-06, %v1840_v28  ;;  %v1852_v29 = vmul.f32 3.8918573e-05, %v1840_v28  ;;  %v1805_v42 = vmul.f32 %v1804_v40, %v1800_v19 }
 0x88e   : > { %v1817_v35 = vadd.f32 0.112945676, %v1816_v31  ;;  %v1842_v0 = vadd.f32 0.00028619796, %v1841_v32  ;;  %v1853_v60 = vadd.f32 0.001143296, %v1852_v29 }
 0x88f   : > { %v1806_v45 = vadd.f32 0.05243302, %v1805_v42  ;;  %2214 = vmatpush.bf16.msra.mxu2 %v2435_v5  ;;  %v1783_v42 = vmul.f32 0.5, %v3241_v8 }
 0x890   : > { %v1818_v44 = vmul.f32 %v1817_v35, %v1800_v19  ;;  %v1843_v36 = vmul.f32 %v1842_v0, %v1840_v28  ;;  %v1854_v38 = vmul.f32 %v1853_v60, %v1840_v28 }
 0x891   : > { %v1807_v56 = vmul.f32 %v1806_v45, %v1800_v19 }
 0x892   : > { %v1819_v34 = vadd.f32 0.4994258, %v1818_v44  ;;  %v1844_v46 = vadd.f32 0.0036580483, %v1843_v36  ;;  %v1855_v58 = vadd.f32 0.014752088, %v1854_v38 }
 0x893   : > { %v1808_v63 = vadd.f32 0.18741608, %v1807_v56 }
 0x894   : > { %v1820_v33 = vmul.f32 %v1819_v34, %v1800_v19  ;;  %v1856_v24 = vmul.f32 %v1855_v58, %v1840_v28  ;;  %v1845_v51 = vmul.f32 %v1844_v46, %v1840_v28  ;;  %v1784_v34 = vmul.f32 0.5, %v3255_v18 }
 0x895   : > { %v1809_v57 = vmul.f32 %v1808_v63, %v1800_v19 }
 0x896   : > { %v1821_v37 = vadd.f32 1.0, %v1820_v33  ;;  %v1857_v52 = vadd.f32 0.112945676, %v1856_v24  ;;  %v1846_v11 = vadd.f32 0.05243302, %v1845_v51 }
 0x897   : > { %v1810_v26 = vadd.f32 1.1283791, %v1809_v57 }
 0x898   : > { %2583 = vrcp.f32 %v1821_v37  ;;  %v1858_v55 = vmul.f32 %v1857_v52, %v1840_v28  ;;  %v1847_v6 = vmul.f32 %v1846_v11, %v1840_v28  ;;  %v1833_v9 = vand.u32 2147483648, %v1821_v37 }
 0x899   : > { %v1831_v30 = vand.u32 2147483647, %v1821_v37  ;;  %vm1827_vm7 = vweird.f32 %v1821_v37  ;;  %v1811_v54 = vmul.f32 %v1810_v26, %v3247_v22 }
 0x89a   : > { %v1859_v59 = vadd.f32 0.4994258, %v1858_v55  ;;  %v1848_v13 = vadd.f32 0.18741608, %v1847_v6  ;;  %v1834_v15 = vor.u32 1.1754944e-38, %v1833_v9 }
 0x89b   : > { %vm1832_vm9 = vcmp.eq.f32.partialorder %v1831_v30, 8.507059e+37 }
 0x89c   : > { %v1860_v61 = vmul.f32 %v1859_v59, %v1840_v28  ;;  %v1849_v23 = vmul.f32 %v1848_v13, %v1840_v28 }
 0x89e   : > { %v2584_v4 = vpop.eup %2583  ;;  %v1861_v1 = vadd.f32 1.0, %v1860_v61  ;;  %v1850_v19 = vadd.f32 1.1283791, %v1849_v23 }
 0x89f   : > { %v1823_v10 = vmul.f32 %v2584_v4, %v1821_v37  ;;  %vm1828_vm0 = vweird.f32 %v2584_v4 }
 0x8a0   : > { %2585 = vrcp.f32 %v1861_v1  ;;  %vm1829_vm8 = vmor %vm1827_vm7, %vm1828_vm0  ;;  %v1873_v3 = vand.u32 2147483648, %v1861_v1  ;;  %v1871_v40 = vand.u32 2147483647, %v1861_v1  ;;  %vm1867_vm11 = vweird.f32 %v1861_v1 }
 0x8a1   : > { %v1824_v49 = vsub.f32 1.0, %v1823_v10  ;;  %v1851_v44 = vmul.f32 %v1850_v19, %v3261_v17 }
 0x8a2   : > { %v1874_v0 = vor.u32 1.1754944e-38, %v1873_v3  ;;  %vm1872_vm13 = vcmp.eq.f32.partialorder %v1871_v40, 8.507059e+37 }
 0x8a3   : > { %v1825_v25 = vmul.f32 %v2584_v4, %v1824_v49 }
 0x8a5   : > { %v1826_v14 = vadd.f32 %v2584_v4, %v1825_v25 }
 0x8a6   : > { %v2586_v20 = vpop.eup %2585 }
 0x8a7   : > { %v1830_v16 = vsel %vm1829_vm8, %v2584_v4, %v1826_v14  ;;  %v1863_v39 = vmul.f32 %v2586_v20, %v1861_v1  ;;  %vm1868_vm10 = vweird.f32 %v2586_v20 }
 0x8a8   : > { %v1835_v27 = vsel %vm1832_vm9, %v1834_v15, %v1830_v16  ;;  %vm1869_vm12 = vmor %vm1867_vm11, %vm1868_vm10 }
 0x8a9   : > { %v1864_v31 = vsub.f32 1.0, %v1863_v39  ;;  %v1836_v32 = vmul.f32 %v1835_v27, %v1811_v54 }
 0x8ab   : > { %v1865_v29 = vmul.f32 %v2586_v20, %v1864_v31  ;;  %v2385_v60 = vclamps-f32 %v1836_v32, 1.0 }
 0x8ad   : > { %v1866_v35 = vadd.f32 %v2586_v20, %v1865_v29  ;;  %v2119_v38 = vadd.f32 1.0, %v2385_v60 }
 0x8af   : > { %v1870_v28 = vsel %vm1869_vm12, %v2586_v20, %v1866_v35  ;;  %v2127_v58 = vmul.f32 %v2119_v38, %v1783_v42 }
 0x8b0   : > { %v1875_v41 = vsel %vm1872_vm13, %v1874_v0, %v1870_v28 }
 0x8b1   : > { %v1876_v36 = vmul.f32 %v1875_v41, %v1851_v44 }
 0x8b3   : > { %v2386_v22 = vclamps-f32 %v1876_v36, 1.0 }
 0x8b5   : > { %v2120_v46 = vadd.f32 1.0, %v2386_v22 }
 0x8b7   : > { %v2128_v33 = vmul.f32 %v2120_v46, %v1784_v34 }
 0x8b9   : > { %v2151_v50 = vpack.c.bf16 %v2128_v33, %v2127_v58 }
 0x8bb   : > { %2215 = vmatmul.bf16.vlgmr.msra.gmra.mxu2 %v2151_v50 }
 0x8cd   : > { %v1768_v24 = vpop.f32.mrf.mxu1 }
 0x8ce   : > { %v3285_v45 = vadd.f32 %v3237_v7, %v1768_v24 }
 0x8d0   : > { %v3288_v17 = vmul.f32 0.70710677, %v3285_v45 }
 0x8d2   : > { %v1879_v37 = vmul.f32 %v3288_v17, %v3288_v17 }
 0x8d4   : > { %v1880_v51 = vmin.f32 %v1879_v37, 16.0 }
 0x8d5   : > { %v1770_v52 = vpop.f32.mrf.mxu1 }
 0x8d6   : > { %v1881_v8 = vmul.f32 2.1237322e-06, %v1880_v51  ;;  %v3293_v18 = vadd.f32 %v3237_v7, %v1770_v52  ;;  %v1892_v5 = vmul.f32 3.8918573e-05, %v1880_v51 }
 0x8d8   : > { %v1882_v55 = vadd.f32 0.00028619796, %v1881_v8  ;;  %v3296_v56 = vmul.f32 0.70710677, %v3293_v18  ;;  %v1893_v11 = vadd.f32 0.001143296, %v1892_v5 }
 0x8da   : > { %v1919_v59 = vmul.f32 %v3296_v56, %v3296_v56  ;;  %v1883_v61 = vmul.f32 %v1882_v55, %v1880_v51  ;;  %v1894_v4 = vmul.f32 %v1893_v11, %v1880_v51 }
 0x8dc   : > { %v3300_v63 = vmin.f32 %v1919_v59, 16.0  ;;  %v1895_v10 = vadd.f32 0.014752088, %v1894_v4  ;;  %v1884_v49 = vadd.f32 0.0036580483, %v1883_v61 }
 0x8de   : > { %v1921_v6 = vmul.f32 2.1237322e-06, %v3300_v63  ;;  %v1932_v1 = vmul.f32 3.8918573e-05, %v3300_v63  ;;  %v1896_v57 = vmul.f32 %v1895_v10, %v1880_v51  ;;  %v1885_v26 = vmul.f32 %v1884_v49, %v1880_v51 }
 0x8e0   : > { %v1922_v25 = vadd.f32 0.00028619796, %v1921_v6  ;;  %v1933_v9 = vadd.f32 0.001143296, %v1932_v1  ;;  %v1897_v13 = vadd.f32 0.112945676, %v1896_v57 }
 0x8e1   : > { %v1886_v31 = vadd.f32 0.05243302, %v1885_v26 }
 0x8e2   : > { %v1923_v30 = vmul.f32 %v1922_v25, %v3300_v63  ;;  %v1934_v14 = vmul.f32 %v1933_v9, %v3300_v63  ;;  %v1898_v16 = vmul.f32 %v1897_v13, %v1880_v51 }
 0x8e3   : > { %v1773_v20 = vpop.f32.mrf.mxu1  ;;  %v1887_v60 = vmul.f32 %v1886_v31, %v1880_v51 }
 0x8e4   : > { %v3307_v15 = vadd.f32 %v3237_v7, %v1773_v20  ;;  %v1935_v23 = vadd.f32 0.014752088, %v1934_v14  ;;  %v1924_v39 = vadd.f32 0.0036580483, %v1923_v30  ;;  %v1899_v27 = vadd.f32 0.4994258, %v1898_v16 }
 0x8e5   : > { %v1888_v46 = vadd.f32 0.18741608, %v1887_v60 }
 0x8e6   : > { %v3310_v54 = vmul.f32 0.70710677, %v3307_v15  ;;  %v1900_v19 = vmul.f32 %v1899_v27, %v1880_v51  ;;  %v1936_v3 = vmul.f32 %v1935_v23, %v3300_v63  ;;  %v1925_v29 = vmul.f32 %v1924_v39, %v3300_v63 }
 0x8e7   : > { %v1889_v59 = vmul.f32 %v1888_v46, %v1880_v51 }
 0x8e8   : > { %v1959_v32 = vmul.f32 %v3310_v54, %v3310_v54  ;;  %v1901_v40 = vadd.f32 1.0, %v1900_v19  ;;  %v1937_v35 = vadd.f32 0.112945676, %v1936_v3  ;;  %v1926_v38 = vadd.f32 0.05243302, %v1925_v29 }
 0x8e9   : > { %v1890_v51 = vadd.f32 1.1283791, %v1889_v59 }
 0x8ea   : > { %v3316_v0 = vmin.f32 %v1959_v32, 16.0  ;;  %2587 = vrcp.f32 %v1901_v40  ;;  %v1938_v36 = vmul.f32 %v1937_v35, %v3300_v63  ;;  %v1927_v37 = vmul.f32 %v1926_v38, %v3300_v63 }
 0x8eb   : > { %v1775_v44 = vpop.f32.mrf.mxu1  ;;  %v1911_v61 = vand.u32 2147483647, %v1901_v40  ;;  %v1913_v9 = vand.u32 2147483648, %v1901_v40  ;;  %vm1907_vm15 = vweird.f32 %v1901_v40 }
 0x8ec   : > { %v1961_v28 = vmul.f32 2.1237322e-06, %v3316_v0  ;;  %v3320_v41 = vadd.f32 %v3237_v7, %v1775_v44  ;;  %v1972_v22 = vmul.f32 3.8918573e-05, %v3316_v0  ;;  %v1939_v58 = vadd.f32 0.4994258, %v1938_v36 }
 0x8ed   : > { %v1928_v57 = vadd.f32 0.18741608, %v1927_v37  ;;  %vm1912_vm2 = vcmp.eq.f32.partialorder %v1911_v61, 8.507059e+37  ;;  %v1914_v29 = vor.u32 1.1754944e-38, %v1913_v9 }
 0x8ee   : > { %v1962_v42 = vadd.f32 0.00028619796, %v1961_v28  ;;  %v3325_v34 = vmul.f32 0.70710677, %v3320_v41  ;;  %v1973_v33 = vadd.f32 0.001143296, %v1972_v22  ;;  %v1940_v8 = vmul.f32 %v1939_v58, %v3300_v63 }
 0x8ef   : > { %v1929_v27 = vmul.f32 %v1928_v57, %v3300_v63 }
 0x8f0   : > { %v1999_v50 = vmul.f32 %v3325_v34, %v3325_v34  ;;  %v2588_v24 = vpop.eup %2587  ;;  %v1963_v52 = vmul.f32 %v1962_v42, %v3316_v0  ;;  %v1974_v5 = vmul.f32 %v1973_v33, %v3316_v0  ;;  %v3335_v4 = vadd.f32 1.0, %v1940_v8 }
 0x8f1   : > { %v1903_v11 = vmul.f32 %v2588_v24, %v1901_v40  ;;  %vm1908_vm14 = vweird.f32 %v2588_v24  ;;  %v1891_v40 = vmul.f32 %v1890_v51, %v3288_v17  ;;  %v1930_v22 = vadd.f32 1.1283791, %v1929_v27 }
 0x8f2   : > { %v3333_v55 = vmin.f32 %v1999_v50, 16.0  ;;  %v1975_v10 = vadd.f32 0.014752088, %v1974_v5  ;;  %v1964_v25 = vadd.f32 0.0036580483, %v1963_v52  ;;  %2589 = vrcp.f32 %v3335_v4  ;;  %vm1909_vm1 = vmor %vm1907_vm15, %vm1908_vm14 }
 0x8f3   : > { %v1904_v1 = vsub.f32 1.0, %v1903_v11  ;;  %v1953_v37 = vand.u32 2147483648, %v3335_v4  ;;  %vm1947_vm4 = vweird.f32 %v3335_v4 }
 0x8f4   : > { %v2001_v6 = vmul.f32 2.1237322e-06, %v3333_v55  ;;  %v2012_v49 = vmul.f32 3.8918573e-05, %v3333_v55  ;;  %v1976_v14 = vmul.f32 %v1975_v10, %v3316_v0  ;;  %v1965_v3 = vmul.f32 %v1964_v25, %v3316_v0 }
 0x8f5   : > { %v1905_v30 = vmul.f32 %v2588_v24, %v1904_v1 }
 0x8f6   : > { %v2002_v13 = vadd.f32 0.00028619796, %v2001_v6  ;;  %v2013_v20 = vadd.f32 0.001143296, %v2012_v49  ;;  %v1977_v31 = vadd.f32 0.112945676, %v1976_v14  ;;  %v1931_v6 = vmul.f32 %v1930_v22, %v3296_v56 }
 0x8f7   : > { %v1778_v26 = vpop.f32.mrf.mxu1  ;;  %v1906_v39 = vadd.f32 %v2588_v24, %v1905_v30  ;;  %v1966_v33 = vadd.f32 0.05243302, %v1965_v3 }
 0x8f8   : > { %v2003_v16 = vmul.f32 %v2002_v13, %v3333_v55  ;;  %v3343_v23 = vadd.f32 %v3237_v7, %v1778_v26  ;;  %v2014_v19 = vmul.f32 %v2013_v20, %v3333_v55  ;;  %v2590_v35 = vpop.eup %2589  ;;  %v1978_v28 = vmul.f32 %v1977_v31, %v3316_v0 }
 0x8f9   : > { %v1910_v32 = vsel %vm1909_vm1, %v2588_v24, %v1906_v39  ;;  %v1943_v38 = vmul.f32 %v2590_v35, %v3335_v4  ;;  %v1951_v24 = vand.u32 2147483647, %v3335_v4  ;;  %vm1948_vm3 = vweird.f32 %v2590_v35 }
 0x8fa   : > { %v2004_v60 = vadd.f32 0.0036580483, %v2003_v16  ;;  %v3349_v44 = vmul.f32 0.70710677, %v3343_v23  ;;  %v2015_v36 = vadd.f32 0.014752088, %v2014_v19  ;;  %v1915_v63 = vsel %vm1912_vm2, %v1914_v29, %v1910_v32  ;;  %vm1949_vm6 = vmor %vm1947_vm4, %vm1948_vm3 }
 0x8fb   : > { %v1979_v46 = vadd.f32 0.4994258, %v1978_v28  ;;  %v1944_v50 = vsub.f32 1.0, %v1943_v38  ;;  %v1916_v17 = vmul.f32 %v1915_v63, %v1891_v40  ;;  %vm1952_vm5 = vcmp.eq.f32.partialorder %v1951_v24, 8.507059e+37 }
 0x8fc   : > { %v2039_v42 = vmul.f32 %v3349_v44, %v3349_v44  ;;  %v2016_v58 = vmul.f32 %v2015_v36, %v3333_v55  ;;  %v2005_v52 = vmul.f32 %v2004_v60, %v3333_v55  ;;  %v1967_v9 = vmul.f32 %v1966_v33, %v3316_v0 }
 0x8fd   : > { %v1980_v5 = vmul.f32 %v1979_v46, %v3316_v0  ;;  %v1945_v10 = vmul.f32 %v2590_v35, %v1944_v50  ;;  %v2387_v14 = vclamps-f32 %v1916_v17, 1.0  ;;  %v1786_v38 = vmul.f32 0.5, %v3293_v18 }
 0x8fe   : > { %v2017_v11 = vadd.f32 0.112945676, %v2016_v58  ;;  %v3361_v59 = vmin.f32 %v2039_v42, 16.0  ;;  %v2006_v13 = vadd.f32 0.05243302, %v2005_v52 }
 0x8ff   : > { %v1780_v8 = vpop.f32.mrf.mxu1  ;;  %v3367_v1 = vadd.f32 1.0, %v1980_v5  ;;  %v1946_v25 = vadd.f32 %v2590_v35, %v1945_v10  ;;  %v1968_v39 = vadd.f32 0.18741608, %v1967_v9  ;;  %v2121_v60 = vadd.f32 1.0, %v2387_v14 }
 0x900   : > { %v3364_v61 = vadd.f32 %v3237_v7, %v1780_v8  ;;  %v2018_v49 = vmul.f32 %v2017_v11, %v3333_v55  ;;  %v1954_v7 = vor.u32 1.1754944e-38, %v1953_v37  ;;  %v2041_v56 = vmul.f32 2.1237322e-06, %v3361_v59 }
 0x901   : > { %2591 = vrcp.f32 %v3367_v1  ;;  %v1950_v51 = vsel %vm1949_vm6, %v2590_v35, %v1946_v25  ;;  %v2007_v27 = vmul.f32 %v2006_v13, %v3333_v55  ;;  %v2052_v19 = vmul.f32 3.8918573e-05, %v3361_v59 }
 0x902   : > { %v3371_v57 = vmul.f32 0.70710677, %v3364_v61  ;;  %v1955_v26 = vsel %vm1952_vm5, %v1954_v7, %v1950_v51  ;;  %v2019_v20 = vadd.f32 0.4994258, %v2018_v49  ;;  %v2042_v3 = vadd.f32 0.00028619796, %v2041_v56 }
 0x903   : > { %v1956_v4 = vmul.f32 %v1955_v26, %v1931_v6  ;;  %v1785_v35 = vmul.f32 0.5, %v3285_v45  ;;  %v2053_v40 = vadd.f32 0.001143296, %v2052_v19  ;;  %v1969_v58 = vmul.f32 %v1968_v39, %v3316_v0 }
 0x904   : > { %v2079_v30 = vmul.f32 %v3371_v57, %v3371_v57  ;;  %v2020_v31 = vmul.f32 %v2019_v20, %v3333_v55  ;;  %v2008_v33 = vadd.f32 0.18741608, %v2007_v27  ;;  %v2043_v50 = vmul.f32 %v2042_v3, %v3361_v59 }
 0x905   : > { %v2388_v29 = vclamps-f32 %v1956_v4, 1.0  ;;  %v2129_v24 = vmul.f32 %v2121_v60, %v1785_v35  ;;  %v1991_v52 = vand.u32 2147483647, %v3367_v1  ;;  %v1993_v8 = vand.u32 2147483648, %v3367_v1 }
 0x906   : > { %v3379_v16 = vmin.f32 %v2079_v30, 16.0  ;;  %v3386_v36 = vadd.f32 1.0, %v2020_v31  ;;  %v2054_v18 = vmul.f32 %v2053_v40, %v3361_v59  ;;  %v1970_v0 = vadd.f32 1.1283791, %v1969_v58 }
 0x907   : > { %v2592_v28 = vpop.eup %2591  ;;  %v2122_v42 = vadd.f32 1.0, %v2388_v29  ;;  %v2009_v25 = vmul.f32 %v2008_v33, %v3333_v55  ;;  %v2044_v9 = vadd.f32 0.0036580483, %v2043_v50  ;;  %vm1987_vm7 = vweird.f32 %v3367_v1 }
 0x908   : > { %v2081_v32 = vmul.f32 2.1237322e-06, %v3379_v16  ;;  %v2092_v63 = vmul.f32 3.8918573e-05, %v3379_v16  ;;  %v1983_v46 = vmul.f32 %v2592_v28, %v3367_v1  ;;  %2593 = vrcp.f32 %v3386_v36 }
 0x909   : > { %v2130_v45 = vmul.f32 %v2122_v42, %v1786_v38  ;;  %vm1988_vm0 = vweird.f32 %v2592_v28  ;;  %v2055_v6 = vadd.f32 0.014752088, %v2054_v18  ;;  %v1994_v56 = vor.u32 1.1754944e-38, %v1993_v8 }
 0x90a   : > { %v2082_v22 = vadd.f32 0.00028619796, %v2081_v32  ;;  %v1984_v37 = vsub.f32 1.0, %v1983_v46  ;;  %v2093_v17 = vadd.f32 0.001143296, %v2092_v63  ;;  %vm1989_vm8 = vmor %vm1987_vm7, %vm1988_vm0  ;;  %vm1992_vm9 = vcmp.eq.f32.partialorder %v1991_v52, 8.507059e+37 }
 0x90b   : > { %v2152_v11 = vpack.c.bf16 %v2130_v45, %v2129_v24  ;;  %v2056_v30 = vmul.f32 %v2055_v6, %v3361_v59  ;;  %v1971_v27 = vmul.f32 %v1970_v0, %v3310_v54  ;;  %v2010_v31 = vadd.f32 1.1283791, %v2009_v25 }
 0x90c   : > { %v2083_v5 = vmul.f32 %v2082_v22, %v3379_v16  ;;  %v1985_v10 = vmul.f32 %v2592_v28, %v1984_v37  ;;  %v2094_v49 = vmul.f32 %v2093_v17, %v3379_v16  ;;  %v2045_v1 = vmul.f32 %v2044_v9, %v3361_v59 }
 0x90d   : > { %2220 = vmatmul.bf16.gmra.mxu2 %v2152_v11  ;;  %v2057_v39 = vadd.f32 0.112945676, %v2056_v30  ;;  %v2031_v3 = vand.u32 2147483647, %v3386_v36  ;;  %v2033_v32 = vand.u32 2147483648, %v3386_v36  ;;  %vm2027_vm11 = vweird.f32 %v3386_v36 }
 0x90e   : > { %v1986_v13 = vadd.f32 %v2592_v28, %v1985_v10  ;;  %v2594_v7 = vpop.eup %2593  ;;  %v2095_v14 = vadd.f32 0.014752088, %v2094_v49  ;;  %v2084_v51 = vadd.f32 0.0036580483, %v2083_v5  ;;  %v2046_v54 = vadd.f32 0.05243302, %v2045_v1 }
 0x90f   : > { %v2023_v20 = vmul.f32 %v2594_v7, %v3386_v36  ;;  %v2058_v29 = vmul.f32 %v2057_v39, %v3361_v59  ;;  %vm2028_vm10 = vweird.f32 %v2594_v7  ;;  %v2011_v42 = vmul.f32 %v2010_v31, %v3325_v34 }
 0x910   : > { %v1990_v26 = vsel %vm1989_vm8, %v2592_v28, %v1986_v13  ;;  %v2096_v55 = vmul.f32 %v2095_v14, %v3379_v16  ;;  %v2085_v28 = vmul.f32 %v2084_v51, %v3379_v16  ;;  %vm2029_vm12 = vmor %vm2027_vm11, %vm2028_vm10  ;;  %v2034_v46 = vor.u32 1.1754944e-38, %v2033_v32 }
 0x911   : > { %v1995_v4 = vsel %vm1992_vm9, %v1994_v56, %v1990_v26  ;;  %v2024_v19 = vsub.f32 1.0, %v2023_v20  ;;  %v2059_v63 = vadd.f32 0.4994258, %v2058_v29  ;;  %vm2032_vm13 = vcmp.eq.f32.partialorder %v2031_v3, 8.507059e+37 }
 0x912   : > { %v2097_v60 = vadd.f32 0.112945676, %v2096_v55  ;;  %v1996_v35 = vmul.f32 %v1995_v4, %v1971_v27  ;;  %v2086_v50 = vadd.f32 0.05243302, %v2085_v28  ;;  %v2047_v18 = vmul.f32 %v2046_v54, %v3361_v59 }
 0x913   : > { %v2025_v40 = vmul.f32 %v2594_v7, %v2024_v19  ;;  %v2060_v58 = vmul.f32 %v2059_v63, %v3361_v59  ;;  %v1787_v10 = vmul.f32 0.5, %v3307_v15  ;;  %v1788_v0 = vmul.f32 0.5, %v3320_v41 }
 0x914   : > { %v2098_v38 = vmul.f32 %v2097_v60, %v3379_v16  ;;  %v2389_v24 = vclamps-f32 %v1996_v35, 1.0  ;;  %v2087_v36 = vmul.f32 %v2086_v50, %v3379_v16  ;;  %v2048_v6 = vadd.f32 0.18741608, %v2047_v18 }
 0x915   : > { %v2026_v22 = vadd.f32 %v2594_v7, %v2025_v40  ;;  %v2061_v52 = vadd.f32 1.0, %v2060_v58  ;;  %vm2252_vm0 = vcmask 257024  }
 0x916   : > { %v2099_v33 = vadd.f32 0.4994258, %v2098_v38  ;;  %v2123_v5 = vadd.f32 1.0, %v2389_v24  ;;  %v2088_v25 = vadd.f32 0.18741608, %v2087_v36  ;;  %v2049_v56 = vmul.f32 %v2048_v6, %v3361_v59 }
 0x917   : > { %v2030_v45 = vsel %vm2029_vm12, %v2594_v7, %v2026_v22  ;;  %2595 = vrcp.f32 %v2061_v52  ;;  %v2073_v4 = vand.u32 2147483648, %v2061_v52  ;;  %v2071_v55 = vand.u32 2147483647, %v2061_v52 }
 0x918   : > { %v2035_v37 = vsel %vm2032_vm13, %v2034_v46, %v2030_v45  ;;  %v2100_v8 = vmul.f32 %v2099_v33, %v3379_v16  ;;  %v2131_v9 = vmul.f32 %v2123_v5, %v1787_v10  ;;  %v2089_v26 = vmul.f32 %v2088_v25, %v3379_v16 }
 0x919   : > { %v2036_v17 = vmul.f32 %v2035_v37, %v2011_v42  ;;  %v2050_v39 = vadd.f32 1.1283791, %v2049_v56  ;;  %vm2067_vm15 = vweird.f32 %v2061_v52  ;;  %v2074_v59 = vor.u32 1.1754944e-38, %v2073_v4 }
 0x91a   : > { %v2101_v11 = vadd.f32 1.0, %v2100_v8  ;;  %v2090_v31 = vadd.f32 1.1283791, %v2089_v26  ;;  %vm2072_vm3 = vcmp.eq.f32.partialorder %v2071_v55, 8.507059e+37  ;;  %v1790_v33 = vmul.f32 0.5, %v3364_v61 }
 0x91b   : > { %v2390_v34 = vclamps-f32 %v2036_v17, 1.0  ;;  %v2051_v16 = vmul.f32 %v2050_v39, %v3349_v44  ;;  %v1789_v44 = vmul.f32 0.5, %v3343_v23 }
 0x91c   : > { %2597 = vrcp.f32 %v2101_v11  ;;  %v2113_v19 = vand.u32 2147483648, %v2101_v11  ;;  %v2111_v32 = vand.u32 2147483647, %v2101_v11  ;;  %vm2107_vm4 = vweird.f32 %v2101_v11 }
 0x91d   : > { %v2124_v49 = vadd.f32 1.0, %v2390_v34  ;;  %v2596_v7 = vpop.eup %2595  ;;  %v2091_v63 = vmul.f32 %v2090_v31, %v3371_v57  ;;  %v2484_v57 = vld [vmem:[%s3475_s13] ss:$0 sm:$0xff] }
 0x91e   : > { %v2063_v14 = vmul.f32 %v2596_v7, %v2061_v52  ;;  %vm2068_vm14 = vweird.f32 %v2596_v7  ;;  %v2114_v40 = vor.u32 1.1754944e-38, %v2113_v19  ;;  %vm2112_vm6 = vcmp.eq.f32.partialorder %v2111_v32, 8.507059e+37 }
 0x91f   : > { %v2132_v13 = vmul.f32 %v2124_v49, %v1788_v0  ;;  %vm2069_vm1 = vmor %vm2067_vm15, %vm2068_vm14 }
 0x920   : > { %v2064_v20 = vsub.f32 1.0, %v2063_v14 }
 0x921   : > { %v2153_v30 = vpack.c.bf16 %v2132_v13, %v2131_v9 }
 0x922   : > { %v2598_v51 = vpop.eup %2597  ;;  %v2065_v41 = vmul.f32 %v2596_v7, %v2064_v20 }
 0x923   : > { %2225 = vmatmul.bf16.gmra.mxu2 %v2153_v30  ;;  %v2103_v15 = vmul.f32 %v2598_v51, %v2101_v11  ;;  %vm2108_vm2 = vweird.f32 %v2598_v51 }
 0x924   : > { %v2066_v1 = vadd.f32 %v2596_v7, %v2065_v41  ;;  %vm2109_vm5 = vmor %vm2107_vm4, %vm2108_vm2 }
 0x925   : > { %v2104_v27 = vsub.f32 1.0, %v2103_v15 }
 0x926   : > { %v2070_v29 = vsel %vm2069_vm1, %v2596_v7, %v2066_v1 }
 0x927   : > { %v2105_v3 = vmul.f32 %v2598_v51, %v2104_v27  ;;  %v2075_v60 = vsel %vm2072_vm3, %v2074_v59, %v2070_v29 }
 0x928   : > { %v2076_v35 = vmul.f32 %v2075_v60, %v2051_v16 }
 0x929   : > { %v2106_v28 = vadd.f32 %v2598_v51, %v2105_v3 }
 0x92a   : > { %v2391_v54 = vclamps-f32 %v2076_v35, 1.0 }
 0x92b   : > { %v2110_v38 = vsel %vm2109_vm5, %v2598_v51, %v2106_v28 }
 0x92c   : > { %v2115_v22 = vsel %vm2112_vm6, %v2114_v40, %v2110_v38  ;;  %v2125_v58 = vadd.f32 1.0, %v2391_v54 }
 0x92d   : > { %v2116_v42 = vmul.f32 %v2115_v22, %v2091_v63 }
 0x92e   : > { %v2133_v24 = vmul.f32 %v2125_v58, %v1789_v44 }
 0x92f   : > { %v2392_v46 = vclamps-f32 %v2116_v42, 1.0 }
 0x931   : > { %v2126_v50 = vadd.f32 1.0, %v2392_v46 }
 0x933   : > { %v2134_v45 = vmul.f32 %v2126_v50, %v1790_v33 }
 0x935   : > { %v2154_v37 = vpack.c.bf16 %v2134_v45, %v2133_v24 }
 0x937   : > { %2230 = vmatmul.bf16.gmra.mxu2 %v2154_v37 }
 0x93e   : > { %v2216_v52 = vpop.f32.mrf.mxu2 }
 0x93f   : > { %v2217_v8 = vadd.f32 %v2484_v57, %v2216_v52 }
 0x941   : > { %v2236_v18 = vadd.f32 %v2217_v8, %v3088_v47 }
 0x943   : > { %v2244_v23 = vpack.c.bf16 %v2236_v18, %v2236_v18 }
 0x945   : > { %2253 = vst.msk [vmem:[%s3434_s19] sm:$0xf] %vm2252_vm0, %v2244_v23 }
 0x946   : > { %v2218_v61 = vpop.f32.mrf.mxu2 }
 0x947   : > { %v2219_v17 = vadd.f32 %v2484_v57, %v2218_v61 }
 0x949   : > { %v2237_v36 = vadd.f32 %v2219_v17, %v3093_v48 }
 0x94b   : > { %v2245_v34 = vpack.c.bf16 %v2237_v36, %v2237_v36 }
 0x94d   : > { %2254 = vst.msk [vmem:[%s3434_s19 + $0x4] sm:$0xf] %vm2252_vm0, %v2245_v34 }
 0x990   : > { %v2221_v47 = vpop.f32.mrf.mxu2 }
 0x991   : > { %v2222_v5 = vadd.f32 %v2484_v57, %v2221_v47 }
 0x993   : > { %v2238_v11 = vadd.f32 %v2222_v5, %v3098_v53 }
 0x995   : > { %v2246_v10 = vpack.c.bf16 %v2238_v11, %v2238_v11 }
 0x997   : > { %2255 = vst.msk [vmem:[%s3434_s19 + $0x8] sm:$0xf] %vm2252_vm0, %v2246_v10 }
 0x998   : > { %v2223_v0 = vpop.f32.mrf.mxu2 }
 0x999   : > { %v2224_v6 = vadd.f32 %v2484_v57, %v2223_v0 }
 0x99b   : > { %v2239_v49 = vadd.f32 %v2224_v6, %v3103_v43 }
 0x99d   : > { %v2247_v25 = vpack.c.bf16 %v2239_v49, %v2239_v49 }
 0x99f   : > { %2256 = vst.msk [vmem:[%s3434_s19 + $0xc] sm:$0xf] %vm2252_vm0, %v2247_v25 }
 0x9a6   : > { %v2226_v48 = vpop.f32.mrf.mxu2 }
 0x9a7   : > { %v2227_v9 = vadd.f32 %v2484_v57, %v2226_v48 }
 0x9a9   : > { %v2240_v13 = vadd.f32 %v2227_v9, %v3108_v62 }
 0x9ab   : > { %v2248_v7 = vpack.c.bf16 %v2240_v13, %v2240_v13 }
 0x9ad   : > { %2257 = vst.msk [vmem:[%s3434_s19 + $0x10] sm:$0xf] %vm2252_vm0, %v2248_v7 }
 0x9ae   : > { %v2228_v53 = vpop.f32.mrf.mxu2 }
 0x9af   : > { %v2229_v56 = vadd.f32 %v2484_v57, %v2228_v53 }
 0x9b1   : > { %v2241_v30 = vadd.f32 %v2229_v56, %v3113_v2 }
 0x9b3   : > { %v2249_v14 = vpack.c.bf16 %v2241_v30, %v2241_v30 }
 0x9b5   : > { %2258 = vst.msk [vmem:[%s3434_s19 + $0x14] sm:$0xf] %vm2252_vm0, %v2249_v14 }
 0x9ba   : > { %v2231_v43 = vpop.f32.mrf.mxu2 }
 0x9bb   : > { %v2232_v51 = vadd.f32 %v2484_v57, %v2231_v43 }
 0x9bd   : > { %v2242_v26 = vadd.f32 %v2232_v51, %v3122_v12 }
 0x9bf   : > { %v2250_v20 = vpack.c.bf16 %v2242_v26, %v2242_v26 }
 0x9c1   : > { %2259 = vst.msk [vmem:[%s3434_s19 + $0x18] sm:$0xf] %vm2252_vm0, %v2250_v20 }
 0x9c2   : > { %v2233_v4 = vpop.f32.mrf.mxu2 }
 0x9c3   : > { %v2234_v62 = vadd.f32 %v2484_v57, %v2233_v4 }
 0x9c5   : > { %v2243_v15 = vadd.f32 %v2234_v62, %v3134_v21 }
 0x9c7   : > { %v2251_v39 = vpack.c.bf16 %v2243_v15, %v2243_v15 }
 0x9c9   : > { %2260 = vst.msk [vmem:[%s3434_s19 + $0x1c] sm:$0xf] %vm2252_vm0, %v2251_v39 }
 0x9ca PF: > { %s24_s29 = sadd.s32 1, %s2605_s29  }
 0x9cb   : > { %p21_p4 = scmp.ge.s32.totalorder %s24_s29, 4  }
 0x9cd   :  { %23 = sbr.rel (!%p21_p4) target bundleno = 1 (0x1), region = 107 }

// kernel: model_out_forward.10
= control target key start
LH: loop header
LB: loop body
LE: loop exit
PB: predicated region body
PF: predicated region fallthrough
CT: control target
= control target key end

     0   :  { %s508_s15 = smov 0   ;;  %s562_s0 = inlined_call_operand.vmem [shape: bf16[2,16,128], index: 0, kind: input, shape index: {}]   ;;  %s563_s1 = inlined_call_operand.vmem [shape: f32[1,128], index: 1, kind: input, shape index: {}]   ;;  %s564_s2 = inlined_call_operand.vmem [shape: f32[1,128], index: 2, kind: input, shape index: {}]   ;;  %s565_s3 = inlined_call_operand.vmem [shape: bf16[128,64], index: 3, kind: input, shape index: {}]   ;;  %s566_s4 = inlined_call_operand.vmem [shape: bf16[2,16,64], index: 4, kind: output, shape index: {}]  }
   0x1 LB: > { %s400_s16 = sadd.s32 4294967295, %s480_s15   ;;  %p404_p0 = scmp.ge.s32.totalorder %s480_s15, 1  ;;  %s480_s15 = sphi %s508_s15, %s14_s15  }
   0x2   : > { %p162_p1 = scmp.lt.s32.totalorder %s480_s15, 3 }
   0x4   : > { %p163_p2 = pnand %p404_p0, %p162_p1 }
   0x5   : > { %p188_p3 = scmp.lt.s32.totalorder (!%p163_p2), %s400_s16, 1 }
   0x6   : > { %166 = sbr.rel (%p163_p2) target bundleno = 430 (0x1ae), region = 36 }
   0xb   : > { %s568_s16 = smov (!%p188_p3, %s400_s16), 1  ;;  %v482_v3 = vmov 128.0   ;;  %v452_v18 = vld [vmem:[%s565_s3 + $0x38] sm:$0xff]  ;;  %v451_v19 = vld [vmem:[%s565_s3 + $0x30] sm:$0xff]  ;;  %v450_v20 = vld [vmem:[%s565_s3 + $0x28] sm:$0xff]  ;;  %vm342_vm7 = vcmask 519168  }
   0xc   : > { %s443_s17 = sshll.u32 %s568_s16, 3  ;;  %468 = vrcp.f32 %v482_v3  ;;  %326 = vmatpush.bf16.msra.mxu0 %v452_v18  ;;  %v449_v21 = vld [vmem:[%s565_s3 + $0x20] sm:$0xff]  ;;  %v448_v22 = vld [vmem:[%s565_s3 + $0x18] sm:$0xff]  ;;  %v447_v23 = vld [vmem:[%s565_s3 + $0x10] sm:$0xff] }
   0xd   : > { %s192_s20 = scalar_lea.vmem %s562_s0, %s443_s17  ;;  %v446_v24 = vld [vmem:[%s565_s3 + $0x8] sm:$0xff]  ;;  %v445_v26 = vld [vmem:[%s565_s3] sm:$0xff] }
   0xe   : > { %v454_v0 = vld [vmem:[%s192_s20] sm:$0xff]   ;;  %s197_s20 = scalar_lea.vmem %s566_s4, %s443_s17 }
   0xf   : > { %v455_v1 = vunpack.c.l.bf16 %v454_v0  ;;  %v456_v2 = vunpack.c.h.bf16 %v454_v0  ;;  %v466_v45 = vld [vmem:[%s563_s1] ss:$0 sm:$0xff] }
  0x10   : > { %327 = vmatpush.bf16.msra.mxu0 %v451_v19  ;;  %v467_v50 = vld [vmem:[%s564_s2] ss:$0 sm:$0xff] }
  0x11   : > { %204 = vadd.xlane.f32.xlu0 %v455_v1 }
  0x12   : > { %v469_v4 = vpop.eup %468 }
  0x13   : > { %v209_v5 = vmul.f32 128.0, %v469_v4  ;;  %vm213_vm0 = vweird.f32 %v469_v4 }
  0x14   : > { %328 = vmatpush.bf16.msra.mxu0 %v450_v20 }
  0x15   : > { %v210_v6 = vsub.f32 1.0, %v209_v5 }
  0x17   : > { %v211_v7 = vmul.f32 %v469_v4, %v210_v6 }
  0x18   : > { %329 = vmatpush.bf16.msra.mxu0 %v449_v21 }
  0x19   : > { %206 = vadd.xlane.f32.xlu0 %v456_v2  ;;  %v212_v8 = vadd.f32 %v469_v4, %v211_v7 }
  0x1b   : > { %v214_v9 = vsel %vm213_vm0, %v469_v4, %v212_v8 }
  0x1c   : > { %330 = vmatpush.bf16.msra.mxu0 %v448_v22 }
  0x20   : > { %331 = vmatpush.bf16.msra.mxu0 %v447_v23 }
  0x24   : > { %332 = vmatpush.bf16.msra.mxu0 %v446_v24 }
  0x28   : > { %333 = vmatpush.bf16.msra.mxu0 %v445_v26 }
  0x84   : > { %v205_v10 = vpop.xlane.xlu0 %204 }
  0x85   : > { %v215_v11 = vmul.f32 %v214_v9, %v205_v10 }
  0x87   : > { %v217_v12 = vsub.f32 %v455_v1, %v215_v11 }
  0x89   : > { %v219_v13 = vmul.f32 %v217_v12, %v217_v12 }
  0x8b   : > { %221 = vadd.xlane.f32.xlu1 %v219_v13 }
  0x8c   : > { %v207_v14 = vpop.xlane.xlu0 %206 }
  0x8d   : > { %v216_v15 = vmul.f32 %v214_v9, %v207_v14 }
  0x8f   : > { %v218_v16 = vsub.f32 %v456_v2, %v216_v15 }
  0x91   : > { %v220_v17 = vmul.f32 %v218_v16, %v218_v16 }
  0x93   : > { %223 = vadd.xlane.f32.xlu1 %v220_v17 }
  0xfe   : > { %v222_v25 = vpop.xlane.xlu1 %221 }
  0xff   : > { %v225_v27 = vmul.f32 %v222_v25, %v214_v9 }
 0x101   : > { %v227_v28 = vadd.f32 1e-05, %v225_v27 }
 0x103   : > { %470 = vrsqrt.f32 %v227_v28  ;;  %vm235_vm2 = vweird.f32 %v227_v28 }
 0x106   : > { %v224_v29 = vpop.xlane.xlu1 %223 }
 0x107   : > { %v226_v30 = vmul.f32 %v224_v29, %v214_v9 }
 0x109   : > { %v471_v31 = vpop.eup %470  ;;  %v228_v32 = vadd.f32 1e-05, %v226_v30 }
 0x10a   : > { %v230_v33 = vmul.f32 %v471_v31, %v227_v28  ;;  %vm236_vm1 = vweird.f32 %v471_v31 }
 0x10b   : > { %472 = vrsqrt.f32 %v228_v32  ;;  %vm237_vm3 = vmor %vm235_vm2, %vm236_vm1  ;;  %vm245_vm5 = vweird.f32 %v228_v32 }
 0x10c   : > { %v231_v34 = vmul.f32 %v471_v31, %v230_v33 }
 0x10e   : > { %v232_v35 = vmul.f32 0.5, %v231_v34 }
 0x110   : > { %v233_v36 = vsub.f32 1.5, %v232_v35 }
 0x111   : > { %v473_v37 = vpop.eup %472 }
 0x112   : > { %v234_v38 = vmul.f32 %v471_v31, %v233_v36  ;;  %v240_v39 = vmul.f32 %v473_v37, %v228_v32  ;;  %vm246_vm4 = vweird.f32 %v473_v37 }
 0x113   : > { %vm247_vm6 = vmor %vm245_vm5, %vm246_vm4 }
 0x114   : > { %v241_v40 = vmul.f32 %v473_v37, %v240_v39  ;;  %v238_v42 = vsel %vm237_vm3, %v471_v31, %v234_v38 }
 0x115   : > { %v249_v44 = vmul.f32 %v238_v42, %v217_v12 }
 0x116   : > { %v242_v41 = vmul.f32 0.5, %v241_v40 }
 0x117   : > { %v254_v49 = vmul.f32 %v466_v45, %v249_v44 }
 0x118   : > { %v243_v43 = vsub.f32 1.5, %v242_v41 }
 0x119   : > { %v259_v52 = vadd.f32 %v467_v50, %v254_v49 }
 0x11a   : > { %v244_v46 = vmul.f32 %v473_v37, %v243_v43 }
 0x11c   : > { %v248_v47 = vsel %vm247_vm6, %v473_v37, %v244_v46 }
 0x11d   : > { %v250_v48 = vmul.f32 %v248_v47, %v218_v16 }
 0x11f   : > { %v255_v51 = vmul.f32 %v466_v45, %v250_v48 }
 0x121   : > { %v260_v53 = vadd.f32 %v467_v50, %v255_v51 }
 0x123   : > { %v277_v54 = vpack.c.bf16 %v260_v53, %v259_v52 }
 0x125   : > { %334 = vmatmul.bf16.vlgmr.msra.gmra.mxu0 %v277_v54 }
 0x1a2   : > { %v335_v55 = vpop.f32.mrf.mxu0 }
 0x1a3   : > { %v340_v56 = vpack.c.bf16 %v335_v55, %v335_v55 }
 0x1a5   : > { %343 = vst.msk [vmem:[%s197_s20] sm:$0xf] %vm342_vm7, %v340_v56 }
 0x1aa   : > { %v337_v57 = vpop.f32.mrf.mxu0 }
 0x1ab   : > { %v341_v58 = vpack.c.bf16 %v337_v57, %v337_v57 }
 0x1ad   : > { %344 = vst.msk [vmem:[%s197_s20 + $0x4] sm:$0xf] %vm342_vm7, %v341_v58 }
 0x1ae PF: > { %s14_s15 = sadd.s32 1, %s480_s15  }
 0x1af   : > { %p11_p4 = scmp.ge.s32.totalorder %s14_s15, 4  }
 0x1b1   :  { %13 = sbr.rel (!%p11_p4) target bundleno = 1 (0x1), region = 66 }

// kernel: model_out_forward.13
= control target key start
LH: loop header
LB: loop body
LE: loop exit
PB: predicated region body
PF: predicated region fallthrough
CT: control target
= control target key end

     0   :  { %vm32_vm0 = vcmask 523264   ;;  %s455_s0 = inlined_call_operand.vmem [shape: bf16[2,16,64], index: 0, kind: input, shape index: {}]   ;;  %s456_s1 = inlined_call_operand.vmem [shape: f32[1,64], index: 1, kind: input, shape index: {}]   ;;  %s457_s2 = inlined_call_operand.vmem [shape: f32[1,64], index: 2, kind: input, shape index: {}]   ;;  %s458_s3 = inlined_call_operand.vmem [shape: bf16[64,3], index: 3, kind: input, shape index: {}]   ;;  %s459_s4 = inlined_call_operand.vmem [shape: f32[1,3], index: 4, kind: input, shape index: {}]   ;;  %s460_s5 = inlined_call_operand.hbm [shape: f32[2,3], index: 5, kind: output, shape index: {}]  }
   0x1   :  { %v301_v0 = vld [vmem:[%s455_s0 + $0x8] sm:$0xff]   ;;  %v294_v1 = vld [vmem:[%s455_s0] sm:$0xff]  }
   0x2   :  { %v299_v2 = vunpack.c.l.bf16 %v301_v0  ;;  %v295_v3 = vunpack.c.l.bf16 %v294_v1 }
   0x3   :  { %10 = vsyncpa [#allocation3], 0  ;;  %v300_v6 = vunpack.c.h.bf16 %v301_v0  ;;  %v296_v7 = vunpack.c.h.bf16 %v294_v1  ;;  %v350_v10 = vmov 64.0   ;;  %v292_v43 = vld [vmem:[%s458_s3 + $0x18] sm:$0xff]  ;;  %v291_v48 = vld [vmem:[%s458_s3 + $0x10] sm:$0xff]  ;;  %vm187_vm15 = vcmask 1041409  }
   0x4   :  { %v39_v4 = vsel %vm32_vm0, %v299_v2, 0.0  ;;  %v33_v5 = vsel %vm32_vm0, %v295_v3, 0.0  ;;  %308 = vrcp.f32 %v350_v10  ;;  %221 = vmatpush.bf16.msra.mxu0 %v292_v43  ;;  %v290_v55 = vld [vmem:[%s458_s3 + $0x8] sm:$0xff]  ;;  %v289_v60 = vld [vmem:[%s458_s3] sm:$0xff]  ;;  %s263_s10 = sshll.u32 %s460_s5, 4  ;;  %s264_s10 = int_to_ptr.hbm [resolvable:$true] %s263_s10 }
   0x5   :  { %40 = vadd.xlane.f32.xlu1 %v39_v4  ;;  %34 = vadd.xlane.f32.xlu0 %v33_v5  ;;  %v42_v8 = vsel %vm32_vm0, %v300_v6, 0.0  ;;  %v36_v9 = vsel %vm32_vm0, %v296_v7, 0.0 }
   0x8   :  { %222 = vmatpush.bf16.msra.mxu0 %v291_v48 }
   0xa   :  { %v309_v11 = vpop.eup %308 }
   0xb   :  { %v46_v12 = vmul.f32 64.0, %v309_v11  ;;  %vm50_vm1 = vweird.f32 %v309_v11 }
   0xc   :  { %223 = vmatpush.bf16.msra.mxu0 %v290_v55 }
   0xd   :  { %43 = vadd.xlane.f32.xlu1 %v42_v8  ;;  %37 = vadd.xlane.f32.xlu0 %v36_v9  ;;  %v47_v13 = vsub.f32 1.0, %v46_v12  ;;  %v305_v12 = vld [vmem:[%s456_s1] ss:$0 sm:$0xff] }
   0xf   :  { %v48_v14 = vmul.f32 %v309_v11, %v47_v13 }
  0x10   :  { %224 = vmatpush.bf16.msra.mxu0 %v289_v60 }
  0x11   :  { %v49_v15 = vadd.f32 %v309_v11, %v48_v14 }
  0x13   :  { %v51_v16 = vsel %vm50_vm1, %v309_v11, %v49_v15  ;;  %v351_v11 = vmov 16.0   ;;  %vm230_vm1 = vcmask 17408  }
  0x78   :  { %v41_v17 = vpop.xlane.xlu1 %40  ;;  %v35_v18 = vpop.xlane.xlu0 %34 }
  0x79   :  { %v54_v19 = vmul.f32 %v51_v16, %v41_v17  ;;  %v52_v20 = vmul.f32 %v51_v16, %v35_v18 }
  0x7b   :  { %v393_v21 = vsub.f32 %v299_v2, %v54_v19  ;;  %v395_v22 = vsub.f32 %v295_v3, %v52_v20  ;;  %v306_v19 = vld [vmem:[%s457_s2] ss:$0 sm:$0xff] }
  0x7d   :  { %v62_v23 = vmul.f32 %v393_v21, %v393_v21  ;;  %v60_v24 = vmul.f32 %v395_v22, %v395_v22 }
  0x7f   :  { %v70_v25 = vsel %vm32_vm0, %v62_v23, 0.0  ;;  %v64_v26 = vsel %vm32_vm0, %v60_v24, 0.0 }
  0x80   :  { %v44_v27 = vpop.xlane.xlu1 %43  ;;  %71 = vadd.xlane.f32.xlu0 %v70_v25  ;;  %65 = vadd.xlane.f32.xlu2 %v64_v26  ;;  %v38_v28 = vpop.xlane.xlu0 %37 }
  0x81   :  { %v55_v29 = vmul.f32 %v51_v16, %v44_v27  ;;  %v53_v30 = vmul.f32 %v51_v16, %v38_v28 }
  0x83   :  { %v403_v31 = vsub.f32 %v300_v6, %v55_v29  ;;  %v405_v32 = vsub.f32 %v296_v7, %v53_v30 }
  0x85   :  { %v63_v33 = vmul.f32 %v403_v31, %v403_v31  ;;  %v61_v34 = vmul.f32 %v405_v32, %v405_v32 }
  0x87   :  { %v73_v35 = vsel %vm32_vm0, %v63_v33, 0.0  ;;  %v67_v36 = vsel %vm32_vm0, %v61_v34, 0.0 }
  0x88   :  { %74 = vadd.xlane.f32.xlu1 %v73_v35  ;;  %68 = vadd.xlane.f32.xlu2 %v67_v36 }
  0xf3   :  { %v66_v37 = vpop.xlane.xlu2 %65  ;;  %v72_v38 = vpop.xlane.xlu0 %71 }
  0xf4   :  { %v76_v39 = vmul.f32 %v66_v37, %v51_v16  ;;  %v78_v40 = vmul.f32 %v72_v38, %v51_v16 }
  0xf6   :  { %v80_v41 = vadd.f32 1e-05, %v76_v39  ;;  %v82_v42 = vadd.f32 1e-05, %v78_v40 }
  0xf8   :  { %310 = vrsqrt.f32 %v80_v41  ;;  %vm90_vm4 = vweird.f32 %v80_v41  ;;  %vm110_vm6 = vweird.f32 %v82_v42 }
  0xf9   :  { %312 = vrsqrt.f32 %v82_v42 }
  0xfb   :  { %v75_v44 = vpop.xlane.xlu1 %74  ;;  %v69_v45 = vpop.xlane.xlu2 %68 }
  0xfc   :  { %v79_v46 = vmul.f32 %v75_v44, %v51_v16  ;;  %v77_v47 = vmul.f32 %v69_v45, %v51_v16 }
  0xfe   :  { %v311_v49 = vpop.eup %310  ;;  %v83_v50 = vadd.f32 1e-05, %v79_v46  ;;  %v81_v51 = vadd.f32 1e-05, %v77_v47 }
  0xff   :  { %v313_v52 = vpop.eup %312  ;;  %v85_v53 = vmul.f32 %v311_v49, %v80_v41  ;;  %vm91_vm2 = vweird.f32 %v311_v49 }
 0x100   :  { %v105_v54 = vmul.f32 %v313_v52, %v82_v42  ;;  %314 = vrsqrt.f32 %v83_v50  ;;  %vm111_vm3 = vweird.f32 %v313_v52  ;;  %vm425_vm5 = vmor %vm90_vm4, %vm91_vm2  ;;  %vm120_vm10 = vweird.f32 %v83_v50 }
 0x101   :  { %v86_v56 = vmul.f32 %v311_v49, %v85_v53  ;;  %316 = vrsqrt.f32 %v81_v51  ;;  %vm112_vm7 = vmor %vm110_vm6, %vm111_vm3  ;;  %vm100_vm12 = vweird.f32 %v81_v51 }
 0x102   :  { %v106_v57 = vmul.f32 %v313_v52, %v105_v54  ;;  %318 = vrcp.f32 %v351_v11 }
 0x103   :  { %v87_v58 = vmul.f32 0.5, %v86_v56 }
 0x104   :  { %v107_v59 = vmul.f32 0.5, %v106_v57 }
 0x105   :  { %v88_v61 = vsub.f32 1.5, %v87_v58 }
 0x106   :  { %v315_v62 = vpop.eup %314  ;;  %v108_v63 = vsub.f32 1.5, %v107_v59 }
 0x107   :  { %v317_v0 = vpop.eup %316  ;;  %v89_v1 = vmul.f32 %v311_v49, %v88_v61  ;;  %v115_v2 = vmul.f32 %v315_v62, %v83_v50  ;;  %vm121_vm8 = vweird.f32 %v315_v62 }
 0x108   :  { %v109_v4 = vmul.f32 %v313_v52, %v108_v63  ;;  %v95_v5 = vmul.f32 %v317_v0, %v81_v51  ;;  %vm101_vm9 = vweird.f32 %v317_v0  ;;  %vm122_vm11 = vmor %vm120_vm10, %vm121_vm8  ;;  %v319_v24 = vpop.eup %318 }
 0x109   :  { %v116_v6 = vmul.f32 %v315_v62, %v115_v2  ;;  %v93_v7 = vsel %vm425_vm5, %v311_v49, %v89_v1  ;;  %vm102_vm13 = vmor %vm100_vm12, %vm101_vm9  ;;  %v161_v30 = vmul.f32 16.0, %v319_v24  ;;  %vm165_vm14 = vweird.f32 %v319_v24  ;;  %v307_v1 = vld [vmem:[%s459_s4] ss:$0 sm:$0xff]  ;;  %s352_s4 = smov [#allocation2]  }
 0x10a   :  { %v113_v8 = vsel %vm112_vm7, %v313_v52, %v109_v4  ;;  %v96_v9 = vmul.f32 %v317_v0, %v95_v5  ;;  %v124_v15 = vmul.f32 %v93_v7, %v395_v22  ;;  %s261_s7 = sshll.u32 %s352_s4, 4  ;;  %s262_s7 = int_to_ptr.vmem [resolvable:$true] %s261_s7 }
 0x10b   :  { %v117_v10 = vmul.f32 0.5, %v116_v6  ;;  %v126_v13 = vmul.f32 %v113_v8, %v393_v21  ;;  %v162_v39 = vsub.f32 1.0, %v161_v30 }
 0x10c   :  { %v97_v14 = vmul.f32 0.5, %v96_v9  ;;  %v131_v25 = vmul.f32 %v305_v12, %v124_v15 }
 0x10d   :  { %v118_v16 = vsub.f32 1.5, %v117_v10  ;;  %v133_v20 = vmul.f32 %v305_v12, %v126_v13  ;;  %v163_v44 = vmul.f32 %v319_v24, %v162_v39 }
 0x10e   :  { %v98_v17 = vsub.f32 1.5, %v97_v14  ;;  %v138_v33 = vadd.f32 %v306_v19, %v131_v25 }
 0x10f   :  { %v119_v18 = vmul.f32 %v315_v62, %v118_v16  ;;  %v140_v28 = vadd.f32 %v306_v19, %v133_v20  ;;  %v164_v49 = vadd.f32 %v319_v24, %v163_v44 }
 0x110   :  { %v99_v23 = vmul.f32 %v317_v0, %v98_v17  ;;  %v142_v40 = vsel %vm32_vm0, %v138_v33, 0.0 }
 0x111   :  { %v123_v21 = vsel %vm122_vm11, %v315_v62, %v119_v18  ;;  %v151_v37 = vsel %vm32_vm0, %v140_v28, 0.0  ;;  %v166_v54 = vsel %vm165_vm14, %v319_v24, %v164_v49 }
 0x112   :  { %v127_v22 = vmul.f32 %v123_v21, %v403_v31  ;;  %v103_v26 = vsel %vm102_vm13, %v317_v0, %v99_v23 }
 0x113   :  { %v125_v27 = vmul.f32 %v103_v26, %v405_v32 }
 0x114   :  { %v134_v29 = vmul.f32 %v305_v12, %v127_v22 }
 0x115   :  { %v132_v34 = vmul.f32 %v305_v12, %v125_v27 }
 0x116   :  { %v141_v35 = vadd.f32 %v306_v19, %v134_v29 }
 0x117   :  { %v139_v36 = vadd.f32 %v306_v19, %v132_v34 }
 0x118   :  { %v152_v38 = vsel %vm32_vm0, %v141_v35, 0.0 }
 0x119   :  { %v153_v41 = vadd.f32 %v152_v38, %v151_v37  ;;  %v143_v31 = vsel %vm32_vm0, %v139_v36, 0.0 }
 0x11a   :  { %v144_v42 = vadd.f32 %v143_v31, %v142_v40 }
 0x11b   :  { %v154_v43 = vrot.slane %v153_v41, 4 }
 0x11c   :  { %v145_v32 = vrot.slane %v144_v42, 4 }
 0x11d   :  { %v155_v45 = vadd.f32 %v154_v43, %v153_v41 }
 0x11e   :  { %v146_v46 = vadd.f32 %v145_v32, %v144_v42 }
 0x11f   :  { %v156_v47 = vrot.slane %v155_v45, 2 }
 0x120   :  { %v147_v48 = vrot.slane %v146_v46, 2 }
 0x121   :  { %v157_v50 = vadd.f32 %v156_v47, %v155_v45 }
 0x122   :  { %v148_v51 = vadd.f32 %v147_v48, %v146_v46 }
 0x123   :  { %v158_v52 = vrot.slane %v157_v50, 1 }
 0x124   :  { %v149_v53 = vrot.slane %v148_v51, 1 }
 0x125   :  { %v159_v55 = vadd.f32 %v158_v52, %v157_v50 }
 0x126   :  { %v150_v56 = vadd.f32 %v149_v53, %v148_v51 }
 0x127   :  { %v168_v57 = vmul.f32 %v166_v54, %v159_v55 }
 0x128   :  { %v167_v58 = vmul.f32 %v166_v54, %v150_v56 }
 0x129   :  { %v178_v59 = vpack.c.bf16 %v168_v57, %v168_v57 }
 0x12a   :  { %v177_v60 = vpack.c.bf16 %v167_v58, %v167_v58 }
 0x12b   :  { %v186_v61 = vunpack.c.l.b16 %v178_v59 }
 0x12c   :  { %v185_v62 = vunpack.c.l.b16 %v177_v60 }
 0x12e   :  { %v188_v63 = vsel %vm187_vm15, %v186_v61, %v185_v62 }
 0x12f   :  { %v189_v0 = vpack.c.b16 %v188_v63, %v188_v63 }
 0x131   :  { %288 = vmatmul.msk.bf16.vlgmr.msra.gmra.mxu0 %vm32_vm0, %v189_v0 }
 0x1ae   :  { %v226_v2 = vpop.f32.mrf.mxu0 }
 0x1af   :  { %v227_v3 = vadd.f32 %v307_v1, %v226_v2 }
 0x1b1   :  { %v231_v4 = vsel %vm230_vm1, %v227_v3, -inf }
 0x1b2   :  { %232 = vmax.xlane.f32.xlu2 %v231_v4 }
 0x1b6   :  { %v228_v5 = vpop.f32.mrf.mxu0 }
 0x225   :  { %v233_v6 = vpop.xlane.xlu2 %232 }
 0x226   :  { %v234_v7 = vsub.f32 %v227_v3, %v233_v6 }
 0x228   :  { %v235_v8 = vmul.f32 1.442695, %v234_v7 }
 0x22a   :  { %320 = vpow2.f32 %v235_v8 }
 0x230   :  { %v321_v9 = vpop.eup %320 }
 0x231   :  { %v237_v10 = vsel %vm230_vm1, %v321_v9, 0.0 }
 0x232   :  { %238 = vadd.xlane.f32.xlu0 %v237_v10 }
 0x2a5   :  { %v239_v11 = vpop.xlane.xlu0 %238 }
 0x2a6   :  { %322 = vrcp.f32 %v239_v11  ;;  %v251_v15 = vand.u32 2147483648, %v239_v11  ;;  %v249_v17 = vand.u32 2147483647, %v239_v11  ;;  %vm245_vm2 = vweird.f32 %v239_v11 }
 0x2a8   :  { %v252_v19 = vor.u32 1.1754944e-38, %v251_v15  ;;  %vm250_vm4 = vcmp.eq.f32.partialorder %v249_v17, 8.507059e+37 }
 0x2ac   :  { %v323_v12 = vpop.eup %322 }
 0x2ad   :  { %v241_v13 = vmul.f32 %v323_v12, %v239_v11  ;;  %vm246_vm0 = vweird.f32 %v323_v12 }
 0x2ae   :  { %vm247_vm3 = vmor %vm245_vm2, %vm246_vm0 }
 0x2af   :  { %v242_v14 = vsub.f32 1.0, %v241_v13 }
 0x2b1   :  { %v243_v16 = vmul.f32 %v323_v12, %v242_v14 }
 0x2b3   :  { %v244_v18 = vadd.f32 %v323_v12, %v243_v16 }
 0x2b5   :  { %v248_v20 = vsel %vm247_vm3, %v323_v12, %v244_v18 }
 0x2b6   :  { %v253_v23 = vsel %vm250_vm4, %v252_v19, %v248_v20 }
 0x2b7   :  { %v254_v24 = vmul.f32 %v321_v9, %v253_v23 }
 0x2b9   :  { %255 = vst.msk [vmem:[#allocation2] sm:$0x3] %vm230_vm1, %v254_v24 }
 0x2ba   :  { %266 = dma.vmem_to_hbm [thread:$0]  %s262_s7, 32, %s264_s10, [#allocation3]  }
 0x2bb   :  { %348 = dma.done.wait [#allocation3], 32  }
 0x2bc   :  { %349 = vsyncadd [#allocation3], 4294967264 }
 0x2bd   :  { %271 = vsyncpa [#allocation3], 1 }

// kernel: model_out_forward.11
= control target key start
LH: loop header
LB: loop body
LE: loop exit
PB: predicated region body
PF: predicated region fallthrough
CT: control target
= control target key end

     0   :  { %s1957_s29 = smov 0   ;;  %s2424_s0 = inlined_call_operand.vmem [shape: bf16[2,1,16,64], index: 0, kind: input, shape index: {}]   ;;  %s2425_s1 = inlined_call_operand.vmem [shape: f32[1,64], index: 1, kind: input, shape index: {}]   ;;  %s2426_s2 = inlined_call_operand.vmem [shape: f32[1,64], index: 2, kind: input, shape index: {}]   ;;  %s2427_s3 = inlined_call_operand.vmem [shape: bf16[64,192], index: 3, kind: input, shape index: {}]   ;;  %s2428_s4 = inlined_call_operand.vmem [shape: f32[1,192], index: 4, kind: input, shape index: {}]   ;;  %s2429_s5 = inlined_call_operand.vmem [shape: f32[4,1,16,16], index: 5, kind: input, shape index: {}]   ;;  %s2430_s6 = inlined_call_operand.vmem [shape: bf16[64,64], index: 6, kind: input, shape index: {}]   ;;  %s2431_s7 = inlined_call_operand.vmem [shape: f32[1,64], index: 7, kind: input, shape index: {}]   ;;  %s2432_s8 = inlined_call_operand.vmem [shape: f32[1,64], index: 8, kind: input, shape index: {}]   ;;  %s2433_s9 = inlined_call_operand.vmem [shape: f32[1,64], index: 9, kind: input, shape index: {}]   ;;  %s2434_s10 = inlined_call_operand.vmem [shape: bf16[64,256], index: 10, kind: input, shape index: {}]   ;;  %s2435_s11 = inlined_call_operand.vmem [shape: f32[1,256], index: 11, kind: input, shape index: {}]   ;;  %s2436_s12 = inlined_call_operand.vmem [shape: bf16[256,64], index: 12, kind: input, shape index: {}]   ;;  %s2437_s13 = inlined_call_operand.vmem [shape: f32[1,64], index: 13, kind: input, shape index: {}]   ;;  %s2438_s14 = inlined_call_operand.vmem [shape: bf16[2,1,16,64], index: 14, kind: output, shape index: {}]  }
   0x1 LB: > { %s1574_s30 = sadd.s32 4294967295, %s1872_s29   ;;  %p1578_p0 = scmp.ge.s32.totalorder %s1872_s29, 1  ;;  %s1872_s29 = sphi %s1957_s29, %s24_s29  }
   0x2   : > { %p412_p1 = scmp.lt.s32.totalorder %s1872_s29, 3 }
   0x4   : > { %p413_p2 = pnand %p1578_p0, %p412_p1 }
   0x5   : > { %p458_p3 = scmp.lt.s32.totalorder (!%p413_p2), %s1574_s30, 1  ;;  %s1876_s23 = smov (!%p413_p2), 48  }
   0x6   : > { %416 = sbr.rel (%p413_p2) target bundleno = 2793 (0xae9), region = 76  ;;  %s1877_s24 = smov (!%p413_p2), 112  }
   0x7   : > { %s1878_s16 = smov (!%p413_p2), 80   ;;  %s1879_s17 = smov (!%p413_p2), 32  }
   0x8   : > { %s1881_s19 = smov (!%p413_p2), 96  }
   0xb   : > { %s2442_s30 = smov (!%p458_p3, %s1574_s30), 1  ;;  %vm475_vm0 = vcmask 523264   ;;  %v1874_v5 = vmov 64.0   ;;  %v1609_v22 = vld [vmem:[%s2427_s3 + $0x30] sm:$0xf]  ;;  %vm634_vm8 = vcmask 130048  }
   0xc   : > { %s1752_s15 = sshll.u32 %s2442_s30, 3  ;;  %1816 = vrcp.f32 %v1874_v5  ;;  %v1761_v23 = vld [vmem:[%s2427_s3 + $0x34] sm:$0xf0]  ;;  %v1601_v25 = vld [vmem:[%s2427_s3 + $0x20] sm:$0xf]  ;;  %vm795_vm9 = vcmask 261248  }
   0xd   : > { %s462_s18 = scalar_lea.vmem %s2424_s0, %s1752_s15  ;;  %v1610_v24 = vor.u32 %v1761_v23, %v1609_v22  ;;  %v1759_v26 = vld [vmem:[%s2427_s3 + $0x24] sm:$0xf0]  ;;  %v1593_v28 = vld [vmem:[%s2427_s3 + $0x10] sm:$0xf]  ;;  %v1757_v29 = vld [vmem:[%s2427_s3 + $0x14] sm:$0xf0] }
   0xe   : > { %v1791_v0 = vld [vmem:[%s462_s18] sm:$0xff]   ;;  %v1602_v27 = vor.u32 %v1759_v26, %v1601_v25  ;;  %v1594_v30 = vor.u32 %v1757_v29, %v1593_v28  ;;  %v1755_v32 = vld [vmem:[%s2427_s3 + $0x4] sm:$0xf0]  ;;  %v1760_v37 = vld [vmem:[%s2427_s3 + $0x34] sm:$0xf]  ;;  %s1875_s18 = smov 64  }
   0xf   : > { %v1973_v1 = vunpack.c.l.bf16 %v1791_v0  ;;  %v1977_v3 = vunpack.c.h.bf16 %v1791_v0  ;;  %599 = vmatpush.bf16.msra.mxu1 %v1610_v24  ;;  %v1585_v31 = vld [vmem:[%s2427_s3] sm:$0xf]  ;;  %v1611_v38 = vld [vmem:[%s2427_s3 + $0x38] sm:$0xf0]  ;;  %v1758_v40 = vld [vmem:[%s2427_s3 + $0x24] sm:$0xf] }
  0x10   : > { %v1586_v34 = vor.u32 %v1755_v32, %v1585_v31  ;;  %v1614_v39 = vor.u32 %v1760_v37, %v1611_v38  ;;  %v1603_v41 = vld [vmem:[%s2427_s3 + $0x28] sm:$0xf0]  ;;  %v1756_v45 = vld [vmem:[%s2427_s3 + $0x14] sm:$0xf]  ;;  %v1595_v46 = vld [vmem:[%s2427_s3 + $0x18] sm:$0xf0] }
  0x11   : > { %v476_v2 = vsel %vm475_vm0, %v1973_v1, 0.0  ;;  %v479_v4 = vsel %vm475_vm0, %v1977_v3, 0.0  ;;  %v1606_v43 = vor.u32 %v1758_v40, %v1603_v41  ;;  %v1598_v50 = vor.u32 %v1756_v45, %v1595_v46  ;;  %v1754_v51 = vld [vmem:[%s2427_s3 + $0x4] sm:$0xf]  ;;  %v1587_v52 = vld [vmem:[%s2427_s3 + $0x8] sm:$0xf0] }
  0x12   : > { %477 = vadd.xlane.f32.xlu0 %v476_v2  ;;  %v1817_v6 = vpop.eup %1816  ;;  %v1590_v55 = vor.u32 %v1754_v51, %v1587_v52  ;;  %v1810_v2 = vld [vmem:[%s2425_s1] ss:$0 sm:$0xff]  ;;  %v626_v41 = vld [vmem:[%s2429_s5 + $0x8] sm:$0xff]  ;;  %vm882_vm10 = vcmask 392448   ;;  %vm969_vm11 = vcmask 523648  }
  0x13   : > { %v483_v7 = vmul.f32 64.0, %v1817_v6  ;;  %vm487_vm1 = vweird.f32 %v1817_v6  ;;  %600 = vmatpush.bf16.msra.mxu1 %v1602_v27  ;;  %v625_v37 = vld [vmem:[%s2429_s5] sm:$0xff] }
  0x15   : > { %v484_v8 = vsub.f32 1.0, %v483_v7 }
  0x17   : > { %v485_v9 = vmul.f32 %v1817_v6, %v484_v8  ;;  %601 = vmatpush.bf16.msra.mxu1 %v1594_v30  ;;  %v1811_v8 = vld [vmem:[%s2426_s2] ss:$0 sm:$0xff] }
  0x19   : > { %v486_v10 = vadd.f32 %v1817_v6, %v485_v9 }
  0x1a   : > { %480 = vadd.xlane.f32.xlu0 %v479_v4 }
  0x1b   : > { %v1981_v11 = vsel %vm487_vm1, %v1817_v6, %v486_v10  ;;  %602 = vmatpush.bf16.msra.mxu1 %v1586_v34 }
  0x1f   : > { %613 = vmatpush.bf16.msrb.mxu1 %v1614_v39 }
  0x23   : > { %614 = vmatpush.bf16.msrb.mxu1 %v1606_v43 }
  0x27   : > { %615 = vmatpush.bf16.msrb.mxu1 %v1598_v50 }
  0x2b   : > { %616 = vmatpush.bf16.msrb.mxu1 %v1590_v55 }
  0x85   : > { %v478_v12 = vpop.xlane.xlu0 %477 }
  0x86   : > { %v489_v13 = vmul.f32 %v1981_v11, %v478_v12 }
  0x88   : > { %v1985_v14 = vsub.f32 %v1973_v1, %v489_v13 }
  0x8a   : > { %v493_v15 = vmul.f32 %v1985_v14, %v1985_v14 }
  0x8c   : > { %v495_v16 = vsel %vm475_vm0, %v493_v15, 0.0 }
  0x8d   : > { %496 = vadd.xlane.f32.xlu1 %v495_v16  ;;  %v481_v17 = vpop.xlane.xlu0 %480 }
  0x8e   : > { %v490_v18 = vmul.f32 %v1981_v11, %v481_v17 }
  0x90   : > { %v1992_v19 = vsub.f32 %v1977_v3, %v490_v18 }
  0x92   : > { %v494_v20 = vmul.f32 %v1992_v19, %v1992_v19 }
  0x94   : > { %v498_v21 = vsel %vm475_vm0, %v494_v20, 0.0 }
  0x95   : > { %499 = vadd.xlane.f32.xlu1 %v498_v21 }
 0x100   : > { %v497_v33 = vpop.xlane.xlu1 %496 }
 0x101   : > { %v501_v35 = vmul.f32 %v497_v33, %v1981_v11 }
 0x103   : > { %v503_v36 = vadd.f32 1e-05, %v501_v35 }
 0x105   : > { %1818 = vrsqrt.f32 %v503_v36  ;;  %vm511_vm3 = vweird.f32 %v503_v36 }
 0x108   : > { %v500_v42 = vpop.xlane.xlu1 %499 }
 0x109   : > { %v502_v44 = vmul.f32 %v500_v42, %v1981_v11 }
 0x10b   : > { %v1819_v47 = vpop.eup %1818  ;;  %v504_v48 = vadd.f32 1e-05, %v502_v44 }
 0x10c   : > { %v506_v49 = vmul.f32 %v1819_v47, %v503_v36  ;;  %vm512_vm2 = vweird.f32 %v1819_v47 }
 0x10d   : > { %1820 = vrsqrt.f32 %v504_v48  ;;  %vm513_vm4 = vmor %vm511_vm3, %vm512_vm2  ;;  %vm521_vm6 = vweird.f32 %v504_v48 }
 0x10e   : > { %v507_v53 = vmul.f32 %v1819_v47, %v506_v49 }
 0x110   : > { %v508_v54 = vmul.f32 0.5, %v507_v53 }
 0x112   : > { %v509_v56 = vsub.f32 1.5, %v508_v54 }
 0x113   : > { %v1821_v57 = vpop.eup %1820 }
 0x114   : > { %v510_v58 = vmul.f32 %v1819_v47, %v509_v56  ;;  %v516_v59 = vmul.f32 %v1821_v57, %v504_v48  ;;  %vm522_vm5 = vweird.f32 %v1821_v57 }
 0x115   : > { %vm523_vm7 = vmor %vm521_vm6, %vm522_vm5 }
 0x116   : > { %v517_v60 = vmul.f32 %v1821_v57, %v516_v59  ;;  %v514_v61 = vsel %vm513_vm4, %v1819_v47, %v510_v58 }
 0x117   : > { %v525_v0 = vmul.f32 %v514_v61, %v1985_v14  ;;  %v546_v14 = vld [vmem:[%s2428_s4] sm:$0x3] }
 0x118   : > { %v518_v62 = vmul.f32 0.5, %v517_v60  ;;  %v548_v16 = vperm.slane %v546_v14, 0  ;;  %v549_v26 = vperm.slane %v546_v14, 1  ;;  %v1620_v14 = vld [vmem:[%s2429_s5 + $0x18] sm:$0xff] }
 0x119   : > { %v530_v7 = vmul.f32 %v1810_v2, %v525_v0 }
 0x11a   : > { %v519_v63 = vsub.f32 1.5, %v518_v62 }
 0x11b   : > { %v535_v10 = vadd.f32 %v1811_v8, %v530_v7 }
 0x11c   : > { %v520_v4 = vmul.f32 %v1821_v57, %v519_v63 }
 0x11e   : > { %v524_v5 = vsel %vm523_vm7, %v1821_v57, %v520_v4 }
 0x11f   : > { %v526_v6 = vmul.f32 %v524_v5, %v1992_v19 }
 0x121   : > { %v531_v9 = vmul.f32 %v1810_v2, %v526_v6 }
 0x123   : > { %v536_v12 = vadd.f32 %v1811_v8, %v531_v9  ;;  %v1619_v9 = vld [vmem:[%s2429_s5 + $0x10] sm:$0xff] }
 0x125   : > { %v537_v13 = vpack.c.bf16 %v536_v12, %v535_v10 }
 0x127   : > { %1615 = vmatmul.msk.bf16.vlgmr.msra.gmra.mxu1 %vm475_vm0, %v537_v13 }
 0x137   : > { %1616 = vmatmul.msk.bf16.vlgmr.msrb.gmra.mxu1 %vm475_vm0, %v537_v13 }
 0x1a4   : > { %v604_v15 = vpop.f32.mrf.mxu1 }
 0x1a5   : > { %v605_v17 = vadd.f32 %v604_v15, %v548_v16 }
 0x1a7   : > { %v623_v19 = vpack.c.bf16 %v605_v17, %v605_v17 }
 0x1a9   : > { %v629_v22 = vunpack.c.l.b16 %v623_v19 }
 0x1ac   : > { %v606_v18 = vpop.f32.mrf.mxu1 }
 0x1ad   : > { %v607_v20 = vadd.f32 %v606_v18, %v548_v16 }
 0x1af   : > { %v624_v21 = vpack.c.bf16 %v607_v20, %v607_v20 }
 0x1b1   : > { %v630_v23 = vunpack.c.l.b16 %v624_v21 }
 0x1b3   : > { %v2060_v24 = vpack.c.b16 %v630_v23, %v629_v22 }
 0x1b4   : > { %v618_v25 = vpop.f32.mrf.mxu1 }
 0x1b5   : > { %632 = vrot.lane.b32.xlu2 %v2060_v24, %s1875_s18  ;;  %v619_v27 = vadd.f32 %v618_v25, %v549_v26  ;;  %s1880_s18 = smov 16  }
 0x1b7   : > { %v679_v29 = vpack.c.bf16 %v619_v27, %v619_v27 }
 0x1b9   : > { %v688_v32 = vunpack.c.l.b16 %v679_v29 }
 0x1bc   : > { %v620_v28 = vpop.f32.mrf.mxu1 }
 0x1bd   : > { %v621_v30 = vadd.f32 %v620_v28, %v549_v26 }
 0x1bf   : > { %v680_v31 = vpack.c.bf16 %v621_v30, %v621_v30 }
 0x1c1   : > { %v689_v33 = vunpack.c.l.b16 %v680_v31 }
 0x1c3   : > { %v2063_v34 = vpack.c.b16 %v689_v33, %v688_v32 }
 0x1c5   : > { %702 = vmatpush.bf16.msra.mxu3 %v2063_v34 }
 0x20f   : > { %v633_v35 = vpop.permute.xlu2 %632 }
 0x210   : > { %v639_v36 = vsel %vm634_vm8, %v633_v35, 0 }
 0x211   : > { %648 = vmatpush.bf16.xpose.msra.mxu2 %v639_v36 }
 0x218   : > { %1617 = vmatmul.msk.bf16.vlgmr.msra.gmra.mxu2 %vm634_vm8, %v2060_v24 }
 0x29b   : > { %v650_v38 = vpop.f32.mrf.mxu2 }
 0x29c   : > { %v651_v39 = vadd.f32 %v650_v38, %v625_v37 }
 0x29e   : > { %v655_v40 = vsel %vm634_vm8, %v651_v39, -inf }
 0x29f   : > { %656 = vmax.xlane.f32.xlu2 %v655_v40 }
 0x2a3   : > { %v652_v42 = vpop.f32.mrf.mxu2 }
 0x2a4   : > { %v653_v43 = vadd.f32 %v652_v42, %v626_v41 }
 0x2a6   : > { %v658_v44 = vsel %vm634_vm8, %v653_v43, -inf }
 0x2a7   : > { %659 = vmax.xlane.f32.xlu0 %v658_v44 }
 0x312   : > { %v657_v45 = vpop.xlane.xlu2 %656 }
 0x313   : > { %v661_v46 = vsub.f32 %v651_v39, %v657_v45 }
 0x315   : > { %v663_v47 = vmul.f32 1.442695, %v661_v46 }
 0x317   : > { %1822 = vpow2.f32 %v663_v47  ;;  %v1623_v47 = vld [vmem:[%s2429_s5 + $0x20] sm:$0xff] }
 0x31a   : > { %v660_v48 = vpop.xlane.xlu0 %659 }
 0x31b   : > { %v662_v49 = vsub.f32 %v653_v43, %v660_v48 }
 0x31d   : > { %v1823_v50 = vpop.eup %1822  ;;  %v665_v51 = vmul.f32 1.442695, %v662_v49 }
 0x31e   : > { %v667_v52 = vsel %vm634_vm8, %v1823_v50, 0.0 }
 0x31f   : > { %1824 = vpow2.f32 %v665_v51  ;;  %668 = vadd.xlane.f32.xlu1 %v667_v52 }
 0x325   : > { %v1825_v53 = vpop.eup %1824 }
 0x326   : > { %v670_v54 = vsel %vm634_vm8, %v1825_v53, 0.0 }
 0x327   : > { %671 = vadd.xlane.f32.xlu0 %v670_v54 }
 0x338   : > { %716 = vrot.lane.b32.xlu1 %v2060_v24, %s1876_s23 }
 0x33b   : > { %714 = vrot.lane.b32.xlu0 %v2060_v24, %s1877_s24 }
 0x392   : > { %v669_v55 = vpop.xlane.xlu1 %668 }
 0x393   : > { %1826 = vrcp.f32 %v669_v55 }
 0x399   : > { %v1827_v57 = vpop.eup %1826 }
 0x39a   : > { %v672_v56 = vpop.xlane.xlu0 %671  ;;  %v675_v58 = vmul.f32 %v1827_v57, %v1823_v50  ;;  %v1624_v57 = vld [vmem:[%s2429_s5 + $0x28] sm:$0xff] }
 0x39b   : > { %1828 = vrcp.f32 %v672_v56 }
 0x39c   : > { %v677_v61 = vpack.c.bf16 %v675_v58, %v675_v58 }
 0x39e   : > { %v683_v63 = vunpack.c.l.b16 %v677_v61 }
 0x3a1   : > { %v1829_v59 = vpop.eup %1828 }
 0x3a2   : > { %v676_v60 = vmul.f32 %v1829_v59, %v1825_v53  ;;  %v1627_v53 = vld [vmem:[%s2429_s5 + $0x30] sm:$0xff]  ;;  %v1628_v59 = vld [vmem:[%s2429_s5 + $0x38] sm:$0xff] }
 0x3a4   : > { %v678_v62 = vpack.c.bf16 %v676_v60, %v676_v60 }
 0x3a6   : > { %v684_v0 = vunpack.c.l.b16 %v678_v62 }
 0x3a8   : > { %v685_v2 = vpack.c.b16 %v684_v0, %v683_v63 }
 0x3aa   : > { %1618 = vmatmul.msk.bf16.vlgmr.msra.gmra.mxu3 %vm634_vm8, %v685_v2  ;;  %v717_v4 = vpop.permute.xlu1 %716 }
 0x3ab   : > { %v722_v5 = vsel %vm634_vm8, %v717_v4, 0 }
 0x3ac   : > { %731 = vmatpush.bf16.xpose.msrb.mxu3 %v722_v5 }
 0x3ad   : > { %v715_v6 = vpop.permute.xlu0 %714 }
 0x3ba   : > { %1621 = vmatmul.msk.bf16.vlgmr.msrb.gmra.mxu3 %vm634_vm8, %v715_v6 }
 0x42d   : > { %v704_v7 = vpop.f32.mrf.mxu3 }
 0x42e   : > { %709 = vst.msk [vmem:[#allocation2] sm:$0xff] %vm634_vm8, %v704_v7 }
 0x435   : > { %v706_v8 = vpop.f32.mrf.mxu3 }
 0x436   : > { %710 = vst.msk [vmem:[#allocation2 + $0x8] sm:$0xff] %vm634_vm8, %v706_v8 }
 0x43d   : > { %v733_v10 = vpop.f32.mrf.mxu3 }
 0x43e   : > { %v734_v12 = vadd.f32 %v1619_v9, %v733_v10 }
 0x440   : > { %v738_v13 = vsel %vm634_vm8, %v734_v12, -inf }
 0x441   : > { %739 = vmax.xlane.f32.xlu1 %v738_v13 }
 0x445   : > { %v735_v15 = vpop.f32.mrf.mxu3 }
 0x446   : > { %v736_v16 = vadd.f32 %v1620_v14, %v735_v15 }
 0x448   : > { %v741_v17 = vsel %vm634_vm8, %v736_v16, -inf }
 0x449   : > { %742 = vmax.xlane.f32.xlu2 %v741_v17 }
 0x45a   : > { %888 = vrot.lane.b32.xlu1 %v2060_v24, %s1878_s16 }
 0x461   : > { %767 = vrot.lane.b32.xlu2 %v2063_v34, %s1877_s24 }
 0x4b4   : > { %v740_v18 = vpop.xlane.xlu1 %739 }
 0x4b5   : > { %v744_v19 = vsub.f32 %v734_v12, %v740_v18 }
 0x4b7   : > { %v746_v20 = vmul.f32 1.442695, %v744_v19 }
 0x4b9   : > { %1830 = vpow2.f32 %v746_v20 }
 0x4bc   : > { %v743_v21 = vpop.xlane.xlu2 %742 }
 0x4bd   : > { %v745_v22 = vsub.f32 %v736_v16, %v743_v21 }
 0x4bf   : > { %v1831_v23 = vpop.eup %1830  ;;  %v748_v25 = vmul.f32 1.442695, %v745_v22 }
 0x4c0   : > { %v750_v26 = vsel %vm634_vm8, %v1831_v23, 0.0 }
 0x4c1   : > { %1832 = vpow2.f32 %v748_v25  ;;  %751 = vadd.xlane.f32.xlu0 %v750_v26 }
 0x4c4   : > { %v768_v27 = vpop.permute.xlu2 %767 }
 0x4c5   : > { %780 = vmatpush.bf16.msra.mxu3 %v768_v27 }
 0x4c7   : > { %v1833_v28 = vpop.eup %1832 }
 0x4c8   : > { %v753_v29 = vsel %vm634_vm8, %v1833_v28, 0.0 }
 0x4c9   : > { %754 = vadd.xlane.f32.xlu2 %v753_v29 }
 0x4cc   : > { %v889_v46 = vpop.permute.xlu1 %888 }
 0x4d5   : > { %803 = vrot.lane.b32.xlu0 %v2060_v24, %s1879_s17 }
 0x4e1   : > { %890 = vrot.lane.b32.xlu2 %v2060_v24, %s1880_s18 }
 0x4e9   : > { %801 = vrot.lane.b32.xlu2 %v2060_v24, %s1881_s19 }
 0x534   : > { %v752_v30 = vpop.xlane.xlu0 %751 }
 0x535   : > { %1834 = vrcp.f32 %v752_v30 }
 0x53b   : > { %v1835_v32 = vpop.eup %1834 }
 0x53c   : > { %v755_v31 = vpop.xlane.xlu2 %754  ;;  %v758_v33 = vmul.f32 %v1835_v32, %v1831_v23 }
 0x53d   : > { %1836 = vrcp.f32 %v755_v31 }
 0x53e   : > { %v760_v36 = vpack.c.bf16 %v758_v33, %v758_v33 }
 0x540   : > { %v764_v42 = vunpack.c.l.b16 %v760_v36 }
 0x543   : > { %v1837_v35 = vpop.eup %1836 }
 0x544   : > { %v759_v37 = vmul.f32 %v1837_v35, %v1833_v28  ;;  %v891_v38 = vpop.permute.xlu2 %890 }
 0x545   : > { %v896_v39 = vsel %vm634_vm8, %v891_v38, 0 }
 0x546   : > { %v761_v40 = vpack.c.bf16 %v759_v37, %v759_v37  ;;  %905 = vmatpush.bf16.xpose.msrb.mxu3 %v896_v39 }
 0x547   : > { %v804_v41 = vpop.permute.xlu0 %803 }
 0x548   : > { %v765_v43 = vunpack.c.l.b16 %v761_v40  ;;  %v809_v44 = vsel %vm634_vm8, %v804_v41, 0 }
 0x549   : > { %818 = vmatpush.bf16.xpose.msra.mxu0 %v809_v44 }
 0x54a   : > { %v766_v24 = vpack.c.b16 %v765_v43, %v764_v42 }
 0x54c   : > { %1622 = vmatmul.msk.bf16.vlgmr.msra.gmra.mxu3 %vm634_vm8, %v766_v24  ;;  %v802_v45 = vpop.permute.xlu2 %801 }
 0x550   : > { %1625 = vmatmul.msk.bf16.vlgmr.msra.gmra.mxu0 %vm634_vm8, %v802_v45 }
 0x55c   : > { %1629 = vmatmul.msk.bf16.vlgmr.msrb.gmra.mxu3 %vm634_vm8, %v889_v46 }
 0x5cd   : > { %v820_v48 = vpop.f32.mrf.mxu0 }
 0x5ce   : > { %v821_v49 = vadd.f32 %v1623_v47, %v820_v48 }
 0x5cf   : > { %v782_v50 = vpop.f32.mrf.mxu3 }
 0x5d0   : > { %v825_v51 = vsel %vm634_vm8, %v821_v49, -inf }
 0x5d1   : > { %826 = vmax.xlane.f32.xlu1 %v825_v51 }
 0x5d5   : > { %v822_v58 = vpop.f32.mrf.mxu0 }
 0x5d6   : > { %v823_v60 = vadd.f32 %v1624_v57, %v822_v58  ;;  %v1762_v57 = vld [vmem:[%s2430_s6] sm:$0xff] }
 0x5d7   : > { %v784_v52 = vpop.f32.mrf.mxu3 }
 0x5d8   : > { %v828_v0 = vsel %vm634_vm8, %v823_v60, -inf }
 0x5df   : > { %v907_v54 = vpop.f32.mrf.mxu3 }
 0x5e0   : > { %v908_v55 = vadd.f32 %v1627_v53, %v907_v54  ;;  %v1765_v54 = vld [vmem:[%s2430_s6 + $0x18] sm:$0xff] }
 0x5e1   : > { %1014 = vmatpush.bf16.msrb.mxu0 %v1765_v54 }
 0x5e2   : > { %v912_v56 = vsel %vm634_vm8, %v908_v55, -inf }
 0x5e3   : > { %913 = vmax.xlane.f32.xlu2 %v912_v56  ;;  %v1763_v56 = vld [vmem:[%s2430_s6 + $0x8] sm:$0xff] }
 0x5e7   : > { %v909_v61 = vpop.f32.mrf.mxu3 }
 0x5e8   : > { %v910_v62 = vadd.f32 %v1628_v59, %v909_v61 }
 0x5ea   : > { %v915_v63 = vsel %vm634_vm8, %v910_v62, -inf }
 0x5eb   : > { %916 = vmax.xlane.f32.xlu0 %v915_v63  ;;  %829 = vmax.xlane.f32.xlu2 %v828_v0 }
 0x644   : > { %v827_v2 = vpop.xlane.xlu1 %826 }
 0x645   : > { %v831_v4 = vsub.f32 %v821_v49, %v827_v2  ;;  %v1812_v2 = vld [vmem:[%s2431_s7] ss:$0 sm:$0xff] }
 0x647   : > { %v833_v5 = vmul.f32 1.442695, %v831_v4 }
 0x649   : > { %1838 = vpow2.f32 %v833_v5 }
 0x64f   : > { %v1839_v6 = vpop.eup %1838 }
 0x650   : > { %v837_v7 = vsel %vm634_vm8, %v1839_v6, 0.0 }
 0x651   : > { %838 = vadd.xlane.f32.xlu1 %v837_v7 }
 0x656   : > { %v914_v8 = vpop.xlane.xlu2 %913 }
 0x657   : > { %v918_v9 = vsub.f32 %v908_v55, %v914_v8  ;;  %v1764_v55 = vld [vmem:[%s2430_s6 + $0x10] sm:$0xff] }
 0x658   : > { %1015 = vmatpush.bf16.msrb.mxu0 %v1764_v55 }
 0x659   : > { %v920_v10 = vmul.f32 1.442695, %v918_v9 }
 0x65b   : > { %1840 = vpow2.f32 %v920_v10 }
 0x65c   : > { %1016 = vmatpush.bf16.msrb.mxu0 %v1763_v56 }
 0x65e   : > { %v917_v12 = vpop.xlane.xlu0 %916  ;;  %v830_v13 = vpop.xlane.xlu2 %829 }
 0x65f   : > { %v919_v14 = vsub.f32 %v910_v62, %v917_v12  ;;  %v832_v15 = vsub.f32 %v823_v60, %v830_v13 }
 0x660   : > { %1017 = vmatpush.bf16.msrb.mxu0 %v1762_v57 }
 0x661   : > { %v1841_v16 = vpop.eup %1840  ;;  %v922_v17 = vmul.f32 1.442695, %v919_v14  ;;  %v835_v18 = vmul.f32 1.442695, %v832_v15 }
 0x662   : > { %v924_v19 = vsel %vm634_vm8, %v1841_v16, 0.0 }
 0x663   : > { %1842 = vpow2.f32 %v922_v17  ;;  %925 = vadd.xlane.f32.xlu2 %v924_v19 }
 0x664   : > { %1844 = vpow2.f32 %v835_v18 }
 0x669   : > { %v1843_v20 = vpop.eup %1842 }
 0x66a   : > { %v1845_v21 = vpop.eup %1844  ;;  %854 = vrot.lane.b32.xlu1 %v2063_v34, %s1881_s19  ;;  %v927_v22 = vsel %vm634_vm8, %v1843_v20, 0.0 }
 0x66b   : > { %928 = vadd.xlane.f32.xlu0 %v927_v22  ;;  %v840_v23 = vsel %vm634_vm8, %v1845_v21, 0.0  ;;  %v1773_v22 = vld [vmem:[%s2434_s10 + $0x34] sm:$0xf0] }
 0x66c   : > { %841 = vadd.xlane.f32.xlu2 %v840_v23  ;;  %v1772_v23 = vld [vmem:[%s2434_s10 + $0x34] sm:$0xf] }
 0x67f   : > { %941 = vrot.lane.b32.xlu0 %v2063_v34, %s1878_s16 }
 0x684   : > { %789 = vrot.lane.b32.xlu2 %v782_v50, %s1880_s18 }
 0x687   : > { %791 = vrot.lane.b32.xlu0 %v784_v52, %s1880_s18 }
 0x6c4   : > { %v839_v25 = vpop.xlane.xlu1 %838 }
 0x6c5   : > { %1846 = vrcp.f32 %v839_v25 }
 0x6cb   : > { %v1847_v30 = vpop.eup %1846 }
 0x6cc   : > { %v845_v31 = vmul.f32 %v1847_v30, %v1839_v6  ;;  %v1770_v30 = vld [vmem:[%s2434_s10 + $0x24] sm:$0xf] }
 0x6ce   : > { %v847_v35 = vpack.c.bf16 %v845_v31, %v845_v31 }
 0x6d0   : > { %v851_v41 = vunpack.c.l.b16 %v847_v35  ;;  %v1769_v35 = vld [vmem:[%s2434_s10 + $0x14] sm:$0xf0] }
 0x6d6   : > { %v926_v26 = vpop.xlane.xlu2 %925 }
 0x6d7   : > { %1848 = vrcp.f32 %v926_v26  ;;  %v1676_v26 = vld [vmem:[%s2434_s10 + $0x38] sm:$0xf0] }
 0x6dc   : > { %v855_v27 = vpop.permute.xlu1 %854 }
 0x6dd   : > { %867 = vmatpush.bf16.msra.mxu1 %v855_v27  ;;  %v1849_v32 = vpop.eup %1848  ;;  %v1679_v27 = vor.u32 %v1772_v23, %v1676_v26 }
 0x6de   : > { %v929_v28 = vpop.xlane.xlu0 %928  ;;  %v932_v39 = vmul.f32 %v1849_v32, %v1841_v16  ;;  %v1668_v32 = vld [vmem:[%s2434_s10 + $0x28] sm:$0xf0] }
 0x6df   : > { %1850 = vrcp.f32 %v929_v28  ;;  %v842_v29 = vpop.xlane.xlu2 %841  ;;  %1164 = vmatpush.bf16.msra.mxu3 %v1679_v27  ;;  %v1666_v28 = vld [vmem:[%s2434_s10 + $0x20] sm:$0xf] }
 0x6e0   : > { %1852 = vrcp.f32 %v842_v29  ;;  %v934_v44 = vpack.c.bf16 %v932_v39, %v932_v39  ;;  %v1771_v29 = vld [vmem:[%s2434_s10 + $0x24] sm:$0xf0] }
 0x6e1   : > { %v1667_v31 = vor.u32 %v1771_v29, %v1666_v28 }
 0x6e2   : > { %v938_v46 = vunpack.c.l.b16 %v934_v44  ;;  %v1766_v44 = vld [vmem:[%s2434_s10 + $0x4] sm:$0xf] }
 0x6e5   : > { %v1851_v33 = vpop.eup %1850 }
 0x6e6   : > { %v1853_v34 = vpop.eup %1852  ;;  %v933_v36 = vmul.f32 %v1851_v33, %v1843_v20  ;;  %v1671_v33 = vor.u32 %v1770_v30, %v1668_v32  ;;  %v1780_v30 = vld [vmem:[%s2436_s12 + $0x30] sm:$0xff] }
 0x6e7   : > { %v846_v37 = vmul.f32 %v1853_v34, %v1845_v21  ;;  %v790_v38 = vpop.permute.xlu2 %789  ;;  %v1674_v21 = vld [vmem:[%s2434_s10 + $0x30] sm:$0xf] }
 0x6e8   : > { %796 = vst.msk [vmem:[#allocation2] sm:$0xff] %vm795_vm9, %v790_v38  ;;  %v935_v42 = vpack.c.bf16 %v933_v36, %v933_v36  ;;  %v1675_v25 = vor.u32 %v1773_v22, %v1674_v21  ;;  %1165 = vmatpush.bf16.msra.mxu3 %v1671_v33  ;;  %v1658_v34 = vld [vmem:[%s2434_s10 + $0x10] sm:$0xf]  ;;  %v1768_v36 = vld [vmem:[%s2434_s10 + $0x14] sm:$0xf]  ;;  %v1781_v22 = vld [vmem:[%s2436_s12 + $0x38] sm:$0xff] }
 0x6e9   : > { %v848_v40 = vpack.c.bf16 %v846_v37, %v846_v37  ;;  %v1659_v37 = vor.u32 %v1769_v35, %v1658_v34  ;;  %v1660_v38 = vld [vmem:[%s2434_s10 + $0x18] sm:$0xf0] }
 0x6ea   : > { %v939_v45 = vunpack.c.l.b16 %v935_v42  ;;  %1150 = vmatpush.bf16.msrb.mxu1 %v1675_v25  ;;  %v1650_v42 = vld [vmem:[%s2434_s10] sm:$0xf]  ;;  %v1789_v35 = vld [vmem:[%s2436_s12 + $0x78] sm:$0xff] }
 0x6eb   : > { %v852_v43 = vunpack.c.l.b16 %v848_v40  ;;  %v1663_v40 = vor.u32 %v1768_v36, %v1660_v38  ;;  %1498 = vmatpush.bf16.msra.mxu0 %v1789_v35  ;;  %v1775_v35 = vld [vmem:[%s2436_s12 + $0x8] sm:$0xff] }
 0x6ec   : > { %v940_v48 = vpack.c.b16 %v939_v45, %v938_v46  ;;  %v1652_v46 = vld [vmem:[%s2434_s10 + $0x8] sm:$0xf0] }
 0x6ed   : > { %v853_v24 = vpack.c.b16 %v852_v43, %v851_v41  ;;  %1166 = vmatpush.bf16.msra.mxu3 %v1663_v40  ;;  %v1767_v43 = vld [vmem:[%s2434_s10 + $0x4] sm:$0xf0] }
 0x6ee   : > { %1151 = vmatpush.bf16.msrb.mxu1 %v1667_v31  ;;  %v1651_v45 = vor.u32 %v1767_v43, %v1650_v42 }
 0x6ef   : > { %1626 = vmatmul.msk.bf16.vlgmr.msra.gmra.mxu1 %vm634_vm8, %v853_v24 }
 0x6f1   : > { %v942_v47 = vpop.permute.xlu0 %941 }
 0x6f2   : > { %954 = vmatpush.bf16.msrb.mxu2 %v942_v47  ;;  %1152 = vmatpush.bf16.msrb.mxu1 %v1659_v37  ;;  %v1655_v47 = vor.u32 %v1766_v44, %v1652_v46  ;;  %v1788_v46 = vld [vmem:[%s2436_s12 + $0x70] sm:$0xff] }
 0x6f3   : > { %1499 = vmatpush.bf16.msra.mxu0 %v1788_v46 }
 0x6f4   : > { %1167 = vmatpush.bf16.msra.mxu3 %v1655_v47 }
 0x6f5   : > { %1630 = vmatmul.msk.bf16.vlgmr.msrb.gmra.mxu2 %vm634_vm8, %v940_v48 }
 0x6f6   : > { %1153 = vmatpush.bf16.msrb.mxu1 %v1651_v45  ;;  %1484 = vmatpush.bf16.msra.mxu2 %v1781_v22 }
 0x6f9   : > { %v792_v49 = vpop.permute.xlu0 %791 }
 0x6fa   : > { %797 = vst.msk [vmem:[#allocation2 + $0x8] sm:$0xff] %vm795_vm9, %v792_v49  ;;  %1485 = vmatpush.bf16.msra.mxu2 %v1780_v30  ;;  %v1785_v30 = vld [vmem:[%s2436_s12 + $0x58] sm:$0xff] }
 0x76c   : > { %v869_v50 = vpop.f32.mrf.mxu1 }
 0x76d   : > { %876 = vrot.lane.b32.xlu1 %v869_v50, %s1879_s17 }
 0x774   : > { %v871_v51 = vpop.f32.mrf.mxu1 }
 0x775   : > { %878 = vrot.lane.b32.xlu0 %v871_v51, %s1879_s17  ;;  %s467_s17 = scalar_lea.vmem %s2438_s14, %s1752_s15 }
 0x778   : > { %v956_v52 = vpop.f32.mrf.mxu2 }
 0x779   : > { %963 = vrot.lane.b32.xlu2 %v956_v52, %s1876_s23 }
 0x780   : > { %v958_v53 = vpop.f32.mrf.mxu2 }
 0x781   : > { %965 = vrot.lane.b32.xlu1 %v958_v53, %s1876_s23 }
 0x7d3   : > { %v964_v59 = vpop.permute.xlu2 %963 }
 0x7df   : > { %v877_v58 = vpop.permute.xlu1 %876 }
 0x7e0   : > { %883 = vst.msk [vmem:[#allocation2] sm:$0xff] %vm882_vm10, %v877_v58 }
 0x7e1   : > { %970 = vst.msk [vmem:[#allocation2] sm:$0xff] %vm969_vm11, %v964_v59 }
 0x7e7   : > { %v879_v60 = vpop.permute.xlu0 %878 }
 0x7e8   : > { %884 = vst.msk [vmem:[#allocation2 + $0x8] sm:$0xff] %vm882_vm10, %v879_v60  ;;  %v972_v62 = vld [vmem:[#allocation2] sm:$0xff] }
 0x7f3   : > { %v966_v61 = vpop.permute.xlu1 %965 }
 0x7f4   : > { %971 = vst.msk [vmem:[#allocation2 + $0x8] sm:$0xff] %vm969_vm11, %v966_v61 }
 0x7fb   : > { %v973_v63 = vld [vmem:[#allocation2 + $0x8] sm:$0xff] }
 0x7fc   : > { %v982_v0 = vpack.c.bf16 %v973_v63, %v972_v62 }
 0x7fe   : > { %1647 = vmatmul.msk.bf16.vlgmr.msrb.gmra.mxu0 %vm475_vm0, %v982_v0 }
 0x87b   : > { %v1019_v4 = vpop.f32.mrf.mxu0 }
 0x87c   : > { %v1024_v5 = vadd.f32 %v1973_v1, %v1019_v4  ;;  %v1814_v4 = vld [vmem:[%s2433_s9] ss:$0 sm:$0xff] }
 0x87e   : > { %v2164_v6 = vadd.f32 %v1812_v2, %v1024_v5 }
 0x880   : > { %v1034_v7 = vsel %vm475_vm0, %v2164_v6, 0.0 }
 0x881   : > { %1035 = vadd.xlane.f32.xlu0 %v1034_v7 }
 0x883   : > { %v1021_v8 = vpop.f32.mrf.mxu0 }
 0x884   : > { %v1025_v9 = vadd.f32 %v1977_v3, %v1021_v8 }
 0x886   : > { %v2169_v10 = vadd.f32 %v1812_v2, %v1025_v9 }
 0x888   : > { %v1037_v12 = vsel %vm475_vm0, %v2169_v10, 0.0 }
 0x889   : > { %1038 = vadd.xlane.f32.xlu2 %v1037_v12 }
 0x8f4   : > { %v1036_v13 = vpop.xlane.xlu0 %1035 }
 0x8f5   : > { %v1040_v14 = vmul.f32 %v1036_v13, %v1981_v11 }
 0x8f7   : > { %v2175_v1 = vsub.f32 %v2164_v6, %v1040_v14  ;;  %v1097_v14 = vld [vmem:[%s2435_s11] sm:$0x3] }
 0x8f9   : > { %v1044_v15 = vmul.f32 %v2175_v1, %v2175_v1 }
 0x8fb   : > { %v1046_v16 = vsel %vm475_vm0, %v1044_v15, 0.0 }
 0x8fc   : > { %1047 = vadd.xlane.f32.xlu1 %v1046_v16  ;;  %v1039_v17 = vpop.xlane.xlu2 %1038 }
 0x8fd   : > { %v1041_v3 = vmul.f32 %v1039_v17, %v1981_v11 }
 0x8ff   : > { %v2182_v18 = vsub.f32 %v2169_v10, %v1041_v3  ;;  %v1100_v3 = vperm.slane %v1097_v14, 1 }
 0x901   : > { %v1045_v19 = vmul.f32 %v2182_v18, %v2182_v18 }
 0x903   : > { %v1049_v20 = vsel %vm475_vm0, %v1045_v19, 0.0 }
 0x904   : > { %1050 = vadd.xlane.f32.xlu0 %v1049_v20 }
 0x96f   : > { %v1048_v39 = vpop.xlane.xlu1 %1047 }
 0x970   : > { %v1052_v41 = vmul.f32 %v1048_v39, %v1981_v11 }
 0x972   : > { %v1054_v24 = vadd.f32 1e-05, %v1052_v41  ;;  %v1779_v41 = vld [vmem:[%s2436_s12 + $0x28] sm:$0xff] }
 0x973   : > { %1486 = vmatpush.bf16.msra.mxu2 %v1779_v41 }
 0x974   : > { %1854 = vrsqrt.f32 %v1054_v24  ;;  %vm1062_vm13 = vweird.f32 %v1054_v24 }
 0x977   : > { %v1051_v48 = vpop.xlane.xlu0 %1050 }
 0x978   : > { %v1053_v49 = vmul.f32 %v1051_v48, %v1981_v11  ;;  %v1813_v11 = vld [vmem:[%s2432_s8] ss:$0 sm:$0xff] }
 0x97a   : > { %v1855_v50 = vpop.eup %1854  ;;  %v1055_v51 = vadd.f32 1e-05, %v1053_v49 }
 0x97b   : > { %v1057_v52 = vmul.f32 %v1855_v50, %v1054_v24  ;;  %vm1063_vm12 = vweird.f32 %v1855_v50 }
 0x97c   : > { %1856 = vrsqrt.f32 %v1055_v51  ;;  %vm1064_vm14 = vmor %vm1062_vm13, %vm1063_vm12  ;;  %vm1072_vm1 = vweird.f32 %v1055_v51 }
 0x97d   : > { %v1058_v53 = vmul.f32 %v1855_v50, %v1057_v52 }
 0x97f   : > { %v1059_v54 = vmul.f32 0.5, %v1058_v53 }
 0x981   : > { %v1060_v55 = vsub.f32 1.5, %v1059_v54 }
 0x982   : > { %v1857_v56 = vpop.eup %1856 }
 0x983   : > { %v1061_v57 = vmul.f32 %v1855_v50, %v1060_v55  ;;  %v1067_v58 = vmul.f32 %v1857_v56, %v1055_v51  ;;  %vm1073_vm15 = vweird.f32 %v1857_v56  ;;  %v1778_v55 = vld [vmem:[%s2436_s12 + $0x20] sm:$0xff] }
 0x984   : > { %vm1074_vm2 = vmor %vm1072_vm1, %vm1073_vm15  ;;  %1487 = vmatpush.bf16.msra.mxu2 %v1778_v55 }
 0x985   : > { %v1068_v59 = vmul.f32 %v1857_v56, %v1067_v58  ;;  %v1065_v60 = vsel %vm1064_vm14, %v1855_v50, %v1061_v57 }
 0x986   : > { %v1076_v63 = vmul.f32 %v1065_v60, %v2175_v1  ;;  %v1099_v1 = vperm.slane %v1097_v14, 0  ;;  %v1787_v60 = vld [vmem:[%s2436_s12 + $0x68] sm:$0xff] }
 0x987   : > { %v1069_v61 = vmul.f32 0.5, %v1068_v59  ;;  %1500 = vmatpush.bf16.msra.mxu0 %v1787_v60 }
 0x988   : > { %v1081_v5 = vmul.f32 %v1813_v11, %v1076_v63 }
 0x989   : > { %v1070_v62 = vsub.f32 1.5, %v1069_v61 }
 0x98a   : > { %v1086_v9 = vadd.f32 %v1814_v4, %v1081_v5  ;;  %v1777_v5 = vld [vmem:[%s2436_s12 + $0x18] sm:$0xff] }
 0x98b   : > { %v1071_v0 = vmul.f32 %v1857_v56, %v1070_v62  ;;  %1488 = vmatpush.bf16.msra.mxu2 %v1777_v5  ;;  %v1782_v5 = vld [vmem:[%s2436_s12 + $0x40] sm:$0xff] }
 0x98d   : > { %v1075_v2 = vsel %vm1074_vm2, %v1857_v56, %v1071_v0 }
 0x98e   : > { %v1077_v7 = vmul.f32 %v1075_v2, %v2182_v18 }
 0x990   : > { %v1082_v8 = vmul.f32 %v1813_v11, %v1077_v7 }
 0x992   : > { %v1087_v12 = vadd.f32 %v1814_v4, %v1082_v8 }
 0x994   : > { %v1096_v13 = vpack.c.bf16 %v1087_v12, %v1086_v9 }
 0x996   : > { %1680 = vmatmul.msk.bf16.vlgmr.msrb.gmra.mxu1 %vm475_vm0, %v1096_v13  ;;  %1681 = vmatmul.msk.bf16.vlgmr.msra.gmra.mxu3 %vm475_vm0, %v1096_v13  ;;  %v1786_v13 = vld [vmem:[%s2436_s12 + $0x60] sm:$0xff] }
 0x997   : > { %1501 = vmatpush.bf16.msra.mxu0 %v1786_v13 }
 0x99b   : > { %1502 = vmatpush.bf16.msra.mxu0 %v1785_v30 }
 0xa13   : > { %v1155_v15 = vpop.f32.mrf.mxu1 }
 0xa14   : > { %v2250_v16 = vadd.f32 %v1155_v15, %v1099_v1 }
 0xa16   : > { %v2253_v17 = vmul.f32 0.70710677, %v2250_v16 }
 0xa18   : > { %v1182_v18 = vmul.f32 %v2253_v17, %v2253_v17 }
 0xa19   : > { %v1169_v19 = vpop.f32.mrf.mxu3 }
 0xa1a   : > { %v2257_v20 = vmin.f32 %v1182_v18, 16.0  ;;  %v2259_v21 = vadd.f32 %v1169_v19, %v1100_v3  ;;  %v1776_v19 = vld [vmem:[%s2436_s12 + $0x10] sm:$0xff] }
 0xa1b   : > { %v1157_v23 = vpop.f32.mrf.mxu1  ;;  %1489 = vmatpush.bf16.msra.mxu2 %v1776_v19 }
 0xa1c   : > { %v1184_v25 = vmul.f32 2.1237322e-06, %v2257_v20  ;;  %v1195_v26 = vmul.f32 3.8918573e-05, %v2257_v20  ;;  %v2266_v27 = vadd.f32 %v1157_v23, %v1099_v1  ;;  %v2269_v28 = vmul.f32 0.70710677, %v2259_v21 }
 0xa1e   : > { %v1196_v29 = vadd.f32 0.001143296, %v1195_v26  ;;  %v1185_v31 = vadd.f32 0.00028619796, %v1184_v25  ;;  %v1222_v32 = vmul.f32 %v2269_v28, %v2269_v28  ;;  %v2277_v33 = vmul.f32 0.70710677, %v2266_v27 }
 0xa1f   : > { %1490 = vmatpush.bf16.msra.mxu2 %v1775_v35 }
 0xa20   : > { %v1197_v34 = vmul.f32 %v1196_v29, %v2257_v20  ;;  %v2283_v36 = vmin.f32 %v1222_v32, 16.0  ;;  %v1262_v37 = vmul.f32 %v2277_v33, %v2277_v33  ;;  %v1186_v42 = vmul.f32 %v1185_v31, %v2257_v20 }
 0xa21   : > { %v1171_v38 = vpop.f32.mrf.mxu3 }
 0xa22   : > { %v1198_v39 = vadd.f32 0.014752088, %v1197_v34  ;;  %v2287_v40 = vadd.f32 %v1171_v38, %v1100_v3  ;;  %v1235_v43 = vmul.f32 3.8918573e-05, %v2283_v36  ;;  %v2294_v44 = vmin.f32 %v1262_v37, 16.0 }
 0xa23   : > { %v1224_v47 = vmul.f32 2.1237322e-06, %v2283_v36  ;;  %v1187_v53 = vadd.f32 0.0036580483, %v1186_v42 }
 0xa24   : > { %v1199_v24 = vmul.f32 %v1198_v39, %v2257_v20  ;;  %v2298_v45 = vmul.f32 0.70710677, %v2287_v40  ;;  %v1236_v48 = vadd.f32 0.001143296, %v1235_v43  ;;  %v1264_v49 = vmul.f32 2.1237322e-06, %v2294_v44 }
 0xa25   : > { %v1275_v51 = vmul.f32 3.8918573e-05, %v2294_v44  ;;  %v1225_v61 = vadd.f32 0.00028619796, %v1224_v47  ;;  %v1188_v7 = vmul.f32 %v1187_v53, %v2257_v20 }
 0xa26   : > { %v1200_v50 = vadd.f32 0.112945676, %v1199_v24  ;;  %v1302_v52 = vmul.f32 %v2298_v45, %v2298_v45  ;;  %v1237_v54 = vmul.f32 %v1236_v48, %v2283_v36  ;;  %v1265_v57 = vadd.f32 0.00028619796, %v1264_v49  ;;  %v1784_v24 = vld [vmem:[%s2436_s12 + $0x50] sm:$0xff] }
 0xa27   : > { %v1276_v58 = vadd.f32 0.001143296, %v1275_v51  ;;  %v1226_v14 = vmul.f32 %v1225_v61, %v2283_v36  ;;  %v1189_v25 = vadd.f32 0.05243302, %v1188_v7  ;;  %1503 = vmatpush.bf16.msra.mxu0 %v1784_v24  ;;  %v1774_v51 = vld [vmem:[%s2436_s12] sm:$0xff] }
 0xa28   : > { %v1201_v56 = vmul.f32 %v1200_v50, %v2257_v20  ;;  %v2313_v59 = vmin.f32 %v1302_v52, 16.0  ;;  %v1238_v62 = vadd.f32 0.014752088, %v1237_v54  ;;  %v1266_v9 = vmul.f32 %v1265_v57, %v2294_v44  ;;  %1491 = vmatpush.bf16.msra.mxu2 %v1774_v51 }
 0xa29   : > { %v1277_v63 = vmul.f32 %v1276_v58, %v2294_v44  ;;  %v1227_v31 = vadd.f32 0.0036580483, %v1226_v14  ;;  %v1190_v39 = vmul.f32 %v1189_v25, %v2257_v20 }
 0xa2a   : > { %v1202_v11 = vadd.f32 0.4994258, %v1201_v56  ;;  %v1239_v0 = vmul.f32 %v1238_v62, %v2283_v36  ;;  %v1304_v2 = vmul.f32 2.1237322e-06, %v2313_v59  ;;  %v1315_v4 = vmul.f32 3.8918573e-05, %v2313_v59 }
 0xa2b   : > { %v1278_v12 = vadd.f32 0.014752088, %v1277_v63  ;;  %v1267_v26 = vadd.f32 0.0036580483, %v1266_v9  ;;  %v1228_v46 = vmul.f32 %v1227_v31, %v2283_v36  ;;  %v1191_v54 = vadd.f32 0.18741608, %v1190_v39 }
 0xa2c   : > { %v1203_v8 = vmul.f32 %v1202_v11, %v2257_v20  ;;  %v1240_v1 = vadd.f32 0.112945676, %v1239_v0  ;;  %v1316_v15 = vadd.f32 0.001143296, %v1315_v4  ;;  %v1305_v23 = vadd.f32 0.00028619796, %v1304_v2 }
 0xa2d   : > { %v1279_v18 = vmul.f32 %v1278_v12, %v2294_v44  ;;  %v1268_v41 = vmul.f32 %v1267_v26, %v2294_v44  ;;  %v1783_v56 = vld [vmem:[%s2436_s12 + $0x48] sm:$0xff]  ;;  %v1229_v58 = vadd.f32 0.05243302, %v1228_v46  ;;  %v1192_v2 = vmul.f32 %v1191_v54, %v2257_v20 }
 0xa2e   : > { %v2332_v3 = vadd.f32 1.0, %v1203_v8  ;;  %v1241_v22 = vmul.f32 %v1240_v1, %v2283_v36  ;;  %v1317_v29 = vmul.f32 %v1316_v15, %v2313_v59  ;;  %v1306_v38 = vmul.f32 %v1305_v23, %v2313_v59  ;;  %1504 = vmatpush.bf16.msra.mxu0 %v1783_v56 }
 0xa2f   : > { %v1280_v34 = vadd.f32 0.112945676, %v1279_v18  ;;  %v1269_v55 = vadd.f32 0.05243302, %v1268_v41  ;;  %v1230_v9 = vmul.f32 %v1229_v58, %v2283_v36  ;;  %v1193_v19 = vadd.f32 1.1283791, %v1192_v2 }
 0xa30   : > { %1858 = vrcp.f32 %v2332_v3  ;;  %v1242_v32 = vadd.f32 0.4994258, %v1241_v22  ;;  %v1318_v43 = vadd.f32 0.014752088, %v1317_v29  ;;  %v1307_v53 = vadd.f32 0.0036580483, %v1306_v38 }
 0xa31   : > { %v1281_v42 = vmul.f32 %v1280_v34, %v2294_v44  ;;  %v1270_v4 = vmul.f32 %v1269_v55, %v2294_v44  ;;  %v1216_v12 = vand.u32 2147483648, %v2332_v3  ;;  %vm1210_vm3 = vweird.f32 %v2332_v3 }
 0xa32   : > { %v1243_v37 = vmul.f32 %v1242_v32, %v2283_v36  ;;  %v1319_v50 = vmul.f32 %v1318_v43, %v2313_v59  ;;  %v1308_v63 = vmul.f32 %v1307_v53, %v2313_v59  ;;  %1505 = vmatpush.bf16.msra.mxu0 %v1782_v5  ;;  %v1214_v20 = vand.u32 2147483647, %v2332_v3 }
 0xa33   : > { %v1282_v49 = vadd.f32 0.4994258, %v1281_v42  ;;  %v1271_v18 = vadd.f32 0.18741608, %v1270_v4  ;;  %v1231_v23 = vadd.f32 0.18741608, %v1230_v9 }
 0xa34   : > { %v2356_v47 = vadd.f32 1.0, %v1243_v37  ;;  %v1320_v61 = vadd.f32 0.112945676, %v1319_v50  ;;  %v1309_v14 = vadd.f32 0.05243302, %v1308_v63  ;;  %v1217_v26 = vor.u32 1.1754944e-38, %v1216_v12 }
 0xa35   : > { %v1283_v60 = vmul.f32 %v1282_v49, %v2294_v44  ;;  %vm1215_vm5 = vcmp.eq.f32.partialorder %v1214_v20, 8.507059e+37  ;;  %v1194_v37 = vmul.f32 %v1193_v19, %v2253_v17  ;;  %v1232_v38 = vmul.f32 %v1231_v23, %v2283_v36 }
 0xa36   : > { %v1859_v48 = vpop.eup %1858  ;;  %1860 = vrcp.f32 %v2356_v47  ;;  %v1321_v0 = vmul.f32 %v1320_v61, %v2313_v59  ;;  %v1310_v31 = vmul.f32 %v1309_v14, %v2313_v59  ;;  %vm1250_vm6 = vweird.f32 %v2356_v47 }
 0xa37   : > { %v1206_v52 = vmul.f32 %v1859_v48, %v2332_v3  ;;  %v2368_v11 = vadd.f32 1.0, %v1283_v60  ;;  %vm1211_vm0 = vweird.f32 %v1859_v48  ;;  %v1272_v3 = vmul.f32 %v1271_v18, %v2294_v44 }
 0xa38   : > { %v1322_v1 = vadd.f32 0.4994258, %v1321_v0  ;;  %vm1212_vm4 = vmor %vm1210_vm3, %vm1211_vm0  ;;  %v1254_v41 = vand.u32 2147483647, %v2356_v47  ;;  %v1256_v24 = vand.u32 2147483648, %v2356_v47  ;;  %vm1516_vm0 = vcmask 519168  }
 0xa39   : > { %v1207_v57 = vsub.f32 1.0, %v1206_v52  ;;  %1862 = vrcp.f32 %v2368_v11  ;;  %v1296_v46 = vand.u32 2147483648, %v2368_v11  ;;  %v1311_v44 = vadd.f32 0.18741608, %v1310_v31 }
 0xa3a   : > { %v1323_v25 = vmul.f32 %v1322_v1, %v2313_v59  ;;  %v1294_v17 = vand.u32 2147483647, %v2368_v11  ;;  %v1233_v36 = vadd.f32 1.1283791, %v1232_v38  ;;  %vm1255_vm10 = vcmp.eq.f32.partialorder %v1254_v41, 8.507059e+37 }
 0xa3b   : > { %v1208_v62 = vmul.f32 %v1859_v48, %v1207_v57  ;;  %vm1290_vm11 = vweird.f32 %v2368_v11  ;;  %v1257_v55 = vor.u32 1.1754944e-38, %v1256_v24  ;;  %v1297_v56 = vor.u32 1.1754944e-38, %v1296_v46 }
 0xa3c   : > { %v1861_v7 = vpop.eup %1860  ;;  %v1324_v32 = vadd.f32 1.0, %v1323_v25  ;;  %v1312_v57 = vmul.f32 %v1311_v44, %v2313_v59  ;;  %vm1295_vm13 = vcmp.eq.f32.partialorder %v1294_v17, 8.507059e+37  ;;  %v1234_v63 = vmul.f32 %v1233_v36, %v2269_v28 }
 0xa3d   : > { %v1209_v8 = vadd.f32 %v1859_v48, %v1208_v62  ;;  %v1246_v13 = vmul.f32 %v1861_v7, %v2356_v47  ;;  %vm1251_vm7 = vweird.f32 %v1861_v7  ;;  %v1174_v59 = vmul.f32 0.5, %v2250_v16 }
 0xa3e   : > { %1864 = vrcp.f32 %v1324_v32  ;;  %vm2396_vm9 = vmor %vm1250_vm6, %vm1251_vm7  ;;  %v1334_v5 = vand.u32 2147483647, %v1324_v32  ;;  %vm1330_vm15 = vweird.f32 %v1324_v32 }
 0xa3f   : > { %v1247_v15 = vsub.f32 1.0, %v1246_v13  ;;  %v1213_v22 = vsel %vm1212_vm4, %v1859_v48, %v1209_v8  ;;  %v1863_v30 = vpop.eup %1862  ;;  %v1273_v48 = vadd.f32 1.1283791, %v1272_v3 }
 0xa40   : > { %v1218_v34 = vsel %vm1215_vm5, %v1217_v26, %v1213_v22  ;;  %v1286_v35 = vmul.f32 %v1863_v30, %v2368_v11  ;;  %vm1291_vm8 = vweird.f32 %v1863_v30  ;;  %v1313_v11 = vadd.f32 1.1283791, %v1312_v57 }
 0xa41   : > { %v1248_v29 = vmul.f32 %v1861_v7, %v1247_v15  ;;  %v1219_v43 = vmul.f32 %v1218_v34, %v1194_v37  ;;  %vm1292_vm12 = vmor %vm1290_vm11, %vm1291_vm8  ;;  %v1274_v47 = vmul.f32 %v1273_v48, %v2277_v33  ;;  %v1176_v33 = vmul.f32 0.5, %v2266_v27  ;;  %v1815_v34 = vld [vmem:[%s2437_s13] ss:$0 sm:$0xff] }
 0xa42   : > { %v1287_v42 = vsub.f32 1.0, %v1286_v35  ;;  %v1314_v28 = vmul.f32 %v1313_v11, %v2298_v45  ;;  %vm1335_vm2 = vcmp.eq.f32.partialorder %v1334_v5, 8.507059e+37  ;;  %v1175_v27 = vmul.f32 0.5, %v2259_v21 }
 0xa43   : > { %v1249_v39 = vadd.f32 %v1861_v7, %v1248_v29  ;;  %v1682_v54 = vclamps-f32 %v1219_v43, 1.0  ;;  %v1177_v29 = vmul.f32 0.5, %v2287_v40 }
 0xa44   : > { %v1288_v49 = vmul.f32 %v1863_v30, %v1287_v42  ;;  %v1865_v53 = vpop.eup %1864 }
 0xa45   : > { %v1253_v51 = vsel %vm2396_vm9, %v1861_v7, %v1249_v39  ;;  %v1326_v60 = vmul.f32 %v1865_v53, %v1324_v32  ;;  %v1342_v4 = vadd.f32 1.0, %v1682_v54  ;;  %v1336_v7 = vand.u32 2147483648, %v1324_v32 }
 0xa46   : > { %v1289_v52 = vadd.f32 %v1863_v30, %v1288_v49  ;;  %v1258_v61 = vsel %vm1255_vm10, %v1257_v55, %v1253_v51  ;;  %vm1331_vm14 = vweird.f32 %v1865_v53 }
 0xa47   : > { %v1327_v2 = vsub.f32 1.0, %v1326_v60  ;;  %v1259_v8 = vmul.f32 %v1258_v61, %v1234_v63  ;;  %v1346_v14 = vmul.f32 %v1342_v4, %v1174_v59  ;;  %vm1332_vm1 = vmor %vm1330_vm15, %vm1331_vm14  ;;  %v1337_v1 = vor.u32 1.1754944e-38, %v1336_v7 }
 0xa48   : > { %v1293_v58 = vsel %vm1292_vm12, %v1863_v30, %v1289_v52 }
 0xa49   : > { %v1298_v62 = vsel %vm1295_vm13, %v1297_v56, %v1293_v58  ;;  %v1328_v12 = vmul.f32 %v1865_v53, %v1327_v2  ;;  %v1683_v15 = vclamps-f32 %v1259_v8, 1.0 }
 0xa4a   : > { %v1299_v0 = vmul.f32 %v1298_v62, %v1274_v47 }
 0xa4b   : > { %v1329_v20 = vadd.f32 %v1865_v53, %v1328_v12  ;;  %v1343_v26 = vadd.f32 1.0, %v1683_v15 }
 0xa4c   : > { %v1684_v9 = vclamps-f32 %v1299_v0, 1.0 }
 0xa4d   : > { %v1333_v19 = vsel %vm1332_vm1, %v1865_v53, %v1329_v20  ;;  %v1347_v31 = vmul.f32 %v1343_v26, %v1175_v27 }
 0xa4e   : > { %v1344_v13 = vadd.f32 1.0, %v1684_v9  ;;  %v1338_v22 = vsel %vm1335_vm2, %v1337_v1, %v1333_v19 }
 0xa4f   : > { %v1339_v25 = vmul.f32 %v1338_v22, %v1314_v28 }
 0xa50   : > { %v1348_v18 = vmul.f32 %v1344_v13, %v1176_v33 }
 0xa51   : > { %v1685_v16 = vclamps-f32 %v1339_v25, 1.0 }
 0xa52   : > { %v1382_v23 = vpack.c.bf16 %v1348_v18, %v1346_v14 }
 0xa53   : > { %v1345_v30 = vadd.f32 1.0, %v1685_v16 }
 0xa54   : > { %1492 = vmatmul.bf16.vlgmr.msra.gmra.mxu2 %v1382_v23 }
 0xa55   : > { %v1349_v45 = vmul.f32 %v1345_v30, %v1177_v29 }
 0xa57   : > { %v1383_v32 = vpack.c.bf16 %v1349_v45, %v1347_v31 }
 0xa59   : > { %1506 = vmatmul.bf16.vlgmr.msra.gmra.mxu0 %v1383_v32 }
 0xad6   : > { %v1507_v37 = vpop.f32.mrf.mxu0 }
 0xad7   : > { %v1493_v3 = vpop.f32.mrf.mxu2 }
 0xad8   : > { %v1494_v35 = vadd.f32 %v1815_v34, %v1493_v3 }
 0xada   : > { %v1508_v38 = vadd.f32 %v1507_v37, %v1494_v35 }
 0xadc   : > { %v1512_v39 = vadd.f32 %v1508_v38, %v2164_v6 }
 0xade   : > { %v1514_v21 = vpack.c.bf16 %v1512_v39, %v1512_v39  ;;  %v1509_v42 = vpop.f32.mrf.mxu0 }
 0xadf   : > { %v1495_v40 = vpop.f32.mrf.mxu2 }
 0xae0   : > { %1517 = vst.msk [vmem:[%s467_s17] sm:$0xf] %vm1516_vm0, %v1514_v21  ;;  %v1496_v41 = vadd.f32 %v1815_v34, %v1495_v40 }
 0xae2   : > { %v1510_v43 = vadd.f32 %v1509_v42, %v1496_v41 }
 0xae4   : > { %v1513_v24 = vadd.f32 %v1510_v43, %v2169_v10 }
 0xae6   : > { %v1515_v46 = vpack.c.bf16 %v1513_v24, %v1513_v24 }
 0xae8   : > { %1518 = vst.msk [vmem:[%s467_s17 + $0x4] sm:$0xf] %vm1516_vm0, %v1515_v46 }
 0xae9 PF: > { %s24_s29 = sadd.s32 1, %s1872_s29  }
 0xaea   : > { %p21_p4 = scmp.ge.s32.totalorder %s24_s29, 4  }
 0xaec   :  { %23 = sbr.rel (!%p21_p4) target bundleno = 1 (0x1), region = 109 }

</bundles_post_ra>
